<compile_context>
chip_gen: v7x
topology: tpu7x:2x2x1
jax: 0.10.0
libtpu: 0.0.40
codegen_flags: <defaults>
</compile_context>

<pallas_src>
import jax
import jax.numpy as jnp
import numpy as np
from jax import lax
from jax.experimental import pallas as pl
from jax.experimental.pallas import tpu as pltpu


# --------------------------------------------------------------------------- #
# Phase 1: one-shot precompute kernel
# --------------------------------------------------------------------------- #
def _precompute_kernel(x_ref,
                       lstm_wih_ref, lstm_whh_ref, lstm_b_ref,
                       rnn_wih_f_ref, rnn_whh_f_ref, rnn_b_f_ref,
                       rnn_wih_b_ref, rnn_whh_b_ref, rnn_b_b_ref,
                       w1s_ref, w1f_ref, b1_ref,
                       lstm_out_ref, s_proj_ref, hp_f_ref, h_f_ref, hb_tri_ref,
                       seq_scr):
    T, Bp, H = lstm_out_ref.shape
    Dh = h_f_ref.shape[2]
    L = lstm_wih_ref.shape[0]

    def mm(a, b):
        return jnp.dot(a, b, preferred_element_type=jnp.float32)

    x_flat = x_ref[...]                                          # (T*Bp, D)

    # ---------------- multi-layer LSTM, gate layout (i, f, o, g) ----------- #
    # Input projections hoisted: one (T*Bp, .) @ (., 4H) matmul per layer.
    # Hidden states go straight into VMEM refs (bounded live ranges, no
    # Python `rows` lists); layer 2 is fed from seq_scr via a reshape.
    layer_in = x_flat
    for l in range(L):
        gproj = mm(layer_in, lstm_wih_ref[l]) + lstm_b_ref[l]    # (T*Bp, 4H)
        whh = lstm_whh_ref[l]
        h = jnp.zeros((Bp, H), jnp.float32)
        c = jnp.zeros((Bp, H), jnp.float32)
        dst = lstm_out_ref if l == L - 1 else seq_scr
        for t in range(T):              # static trip count -> fully unrolled
            gates = gproj[t * Bp:(t + 1) * Bp, :] + mm(h, whh)
            sig = jax.nn.sigmoid(gates[:, :3 * H])               # i, f, o
            gg = jnp.tanh(gates[:, 3 * H:])                      # g
            c = sig[:, H:2 * H] * c + sig[:, :H] * gg
            h = sig[:, 2 * H:] * jnp.tanh(c)
            dst[t] = h
        if l + 1 < L:
            layer_in = seq_scr[...].reshape(T * Bp, H)
        # TODO(synk): inter-layer dropout (p=0.5) omitted (eval-mode).

    # ---- hoisted query projection: s_proj[i] = lstm_out[i] @ w1s + b1 ----- #
    s_proj_ref[...] = (mm(lstm_out_ref[...].reshape(T * Bp, H), w1s_ref[...])
                       + b1_ref[...]).reshape(T, Bp, H)

    # ---------------- forward (causal) half of the attention bi-RNN -------- #
    xf = mm(x_flat, rnn_wih_f_ref[...]) + rnn_b_f_ref[...]       # (T*Bp, Dh)
    wfh = rnn_whh_f_ref[...]
    hf = jnp.zeros((Bp, Dh), jnp.float32)
    for t in range(T):
        hf = jnp.tanh(xf[t * Bp:(t + 1) * Bp, :] + mm(hf, wfh))
        h_f_ref[t] = hf

    # ---- hoisted first-linear projection of the (prefix-invariant) h_f ---- #
    hp_f_ref[...] = mm(h_f_ref[...].reshape(T * Bp, Dh),
                       w1f_ref[...]).reshape(T, Bp, H)

    # ---------------- backward RNN: batched wavefront over all prefixes ---- #
    # For query i the backward pass runs x[i] .. x[0]; hb_tri[i, t] holds its
    # state at time t.  Wavefront offset k advances ALL prefixes i >= k with a
    # single (T*Bp, Dh) @ (Dh, Dh) matmul: O(T) wide matmuls instead of
    # O(T^2) 8-row matmuls inside a dynamic-trip per-step loop.
    xb = (mm(x_flat, rnn_wih_b_ref[...]) + rnn_b_b_ref[...]).reshape(T, Bp, Dh)
    wbh = rnn_whh_b_ref[...]

    # Rows t > i are never produced; keep them exact (finite) zeros so the
    # masked softmax / weighted sums in the *parallel* phase-2 grid are
    # NaN-safe regardless of execution order.
    hb_tri_ref[...] = jnp.zeros(hb_tri_ref.shape, jnp.float32)

    wave = jnp.tanh(xb)                            # wave[i] = h_b^{(i)}[i]
    for i in range(T):
        hb_tri_ref[i, i] = wave[i]
    for k in range(1, T):
        adv = mm(wave.reshape(T * Bp, Dh), wbh).reshape(T, Bp, Dh)
        xb_shift = jnp.concatenate(                # xb_shift[i] = xb[i - k]
            [jnp.zeros((k, Bp, Dh), jnp.float32), xb[:T - k]], axis=0)
        wave = jnp.tanh(xb_shift + adv)            # rows i < k unused (finite)
        for i in range(k, T):
            hb_tri_ref[i, i - k] = wave[i]


# --------------------------------------------------------------------------- #
# Phase 2: per-query-block attention kernel (parallel grid)
# --------------------------------------------------------------------------- #
def _attention_kernel(lstm_out_ref, s_proj_ref, hp_f_ref, h_f_ref, hb_ref,
                      w1b_ref, w2_ref, b2_ref, out_ref):
    QB, T, Bp, Dh = hb_ref.shape
    D = hp_f_ref.shape[2]

    hb = hb_ref[...]                                             # (QB,T,Bp,Dh)
    # Only the h_b projection is recomputed per step; one wide matmul.
    hp_b = jnp.dot(hb.reshape(QB * T * Bp, Dh), w1b_ref[...],
                   preferred_element_type=jnp.float32).reshape(QB, T, Bp, D)

    z = jnp.tanh(s_proj_ref[...][:, None, :, :]
                 + hp_f_ref[...][None, :, :, :] + hp_b)          # (QB,T,Bp,D)
    # e = tanh(z . w2 + b2): VPU multiply + lane reduce (no (., 1) matmul);
    # scores kept as (QB, T, Bp) -- time x batch per query, not (T, B, 1).
    e = jnp.tanh(jnp.sum(z * w2_ref[...], axis=-1) + b2_ref[0, 0])

    # Masked softmax over time, fully in registers.  e is tanh-bounded and
    # invalid entries are explicitly zeroed, so the -1e30 fill is NaN-safe.
    i0 = pl.program_id(0) * QB
    q_idx = lax.broadcasted_iota(jnp.int32, (QB, T, Bp), 0)
    t_idx = lax.broadcasted_iota(jnp.int32, (QB, T, Bp), 1)
    valid = t_idx <= i0 + q_idx
    e_m = jnp.where(valid, e, jnp.float32(-1e30))
    m = jnp.max(e_m, axis=1, keepdims=True)
    p = jnp.where(valid, jnp.exp(e_m - m), 0.0)
    alpha = p / jnp.sum(p, axis=1, keepdims=True)                # (QB, T, Bp)

    a4 = alpha[..., None]
    attn_f = jnp.sum(a4 * h_f_ref[...][None, :, :, :], axis=1)   # (QB, Bp, Dh)
    attn_b = jnp.sum(a4 * hb, axis=1)                            # (QB, Bp, Dh)

    s = lstm_out_ref[...]                                        # (QB, Bp, D)
    # h_f / h_b stay separate end-to-end: write the two lane halves directly.
    out_ref[:, :, :Dh] = attn_f + s[:, :, :Dh]
    out_ref[:, :, Dh:] = attn_b + s[:, :, Dh:]


# --------------------------------------------------------------------------- #
# Wrapper: weight re-layout, batch padding, BlockSpecs, two pallas_calls
# --------------------------------------------------------------------------- #
def lstm_with_attention(x, params):
    T, B, D = x.shape
    L = params["lstm_w_ih"].shape[0]
    H = params["lstm_w_hh"].shape[2]
    Dh = D // 2
    assert H == D, "model requires nhid == ninput"
    f32 = jnp.float32

    # Pad batch to a sublane multiple of 8; padded rows are independent and
    # sliced off at the end.
    Bp = ((B + 7) // 8) * 8
    if Bp != B:
        x = jnp.pad(x, ((0, 0), (0, Bp - B), (0, 0)))
    x_flat = x.reshape(T * Bp, D)

    # LSTM: transpose, fuse biases, permute gate columns (i,f,g,o) -> (i,f,o,g)
    perm = np.concatenate([np.arange(0, 2 * H),
                           np.arange(3 * H, 4 * H),
                           np.arange(2 * H, 3 * H)])
    lstm_wih = jnp.transpose(params["lstm_w_ih"], (0, 2, 1))[:, :, perm]
    lstm_whh = jnp.transpose(params["lstm_w_hh"], (0, 2, 1))[:, :, perm]
    lstm_b = ((params["lstm_b_ih"] + params["lstm_b_hh"])[:, None, :])[:, :, perm]

    rnn_wih_f = params["rnn_w_ih_f"].T                                # (D, Dh)
    rnn_whh_f = params["rnn_w_hh_f"].T                                # (Dh, Dh)
    rnn_b_f = (params["rnn_b_ih_f"] + params["rnn_b_hh_f"])[None, :]  # (1, Dh)
    rnn_wih_b = params["rnn_w_ih_b"].T
    rnn_whh_b = params["rnn_w_hh_b"].T
    rnn_b_b = (params["rnn_b_ih_b"] + params["rnn_b_hh_b"])[None, :]

    # linear1 columns act on [s | h_f | h_b]; split so hp_f / s_proj are
    # precomputed once and only hp_b is recomputed per query block.
    W1 = params["lin1_w"]                 # (D, 2D)
    w1s = W1[:, :D].T                     # (D, D)
    w1f = W1[:, D:D + Dh].T               # (Dh, D)
    w1b = W1[:, D + Dh:].T                # (Dh, D)
    b1 = params["lin1_b"][None, :]        # (1, D)  folded into s_proj
    w2 = params["lin2_w"]                 # (1, D)
    b2 = params["lin2_b"].reshape(1, 1)   # scalar, lives in SMEM in phase 2

    # -------------------- phase 1: one-shot precompute --------------------- #
    pre_inputs = (x_flat, lstm_wih, lstm_whh, lstm_b,
                  rnn_wih_f, rnn_whh_f, rnn_b_f,
                  rnn_wih_b, rnn_whh_b, rnn_b_b,
                  w1s, w1f, b1)

    def full_spec(a):
        return pl.BlockSpec(a.shape, lambda i, nd=a.ndim: (0,) * nd)

    pre_out_shapes = (jax.ShapeDtypeStruct((T, Bp, H), f32),       # lstm_out
                      jax.ShapeDtypeStruct((T, Bp, D), f32),       # s_proj
                      jax.ShapeDtypeStruct((T, Bp, D), f32),       # hp_f
                      jax.ShapeDtypeStruct((T, Bp, Dh), f32),      # h_f
                      jax.ShapeDtypeStruct((T, T, Bp, Dh), f32))   # hb_tri
    pre_out_specs = [pl.BlockSpec(s.shape, lambda i, nd=len(s.shape): (0,) * nd)
                     for s in pre_out_shapes]

    lstm_out, s_proj, hp_f, h_f, hb_tri = pl.pallas_call(
        _precompute_kernel,
        out_shape=pre_out_shapes,
        grid_spec=pltpu.PrefetchScalarGridSpec(
            num_scalar_prefetch=0,
            grid=(1,),
            in_specs=[full_spec(a) for a in pre_inputs],
            out_specs=pre_out_specs,
            scratch_shapes=[pltpu.VMEM((T, Bp, H), f32)]),   # inter-layer seq
        compiler_params=pltpu.CompilerParams(
            dimension_semantics=("arbitrary",),
            vmem_limit_bytes=32 * 1024 * 1024),
    )(*pre_inputs)

    # ------------- phase 2: per-query-block attention (parallel) ----------- #
    # QB = largest divisor of T that is <= T // 2: the grid keeps >= 2 steps
    # (shards across both v7x TensorCores) while amortizing per-grid-step
    # pipeline overhead and feeding the MXU QB*T*Bp rows per matmul.
    QB = 1
    for cand in range(1, max(T // 2, 1) + 1):
        if T % cand == 0:
            QB = cand

    attn_inputs = (lstm_out, s_proj, hp_f, h_f, hb_tri, w1b, w2, b2)
    attn_in_specs = [
        pl.BlockSpec((QB, Bp, H), lambda i: (i, 0, 0)),         # lstm_out rows
        pl.BlockSpec((QB, Bp, D), lambda i: (i, 0, 0)),         # s_proj rows
        pl.BlockSpec((T, Bp, D), lambda i: (0, 0, 0)),          # hp_f (const)
        pl.BlockSpec((T, Bp, Dh), lambda i: (0, 0, 0)),         # h_f (const)
        pl.BlockSpec((QB, T, Bp, Dh), lambda i: (i, 0, 0, 0)),  # hb_tri rows
        pl.BlockSpec((Dh, D), lambda i: (0, 0)),                # w1b (const)
        pl.BlockSpec((1, D), lambda i: (0, 0)),                 # w2 (const)
        pl.BlockSpec(memory_space=pltpu.MemorySpace.SMEM),      # b2 scalar
    ]

    out = pl.pallas_call(
        _attention_kernel,
        out_shape=jax.ShapeDtypeStruct((T, Bp, H), f32),
        grid_spec=pltpu.PrefetchScalarGridSpec(
            num_scalar_prefetch=0,
            grid=(T // QB,),
            in_specs=attn_in_specs,
            out_specs=pl.BlockSpec((QB, Bp, H), lambda i: (i, 0, 0))),
        compiler_params=pltpu.CompilerParams(
            dimension_semantics=("parallel",),
            vmem_limit_bytes=32 * 1024 * 1024),
    )(*attn_inputs)
    return out[:, :B, :]


# --------------------------------------------------------------------------- #
# Deterministic parameter initialization (shapes from the module __init__)
# --------------------------------------------------------------------------- #
def init_params(key, ninput, nhid, nlayers):
    D, H, L = ninput, nhid, nlayers
    Dh = D // 2
    keys = iter(jax.random.split(key, 32))
    orth = jax.nn.initializers.orthogonal()

    def u(k, shape, bound):
        return jax.random.uniform(k, shape, jnp.float32, -bound, bound)

    inv_h = 1.0 / np.sqrt(H)
    inv_dh = 1.0 / np.sqrt(Dh)
    inv_d = 1.0 / np.sqrt(D)

    lstm_w_ih = jnp.stack([orth(next(keys), (4 * H, D)) for _ in range(L)])
    lstm_w_hh = jnp.stack([orth(next(keys), (4 * H, H)) for _ in range(L)])
    lstm_b_ih = jnp.stack([u(next(keys), (4 * H,), inv_h) for _ in range(L)])
    lstm_b_hh = jnp.stack([u(next(keys), (4 * H,), inv_h) for _ in range(L)])

    rnn = {}
    for d in ("f", "b"):
        rnn[f"rnn_w_ih_{d}"] = u(next(keys), (Dh, D), inv_dh)
        rnn[f"rnn_w_hh_{d}"] = u(next(keys), (Dh, Dh), inv_dh)
        rnn[f"rnn_b_ih_{d}"] = u(next(keys), (Dh,), inv_dh)
        rnn[f"rnn_b_hh_{d}"] = u(next(keys), (Dh,), inv_dh)

    params = dict(
        lstm_w_ih=lstm_w_ih, lstm_w_hh=lstm_w_hh,
        lstm_b_ih=lstm_b_ih, lstm_b_hh=lstm_b_hh,
        lin1_w=u(next(keys), (D, 2 * D), 1.0 / np.sqrt(2 * D)),
        lin1_b=u(next(keys), (D,), 1.0 / np.sqrt(2 * D)),
        lin2_w=u(next(keys), (1, D), inv_d),
        lin2_b=u(next(keys), (1,), inv_d),
        **rnn,
    )
    return params


# --------------------------------------------------------------------------- #
# Pure-JAX reference (mirrors the PyTorch forward) for verification
# --------------------------------------------------------------------------- #
def reference(x, params):
    T, B, D = x.shape
    L = params["lstm_w_ih"].shape[0]
    H = params["lstm_w_hh"].shape[2]

    def lstm_layer(inp, w_ih, w_hh, b_ih, b_hh):
        def step(carry, x_t):
            h, c = carry
            g = x_t @ w_ih.T + h @ w_hh.T + b_ih + b_hh
            ig, fg, gg, og = jnp.split(g, 4, axis=-1)
            c = jax.nn.sigmoid(fg) * c + jax.nn.sigmoid(ig) * jnp.tanh(gg)
            h = jax.nn.sigmoid(og) * jnp.tanh(c)
            return (h, c), h
        init = (jnp.zeros((B, H), jnp.float32), jnp.zeros((B, H), jnp.float32))
        _, ys = lax.scan(step, init, inp)
        return ys

    out = x
    for l in range(L):
        out = lstm_layer(out, params["lstm_w_ih"][l], params["lstm_w_hh"][l],
                         params["lstm_b_ih"][l], params["lstm_b_hh"][l])

    def rnn_dir(inp, w_ih, w_hh, b_ih, b_hh, reverse):
        def step(h, x_t):
            h = jnp.tanh(x_t @ w_ih.T + h @ w_hh.T + b_ih + b_hh)
            return h, h
        seq = inp[::-1] if reverse else inp
        h0 = jnp.zeros((inp.shape[1], w_hh.shape[0]), jnp.float32)
        _, ys = lax.scan(step, h0, seq)
        return ys[::-1] if reverse else ys

    res = []
    for i in range(T):
        s = out[i]
        xp = x[:i + 1]
        hf = rnn_dir(xp, params["rnn_w_ih_f"], params["rnn_w_hh_f"],
                     params["rnn_b_ih_f"], params["rnn_b_hh_f"], False)
        hb = rnn_dir(xp, params["rnn_w_ih_b"], params["rnn_w_hh_b"],
                     params["rnn_b_ih_b"], params["rnn_b_hh_b"], True)
        h = jnp.concatenate([hf, hb], axis=-1)                     # (i+1, B, D)
        cat = jnp.concatenate(
            [jnp.broadcast_to(s, (i + 1, B, H)), h], axis=-1)      # (i+1, B, 2D)
        z = jnp.tanh(cat @ params["lin1_w"].T + params["lin1_b"])
        e = jnp.tanh(z @ params["lin2_w"].T + params["lin2_b"])    # (i+1, B, 1)
        alpha = jax.nn.softmax(e, axis=0)
        res.append((alpha * h).sum(0) + s)
    return jnp.stack(res, 0)


# --------------------------------------------------------------------------- #
if __name__ == "__main__":
    T, B = 8, 4
    ninput = nhid = 32
    nlayers = 2

    key = jax.random.PRNGKey(0)
    kx, kp = jax.random.split(key)
    x = jax.random.normal(kx, (T, B, ninput), jnp.float32)
    params = init_params(kp, ninput, nhid, nlayers)

    out = lstm_with_attention(x, params)
    out = jax.block_until_ready(out)

    assert out.shape == (T, B, nhid)
    assert bool(jnp.all(jnp.isfinite(out)))

    ref = reference(x, params)
    max_err = float(jnp.max(jnp.abs(out - ref)))
    assert max_err < 1e-3, f"mismatch vs reference: max abs err = {max_err}"

    print("KERNEL_OK")
</pallas_src>

<mosaic_0001>
module attributes {stable_mosaic.version = 11 : i64} {
  func.func @_precompute_kernel(%arg0: i32, %arg1: memref<64x32xf32, #tpu.memory_space<vmem>>, %arg2: memref<2x32x128xf32, #tpu.memory_space<vmem>>, %arg3: memref<2x32x128xf32, #tpu.memory_space<vmem>>, %arg4: memref<2x1x128xf32, #tpu.memory_space<vmem>>, %arg5: memref<32x16xf32, #tpu.memory_space<vmem>>, %arg6: memref<16x16xf32, #tpu.memory_space<vmem>>, %arg7: memref<1x16xf32, #tpu.memory_space<vmem>>, %arg8: memref<32x16xf32, #tpu.memory_space<vmem>>, %arg9: memref<16x16xf32, #tpu.memory_space<vmem>>, %arg10: memref<1x16xf32, #tpu.memory_space<vmem>>, %arg11: memref<32x32xf32, #tpu.memory_space<vmem>>, %arg12: memref<16x32xf32, #tpu.memory_space<vmem>>, %arg13: memref<1x32xf32, #tpu.memory_space<vmem>>, %arg14: memref<8x8x32xf32, #tpu.memory_space<vmem>>, %arg15: memref<8x8x32xf32, #tpu.memory_space<vmem>>, %arg16: memref<8x8x32xf32, #tpu.memory_space<vmem>>, %arg17: memref<8x8x16xf32, #tpu.memory_space<vmem>>, %arg18: memref<8x8x8x16xf32, #tpu.memory_space<vmem>>, %arg19: memref<8x8x32xf32, #tpu.memory_space<vmem>>) attributes {dimension_semantics = [#tpu.dimension_semantics<arbitrary>], iteration_bounds = array<i64: 1>, scalar_prefetch = 0 : i64, scratch_operands = 1 : i64, tpu.core_type = #tpu.core_type<tc>, window_params = [{pipeline_mode = #tpu.pipeline_mode<synchronous>, transform_indices = @transform_0, window_bounds = array<i64: 64, 32>}, {pipeline_mode = #tpu.pipeline_mode<synchronous>, transform_indices = @transform_1, window_bounds = array<i64: 2, 32, 128>}, {pipeline_mode = #tpu.pipeline_mode<synchronous>, transform_indices = @transform_2, window_bounds = array<i64: 2, 32, 128>}, {pipeline_mode = #tpu.pipeline_mode<synchronous>, transform_indices = @transform_3, window_bounds = array<i64: 2, 1, 128>}, {pipeline_mode = #tpu.pipeline_mode<synchronous>, transform_indices = @transform_4, window_bounds = array<i64: 32, 16>}, {pipeline_mode = #tpu.pipeline_mode<synchronous>, transform_indices = @transform_5, window_bounds = array<i64: 16, 16>}, {pipeline_mode = #tpu.pipeline_mode<synchronous>, transform_indices = @transform_6, window_bounds = array<i64: 1, 16>}, {pipeline_mode = #tpu.pipeline_mode<synchronous>, transform_indices = @transform_7, window_bounds = array<i64: 32, 16>}, {pipeline_mode = #tpu.pipeline_mode<synchronous>, transform_indices = @transform_8, window_bounds = array<i64: 16, 16>}, {pipeline_mode = #tpu.pipeline_mode<synchronous>, transform_indices = @transform_9, window_bounds = array<i64: 1, 16>}, {pipeline_mode = #tpu.pipeline_mode<synchronous>, transform_indices = @transform_10, window_bounds = array<i64: 32, 32>}, {pipeline_mode = #tpu.pipeline_mode<synchronous>, transform_indices = @transform_11, window_bounds = array<i64: 16, 32>}, {pipeline_mode = #tpu.pipeline_mode<synchronous>, transform_indices = @transform_12, window_bounds = array<i64: 1, 32>}, {pipeline_mode = #tpu.pipeline_mode<synchronous>, transform_indices = @transform_13, window_bounds = array<i64: 8, 8, 32>}, {pipeline_mode = #tpu.pipeline_mode<synchronous>, transform_indices = @transform_14, window_bounds = array<i64: 8, 8, 32>}, {pipeline_mode = #tpu.pipeline_mode<synchronous>, transform_indices = @transform_15, window_bounds = array<i64: 8, 8, 32>}, {pipeline_mode = #tpu.pipeline_mode<synchronous>, transform_indices = @transform_16, window_bounds = array<i64: 8, 8, 16>}, {pipeline_mode = #tpu.pipeline_mode<synchronous>, transform_indices = @transform_17, window_bounds = array<i64: 8, 8, 8, 16>}]} {
    %c0 = arith.constant 0 : index
    %c0_0 = arith.constant 0 : index
    %0 = vector.load %arg1[%c0, %c0_0] : memref<64x32xf32, #tpu.memory_space<vmem>>, vector<64x32xf32>
    %c0_1 = arith.constant 0 : index
    %c0_2 = arith.constant 0 : index
    %c0_3 = arith.constant 0 : index
    %1 = vector.load %arg2[%c0_1, %c0_2, %c0_3] : memref<2x32x128xf32, #tpu.memory_space<vmem>>, vector<1x32x128xf32>
    %2 = vector.shape_cast %1 : vector<1x32x128xf32> to vector<32x128xf32>
    %cst = arith.constant dense<0.000000e+00> : vector<64x128xf32>
    %3 = tpu.matmul %0, %2, %cst {dimension_numbers = #tpu.dot_dimension_numbers<[1], [0], [0], [1], [0, 0, 1, 1], [], []>} : vector<64x32xf32>, vector<32x128xf32>, vector<64x128xf32> -> vector<64x128xf32>
    %c0_4 = arith.constant 0 : index
    %c0_5 = arith.constant 0 : index
    %c0_6 = arith.constant 0 : index
    %4 = vector.load %arg4[%c0_4, %c0_5, %c0_6] : memref<2x1x128xf32, #tpu.memory_space<vmem>>, vector<1x1x128xf32>
    %5 = vector.shape_cast %4 : vector<1x1x128xf32> to vector<1x128xf32>
    %6 = vector.broadcast %5 : vector<1x128xf32> to vector<64x128xf32>
    %7 = arith.addf %3, %6 : vector<64x128xf32>
    %c0_7 = arith.constant 0 : index
    %c0_8 = arith.constant 0 : index
    %c0_9 = arith.constant 0 : index
    %8 = vector.load %arg3[%c0_7, %c0_8, %c0_9] : memref<2x32x128xf32, #tpu.memory_space<vmem>>, vector<1x32x128xf32>
    %9 = vector.shape_cast %8 : vector<1x32x128xf32> to vector<32x128xf32>
    %cst_10 = arith.constant 0.000000e+00 : f32
    %10 = vector.broadcast %cst_10 : f32 to vector<8x32xf32>
    %cst_11 = arith.constant 0.000000e+00 : f32
    %11 = vector.broadcast %cst_11 : f32 to vector<8x32xf32>
    %12 = vector.extract_strided_slice %7 {offsets = [0, 0], sizes = [8, 128], strides = [1, 1]} : vector<64x128xf32> to vector<8x128xf32>
    %cst_12 = arith.constant dense<0.000000e+00> : vector<8x128xf32>
    %13 = tpu.matmul %10, %9, %cst_12 {dimension_numbers = #tpu.dot_dimension_numbers<[1], [0], [0], [1], [0, 0, 1, 1], [], []>} : vector<8x32xf32>, vector<32x128xf32>, vector<8x128xf32> -> vector<8x128xf32>
    %14 = arith.addf %12, %13 : vector<8x128xf32>
    %15 = vector.extract_strided_slice %14 {offsets = [0, 0], sizes = [8, 96], strides = [1, 1]} : vector<8x128xf32> to vector<8x96xf32>
    %16 = arith.negf %15 : vector<8x96xf32>
    %17 = math.exp %16 : vector<8x96xf32>
    %cst_13 = arith.constant 1.000000e+00 : f32
    %18 = vector.broadcast %cst_13 : f32 to vector<8x96xf32>
    %19 = arith.addf %18, %17 : vector<8x96xf32>
    %20 = arith.divf %18, %19 : vector<8x96xf32>
    %21 = vector.extract_strided_slice %14 {offsets = [0, 96], sizes = [8, 32], strides = [1, 1]} : vector<8x128xf32> to vector<8x32xf32>
    %22 = math.tanh %21 : vector<8x32xf32>
    %23 = vector.extract_strided_slice %20 {offsets = [0, 32], sizes = [8, 32], strides = [1, 1]} : vector<8x96xf32> to vector<8x32xf32>
    %24 = arith.mulf %23, %11 : vector<8x32xf32>
    %25 = vector.extract_strided_slice %20 {offsets = [0, 0], sizes = [8, 32], strides = [1, 1]} : vector<8x96xf32> to vector<8x32xf32>
    %26 = arith.mulf %25, %22 : vector<8x32xf32>
    %27 = arith.addf %24, %26 : vector<8x32xf32>
    %28 = vector.extract_strided_slice %20 {offsets = [0, 64], sizes = [8, 32], strides = [1, 1]} : vector<8x96xf32> to vector<8x32xf32>
    %29 = math.tanh %27 : vector<8x32xf32>
    %30 = arith.mulf %28, %29 : vector<8x32xf32>
    %c0_14 = arith.constant 0 : index
    %c0_15 = arith.constant 0 : index
    %c0_16 = arith.constant 0 : index
    %31 = vector.load %arg19[%c0_14, %c0_15, %c0_16] : memref<8x8x32xf32, #tpu.memory_space<vmem>>, vector<1x8x32xf32>
    %32 = vector.shape_cast %31 : vector<1x8x32xf32> to vector<8x32xf32>
    %33 = vector.shape_cast %30 : vector<8x32xf32> to vector<1x8x32xf32>
    tpu.vector_store %arg19[%c0_14, %c0_15, %c0_16], %33 {strides = array<i32>} : memref<8x8x32xf32, #tpu.memory_space<vmem>>, vector<1x8x32xf32>,
    %34 = vector.extract_strided_slice %7 {offsets = [8, 0], sizes = [8, 128], strides = [1, 1]} : vector<64x128xf32> to vector<8x128xf32>
    %cst_17 = arith.constant dense<0.000000e+00> : vector<8x128xf32>
    %35 = tpu.matmul %30, %9, %cst_17 {dimension_numbers = #tpu.dot_dimension_numbers<[1], [0], [0], [1], [0, 0, 1, 1], [], []>} : vector<8x32xf32>, vector<32x128xf32>, vector<8x128xf32> -> vector<8x128xf32>
    %36 = arith.addf %34, %35 : vector<8x128xf32>
    %37 = vector.extract_strided_slice %36 {offsets = [0, 0], sizes = [8, 96], strides = [1, 1]} : vector<8x128xf32> to vector<8x96xf32>
    %38 = arith.negf %37 : vector<8x96xf32>
    %39 = math.exp %38 : vector<8x96xf32>
    %cst_18 = arith.constant 1.000000e+00 : f32
    %40 = vector.broadcast %cst_18 : f32 to vector<8x96xf32>
    %41 = arith.addf %40, %39 : vector<8x96xf32>
    %42 = arith.divf %40, %41 : vector<8x96xf32>
    %43 = vector.extract_strided_slice %36 {offsets = [0, 96], sizes = [8, 32], strides = [1, 1]} : vector<8x128xf32> to vector<8x32xf32>
    %44 = math.tanh %43 : vector<8x32xf32>
    %45 = vector.extract_strided_slice %42 {offsets = [0, 32], sizes = [8, 32], strides = [1, 1]} : vector<8x96xf32> to vector<8x32xf32>
    %46 = arith.mulf %45, %27 : vector<8x32xf32>
    %47 = vector.extract_strided_slice %42 {offsets = [0, 0], sizes = [8, 32], strides = [1, 1]} : vector<8x96xf32> to vector<8x32xf32>
    %48 = arith.mulf %47, %44 : vector<8x32xf32>
    %49 = arith.addf %46, %48 : vector<8x32xf32>
    %50 = vector.extract_strided_slice %42 {offsets = [0, 64], sizes = [8, 32], strides = [1, 1]} : vector<8x96xf32> to vector<8x32xf32>
    %51 = math.tanh %49 : vector<8x32xf32>
    %52 = arith.mulf %50, %51 : vector<8x32xf32>
    %c1 = arith.constant 1 : index
    %c0_19 = arith.constant 0 : index
    %c0_20 = arith.constant 0 : index
    %53 = vector.load %arg19[%c1, %c0_19, %c0_20] : memref<8x8x32xf32, #tpu.memory_space<vmem>>, vector<1x8x32xf32>
    %54 = vector.shape_cast %53 : vector<1x8x32xf32> to vector<8x32xf32>
    %55 = vector.shape_cast %52 : vector<8x32xf32> to vector<1x8x32xf32>
    tpu.vector_store %arg19[%c1, %c0_19, %c0_20], %55 {strides = array<i32>} : memref<8x8x32xf32, #tpu.memory_space<vmem>>, vector<1x8x32xf32>,
    %56 = vector.extract_strided_slice %7 {offsets = [16, 0], sizes = [8, 128], strides = [1, 1]} : vector<64x128xf32> to vector<8x128xf32>
    %cst_21 = arith.constant dense<0.000000e+00> : vector<8x128xf32>
    %57 = tpu.matmul %52, %9, %cst_21 {dimension_numbers = #tpu.dot_dimension_numbers<[1], [0], [0], [1], [0, 0, 1, 1], [], []>} : vector<8x32xf32>, vector<32x128xf32>, vector<8x128xf32> -> vector<8x128xf32>
    %58 = arith.addf %56, %57 : vector<8x128xf32>
    %59 = vector.extract_strided_slice %58 {offsets = [0, 0], sizes = [8, 96], strides = [1, 1]} : vector<8x128xf32> to vector<8x96xf32>
    %60 = arith.negf %59 : vector<8x96xf32>
    %61 = math.exp %60 : vector<8x96xf32>
    %cst_22 = arith.constant 1.000000e+00 : f32
    %62 = vector.broadcast %cst_22 : f32 to vector<8x96xf32>
    %63 = arith.addf %62, %61 : vector<8x96xf32>
    %64 = arith.divf %62, %63 : vector<8x96xf32>
    %65 = vector.extract_strided_slice %58 {offsets = [0, 96], sizes = [8, 32], strides = [1, 1]} : vector<8x128xf32> to vector<8x32xf32>
    %66 = math.tanh %65 : vector<8x32xf32>
    %67 = vector.extract_strided_slice %64 {offsets = [0, 32], sizes = [8, 32], strides = [1, 1]} : vector<8x96xf32> to vector<8x32xf32>
    %68 = arith.mulf %67, %49 : vector<8x32xf32>
    %69 = vector.extract_strided_slice %64 {offsets = [0, 0], sizes = [8, 32], strides = [1, 1]} : vector<8x96xf32> to vector<8x32xf32>
    %70 = arith.mulf %69, %66 : vector<8x32xf32>
    %71 = arith.addf %68, %70 : vector<8x32xf32>
    %72 = vector.extract_strided_slice %64 {offsets = [0, 64], sizes = [8, 32], strides = [1, 1]} : vector<8x96xf32> to vector<8x32xf32>
    %73 = math.tanh %71 : vector<8x32xf32>
    %74 = arith.mulf %72, %73 : vector<8x32xf32>
    %c2 = arith.constant 2 : index
    %c0_23 = arith.constant 0 : index
    %c0_24 = arith.constant 0 : index
    %75 = vector.load %arg19[%c2, %c0_23, %c0_24] : memref<8x8x32xf32, #tpu.memory_space<vmem>>, vector<1x8x32xf32>
    %76 = vector.shape_cast %75 : vector<1x8x32xf32> to vector<8x32xf32>
    %77 = vector.shape_cast %74 : vector<8x32xf32> to vector<1x8x32xf32>
    tpu.vector_store %arg19[%c2, %c0_23, %c0_24], %77 {strides = array<i32>} : memref<8x8x32xf32, #tpu.memory_space<vmem>>, vector<1x8x32xf32>,
    %78 = vector.extract_strided_slice %7 {offsets = [24, 0], sizes = [8, 128], strides = [1, 1]} : vector<64x128xf32> to vector<8x128xf32>
    %cst_25 = arith.constant dense<0.000000e+00> : vector<8x128xf32>
    %79 = tpu.matmul %74, %9, %cst_25 {dimension_numbers = #tpu.dot_dimension_numbers<[1], [0], [0], [1], [0, 0, 1, 1], [], []>} : vector<8x32xf32>, vector<32x128xf32>, vector<8x128xf32> -> vector<8x128xf32>
    %80 = arith.addf %78, %79 : vector<8x128xf32>
    %81 = vector.extract_strided_slice %80 {offsets = [0, 0], sizes = [8, 96], strides = [1, 1]} : vector<8x128xf32> to vector<8x96xf32>
    %82 = arith.negf %81 : vector<8x96xf32>
    %83 = math.exp %82 : vector<8x96xf32>
    %cst_26 = arith.constant 1.000000e+00 : f32
    %84 = vector.broadcast %cst_26 : f32 to vector<8x96xf32>
    %85 = arith.addf %84, %83 : vector<8x96xf32>
    %86 = arith.divf %84, %85 : vector<8x96xf32>
    %87 = vector.extract_strided_slice %80 {offsets = [0, 96], sizes = [8, 32], strides = [1, 1]} : vector<8x128xf32> to vector<8x32xf32>
    %88 = math.tanh %87 : vector<8x32xf32>
    %89 = vector.extract_strided_slice %86 {offsets = [0, 32], sizes = [8, 32], strides = [1, 1]} : vector<8x96xf32> to vector<8x32xf32>
    %90 = arith.mulf %89, %71 : vector<8x32xf32>
    %91 = vector.extract_strided_slice %86 {offsets = [0, 0], sizes = [8, 32], strides = [1, 1]} : vector<8x96xf32> to vector<8x32xf32>
    %92 = arith.mulf %91, %88 : vector<8x32xf32>
    %93 = arith.addf %90, %92 : vector<8x32xf32>
    %94 = vector.extract_strided_slice %86 {offsets = [0, 64], sizes = [8, 32], strides = [1, 1]} : vector<8x96xf32> to vector<8x32xf32>
    %95 = math.tanh %93 : vector<8x32xf32>
    %96 = arith.mulf %94, %95 : vector<8x32xf32>
    %c3 = arith.constant 3 : index
    %c0_27 = arith.constant 0 : index
    %c0_28 = arith.constant 0 : index
    %97 = vector.load %arg19[%c3, %c0_27, %c0_28] : memref<8x8x32xf32, #tpu.memory_space<vmem>>, vector<1x8x32xf32>
    %98 = vector.shape_cast %97 : vector<1x8x32xf32> to vector<8x32xf32>
    %99 = vector.shape_cast %96 : vector<8x32xf32> to vector<1x8x32xf32>
    tpu.vector_store %arg19[%c3, %c0_27, %c0_28], %99 {strides = array<i32>} : memref<8x8x32xf32, #tpu.memory_space<vmem>>, vector<1x8x32xf32>,
    %100 = vector.extract_strided_slice %7 {offsets = [32, 0], sizes = [8, 128], strides = [1, 1]} : vector<64x128xf32> to vector<8x128xf32>
    %cst_29 = arith.constant dense<0.000000e+00> : vector<8x128xf32>
    %101 = tpu.matmul %96, %9, %cst_29 {dimension_numbers = #tpu.dot_dimension_numbers<[1], [0], [0], [1], [0, 0, 1, 1], [], []>} : vector<8x32xf32>, vector<32x128xf32>, vector<8x128xf32> -> vector<8x128xf32>
    %102 = arith.addf %100, %101 : vector<8x128xf32>
    %103 = vector.extract_strided_slice %102 {offsets = [0, 0], sizes = [8, 96], strides = [1, 1]} : vector<8x128xf32> to vector<8x96xf32>
    %104 = arith.negf %103 : vector<8x96xf32>
    %105 = math.exp %104 : vector<8x96xf32>
    %cst_30 = arith.constant 1.000000e+00 : f32
    %106 = vector.broadcast %cst_30 : f32 to vector<8x96xf32>
    %107 = arith.addf %106, %105 : vector<8x96xf32>
    %108 = arith.divf %106, %107 : vector<8x96xf32>
    %109 = vector.extract_strided_slice %102 {offsets = [0, 96], sizes = [8, 32], strides = [1, 1]} : vector<8x128xf32> to vector<8x32xf32>
    %110 = math.tanh %109 : vector<8x32xf32>
    %111 = vector.extract_strided_slice %108 {offsets = [0, 32], sizes = [8, 32], strides = [1, 1]} : vector<8x96xf32> to vector<8x32xf32>
    %112 = arith.mulf %111, %93 : vector<8x32xf32>
    %113 = vector.extract_strided_slice %108 {offsets = [0, 0], sizes = [8, 32], strides = [1, 1]} : vector<8x96xf32> to vector<8x32xf32>
    %114 = arith.mulf %113, %110 : vector<8x32xf32>
    %115 = arith.addf %112, %114 : vector<8x32xf32>
    %116 = vector.extract_strided_slice %108 {offsets = [0, 64], sizes = [8, 32], strides = [1, 1]} : vector<8x96xf32> to vector<8x32xf32>
    %117 = math.tanh %115 : vector<8x32xf32>
    %118 = arith.mulf %116, %117 : vector<8x32xf32>
    %c4 = arith.constant 4 : index
    %c0_31 = arith.constant 0 : index
    %c0_32 = arith.constant 0 : index
    %119 = vector.load %arg19[%c4, %c0_31, %c0_32] : memref<8x8x32xf32, #tpu.memory_space<vmem>>, vector<1x8x32xf32>
    %120 = vector.shape_cast %119 : vector<1x8x32xf32> to vector<8x32xf32>
    %121 = vector.shape_cast %118 : vector<8x32xf32> to vector<1x8x32xf32>
    tpu.vector_store %arg19[%c4, %c0_31, %c0_32], %121 {strides = array<i32>} : memref<8x8x32xf32, #tpu.memory_space<vmem>>, vector<1x8x32xf32>,
    %122 = vector.extract_strided_slice %7 {offsets = [40, 0], sizes = [8, 128], strides = [1, 1]} : vector<64x128xf32> to vector<8x128xf32>
    %cst_33 = arith.constant dense<0.000000e+00> : vector<8x128xf32>
    %123 = tpu.matmul %118, %9, %cst_33 {dimension_numbers = #tpu.dot_dimension_numbers<[1], [0], [0], [1], [0, 0, 1, 1], [], []>} : vector<8x32xf32>, vector<32x128xf32>, vector<8x128xf32> -> vector<8x128xf32>
    %124 = arith.addf %122, %123 : vector<8x128xf32>
    %125 = vector.extract_strided_slice %124 {offsets = [0, 0], sizes = [8, 96], strides = [1, 1]} : vector<8x128xf32> to vector<8x96xf32>
    %126 = arith.negf %125 : vector<8x96xf32>
    %127 = math.exp %126 : vector<8x96xf32>
    %cst_34 = arith.constant 1.000000e+00 : f32
    %128 = vector.broadcast %cst_34 : f32 to vector<8x96xf32>
    %129 = arith.addf %128, %127 : vector<8x96xf32>
    %130 = arith.divf %128, %129 : vector<8x96xf32>
    %131 = vector.extract_strided_slice %124 {offsets = [0, 96], sizes = [8, 32], strides = [1, 1]} : vector<8x128xf32> to vector<8x32xf32>
    %132 = math.tanh %131 : vector<8x32xf32>
    %133 = vector.extract_strided_slice %130 {offsets = [0, 32], sizes = [8, 32], strides = [1, 1]} : vector<8x96xf32> to vector<8x32xf32>
    %134 = arith.mulf %133, %115 : vector<8x32xf32>
    %135 = vector.extract_strided_slice %130 {offsets = [0, 0], sizes = [8, 32], strides = [1, 1]} : vector<8x96xf32> to vector<8x32xf32>
    %136 = arith.mulf %135, %132 : vector<8x32xf32>
    %137 = arith.addf %134, %136 : vector<8x32xf32>
    %138 = vector.extract_strided_slice %130 {offsets = [0, 64], sizes = [8, 32], strides = [1, 1]} : vector<8x96xf32> to vector<8x32xf32>
    %139 = math.tanh %137 : vector<8x32xf32>
    %140 = arith.mulf %138, %139 : vector<8x32xf32>
    %c5 = arith.constant 5 : index
    %c0_35 = arith.constant 0 : index
    %c0_36 = arith.constant 0 : index
    %141 = vector.load %arg19[%c5, %c0_35, %c0_36] : memref<8x8x32xf32, #tpu.memory_space<vmem>>, vector<1x8x32xf32>
    %142 = vector.shape_cast %141 : vector<1x8x32xf32> to vector<8x32xf32>
    %143 = vector.shape_cast %140 : vector<8x32xf32> to vector<1x8x32xf32>
    tpu.vector_store %arg19[%c5, %c0_35, %c0_36], %143 {strides = array<i32>} : memref<8x8x32xf32, #tpu.memory_space<vmem>>, vector<1x8x32xf32>,
    %144 = vector.extract_strided_slice %7 {offsets = [48, 0], sizes = [8, 128], strides = [1, 1]} : vector<64x128xf32> to vector<8x128xf32>
    %cst_37 = arith.constant dense<0.000000e+00> : vector<8x128xf32>
    %145 = tpu.matmul %140, %9, %cst_37 {dimension_numbers = #tpu.dot_dimension_numbers<[1], [0], [0], [1], [0, 0, 1, 1], [], []>} : vector<8x32xf32>, vector<32x128xf32>, vector<8x128xf32> -> vector<8x128xf32>
    %146 = arith.addf %144, %145 : vector<8x128xf32>
    %147 = vector.extract_strided_slice %146 {offsets = [0, 0], sizes = [8, 96], strides = [1, 1]} : vector<8x128xf32> to vector<8x96xf32>
    %148 = arith.negf %147 : vector<8x96xf32>
    %149 = math.exp %148 : vector<8x96xf32>
    %cst_38 = arith.constant 1.000000e+00 : f32
    %150 = vector.broadcast %cst_38 : f32 to vector<8x96xf32>
    %151 = arith.addf %150, %149 : vector<8x96xf32>
    %152 = arith.divf %150, %151 : vector<8x96xf32>
    %153 = vector.extract_strided_slice %146 {offsets = [0, 96], sizes = [8, 32], strides = [1, 1]} : vector<8x128xf32> to vector<8x32xf32>
    %154 = math.tanh %153 : vector<8x32xf32>
    %155 = vector.extract_strided_slice %152 {offsets = [0, 32], sizes = [8, 32], strides = [1, 1]} : vector<8x96xf32> to vector<8x32xf32>
    %156 = arith.mulf %155, %137 : vector<8x32xf32>
    %157 = vector.extract_strided_slice %152 {offsets = [0, 0], sizes = [8, 32], strides = [1, 1]} : vector<8x96xf32> to vector<8x32xf32>
    %158 = arith.mulf %157, %154 : vector<8x32xf32>
    %159 = arith.addf %156, %158 : vector<8x32xf32>
    %160 = vector.extract_strided_slice %152 {offsets = [0, 64], sizes = [8, 32], strides = [1, 1]} : vector<8x96xf32> to vector<8x32xf32>
    %161 = math.tanh %159 : vector<8x32xf32>
    %162 = arith.mulf %160, %161 : vector<8x32xf32>
    %c6 = arith.constant 6 : index
    %c0_39 = arith.constant 0 : index
    %c0_40 = arith.constant 0 : index
    %163 = vector.load %arg19[%c6, %c0_39, %c0_40] : memref<8x8x32xf32, #tpu.memory_space<vmem>>, vector<1x8x32xf32>
    %164 = vector.shape_cast %163 : vector<1x8x32xf32> to vector<8x32xf32>
    %165 = vector.shape_cast %162 : vector<8x32xf32> to vector<1x8x32xf32>
    tpu.vector_store %arg19[%c6, %c0_39, %c0_40], %165 {strides = array<i32>} : memref<8x8x32xf32, #tpu.memory_space<vmem>>, vector<1x8x32xf32>,
    %166 = vector.extract_strided_slice %7 {offsets = [56, 0], sizes = [8, 128], strides = [1, 1]} : vector<64x128xf32> to vector<8x128xf32>
    %cst_41 = arith.constant dense<0.000000e+00> : vector<8x128xf32>
    %167 = tpu.matmul %162, %9, %cst_41 {dimension_numbers = #tpu.dot_dimension_numbers<[1], [0], [0], [1], [0, 0, 1, 1], [], []>} : vector<8x32xf32>, vector<32x128xf32>, vector<8x128xf32> -> vector<8x128xf32>
    %168 = arith.addf %166, %167 : vector<8x128xf32>
    %169 = vector.extract_strided_slice %168 {offsets = [0, 0], sizes = [8, 96], strides = [1, 1]} : vector<8x128xf32> to vector<8x96xf32>
    %170 = arith.negf %169 : vector<8x96xf32>
    %171 = math.exp %170 : vector<8x96xf32>
    %cst_42 = arith.constant 1.000000e+00 : f32
    %172 = vector.broadcast %cst_42 : f32 to vector<8x96xf32>
    %173 = arith.addf %172, %171 : vector<8x96xf32>
    %174 = arith.divf %172, %173 : vector<8x96xf32>
    %175 = vector.extract_strided_slice %168 {offsets = [0, 96], sizes = [8, 32], strides = [1, 1]} : vector<8x128xf32> to vector<8x32xf32>
    %176 = math.tanh %175 : vector<8x32xf32>
    %177 = vector.extract_strided_slice %174 {offsets = [0, 32], sizes = [8, 32], strides = [1, 1]} : vector<8x96xf32> to vector<8x32xf32>
    %178 = arith.mulf %177, %159 : vector<8x32xf32>
    %179 = vector.extract_strided_slice %174 {offsets = [0, 0], sizes = [8, 32], strides = [1, 1]} : vector<8x96xf32> to vector<8x32xf32>
    %180 = arith.mulf %179, %176 : vector<8x32xf32>
    %181 = arith.addf %178, %180 : vector<8x32xf32>
    %182 = vector.extract_strided_slice %174 {offsets = [0, 64], sizes = [8, 32], strides = [1, 1]} : vector<8x96xf32> to vector<8x32xf32>
    %183 = math.tanh %181 : vector<8x32xf32>
    %184 = arith.mulf %182, %183 : vector<8x32xf32>
    %c7 = arith.constant 7 : index
    %c0_43 = arith.constant 0 : index
    %c0_44 = arith.constant 0 : index
    %185 = vector.load %arg19[%c7, %c0_43, %c0_44] : memref<8x8x32xf32, #tpu.memory_space<vmem>>, vector<1x8x32xf32>
    %186 = vector.shape_cast %185 : vector<1x8x32xf32> to vector<8x32xf32>
    %187 = vector.shape_cast %184 : vector<8x32xf32> to vector<1x8x32xf32>
    tpu.vector_store %arg19[%c7, %c0_43, %c0_44], %187 {strides = array<i32>} : memref<8x8x32xf32, #tpu.memory_space<vmem>>, vector<1x8x32xf32>,
    %c0_45 = arith.constant 0 : index
    %c0_46 = arith.constant 0 : index
    %c0_47 = arith.constant 0 : index
    %188 = vector.load %arg19[%c0_45, %c0_46, %c0_47] : memref<8x8x32xf32, #tpu.memory_space<vmem>>, vector<8x8x32xf32>
    %189 = vector.shape_cast %188 : vector<8x8x32xf32> to vector<64x32xf32>
    %c1_48 = arith.constant 1 : index
    %c0_49 = arith.constant 0 : index
    %c0_50 = arith.constant 0 : index
    %190 = vector.load %arg2[%c1_48, %c0_49, %c0_50] : memref<2x32x128xf32, #tpu.memory_space<vmem>>, vector<1x32x128xf32>
    %191 = vector.shape_cast %190 : vector<1x32x128xf32> to vector<32x128xf32>
    %cst_51 = arith.constant dense<0.000000e+00> : vector<64x128xf32>
    %192 = tpu.matmul %189, %191, %cst_51 {dimension_numbers = #tpu.dot_dimension_numbers<[1], [0], [0], [1], [0, 0, 1, 1], [], []>} : vector<64x32xf32>, vector<32x128xf32>, vector<64x128xf32> -> vector<64x128xf32>
    %c1_52 = arith.constant 1 : index
    %c0_53 = arith.constant 0 : index
    %c0_54 = arith.constant 0 : index
    %193 = vector.load %arg4[%c1_52, %c0_53, %c0_54] : memref<2x1x128xf32, #tpu.memory_space<vmem>>, vector<1x1x128xf32>
    %194 = vector.shape_cast %193 : vector<1x1x128xf32> to vector<1x128xf32>
    %195 = vector.broadcast %194 : vector<1x128xf32> to vector<64x128xf32>
    %196 = arith.addf %192, %195 : vector<64x128xf32>
    %c1_55 = arith.constant 1 : index
    %c0_56 = arith.constant 0 : index
    %c0_57 = arith.constant 0 : index
    %197 = vector.load %arg3[%c1_55, %c0_56, %c0_57] : memref<2x32x128xf32, #tpu.memory_space<vmem>>, vector<1x32x128xf32>
    %198 = vector.shape_cast %197 : vector<1x32x128xf32> to vector<32x128xf32>
    %cst_58 = arith.constant 0.000000e+00 : f32
    %199 = vector.broadcast %cst_58 : f32 to vector<8x32xf32>
    %cst_59 = arith.constant 0.000000e+00 : f32
    %200 = vector.broadcast %cst_59 : f32 to vector<8x32xf32>
    %201 = vector.extract_strided_slice %196 {offsets = [0, 0], sizes = [8, 128], strides = [1, 1]} : vector<64x128xf32> to vector<8x128xf32>
    %cst_60 = arith.constant dense<0.000000e+00> : vector<8x128xf32>
    %202 = tpu.matmul %199, %198, %cst_60 {dimension_numbers = #tpu.dot_dimension_numbers<[1], [0], [0], [1], [0, 0, 1, 1], [], []>} : vector<8x32xf32>, vector<32x128xf32>, vector<8x128xf32> -> vector<8x128xf32>
    %203 = arith.addf %201, %202 : vector<8x128xf32>
    %204 = vector.extract_strided_slice %203 {offsets = [0, 0], sizes = [8, 96], strides = [1, 1]} : vector<8x128xf32> to vector<8x96xf32>
    %205 = arith.negf %204 : vector<8x96xf32>
    %206 = math.exp %205 : vector<8x96xf32>
    %cst_61 = arith.constant 1.000000e+00 : f32
    %207 = vector.broadcast %cst_61 : f32 to vector<8x96xf32>
    %208 = arith.addf %207, %206 : vector<8x96xf32>
    %209 = arith.divf %207, %208 : vector<8x96xf32>
    %210 = vector.extract_strided_slice %203 {offsets = [0, 96], sizes = [8, 32], strides = [1, 1]} : vector<8x128xf32> to vector<8x32xf32>
    %211 = math.tanh %210 : vector<8x32xf32>
    %212 = vector.extract_strided_slice %209 {offsets = [0, 32], sizes = [8, 32], strides = [1, 1]} : vector<8x96xf32> to vector<8x32xf32>
    %213 = arith.mulf %212, %200 : vector<8x32xf32>
    %214 = vector.extract_strided_slice %209 {offsets = [0, 0], sizes = [8, 32], strides = [1, 1]} : vector<8x96xf32> to vector<8x32xf32>
    %215 = arith.mulf %214, %211 : vector<8x32xf32>
    %216 = arith.addf %213, %215 : vector<8x32xf32>
    %217 = vector.extract_strided_slice %209 {offsets = [0, 64], sizes = [8, 32], strides = [1, 1]} : vector<8x96xf32> to vector<8x32xf32>
    %218 = math.tanh %216 : vector<8x32xf32>
    %219 = arith.mulf %217, %218 : vector<8x32xf32>
    %c0_62 = arith.constant 0 : index
    %c0_63 = arith.constant 0 : index
    %c0_64 = arith.constant 0 : index
    %220 = vector.load %arg14[%c0_62, %c0_63, %c0_64] : memref<8x8x32xf32, #tpu.memory_space<vmem>>, vector<1x8x32xf32>
    %221 = vector.shape_cast %220 : vector<1x8x32xf32> to vector<8x32xf32>
    %222 = vector.shape_cast %219 : vector<8x32xf32> to vector<1x8x32xf32>
    tpu.vector_store %arg14[%c0_62, %c0_63, %c0_64], %222 {strides = array<i32>} : memref<8x8x32xf32, #tpu.memory_space<vmem>>, vector<1x8x32xf32>,
    %223 = vector.extract_strided_slice %196 {offsets = [8, 0], sizes = [8, 128], strides = [1, 1]} : vector<64x128xf32> to vector<8x128xf32>
    %cst_65 = arith.constant dense<0.000000e+00> : vector<8x128xf32>
    %224 = tpu.matmul %219, %198, %cst_65 {dimension_numbers = #tpu.dot_dimension_numbers<[1], [0], [0], [1], [0, 0, 1, 1], [], []>} : vector<8x32xf32>, vector<32x128xf32>, vector<8x128xf32> -> vector<8x128xf32>
    %225 = arith.addf %223, %224 : vector<8x128xf32>
    %226 = vector.extract_strided_slice %225 {offsets = [0, 0], sizes = [8, 96], strides = [1, 1]} : vector<8x128xf32> to vector<8x96xf32>
    %227 = arith.negf %226 : vector<8x96xf32>
    %228 = math.exp %227 : vector<8x96xf32>
    %cst_66 = arith.constant 1.000000e+00 : f32
    %229 = vector.broadcast %cst_66 : f32 to vector<8x96xf32>
    %230 = arith.addf %229, %228 : vector<8x96xf32>
    %231 = arith.divf %229, %230 : vector<8x96xf32>
    %232 = vector.extract_strided_slice %225 {offsets = [0, 96], sizes = [8, 32], strides = [1, 1]} : vector<8x128xf32> to vector<8x32xf32>
    %233 = math.tanh %232 : vector<8x32xf32>
    %234 = vector.extract_strided_slice %231 {offsets = [0, 32], sizes = [8, 32], strides = [1, 1]} : vector<8x96xf32> to vector<8x32xf32>
    %235 = arith.mulf %234, %216 : vector<8x32xf32>
    %236 = vector.extract_strided_slice %231 {offsets = [0, 0], sizes = [8, 32], strides = [1, 1]} : vector<8x96xf32> to vector<8x32xf32>
    %237 = arith.mulf %236, %233 : vector<8x32xf32>
    %238 = arith.addf %235, %237 : vector<8x32xf32>
    %239 = vector.extract_strided_slice %231 {offsets = [0, 64], sizes = [8, 32], strides = [1, 1]} : vector<8x96xf32> to vector<8x32xf32>
    %240 = math.tanh %238 : vector<8x32xf32>
    %241 = arith.mulf %239, %240 : vector<8x32xf32>
    %c1_67 = arith.constant 1 : index
    %c0_68 = arith.constant 0 : index
    %c0_69 = arith.constant 0 : index
    %242 = vector.load %arg14[%c1_67, %c0_68, %c0_69] : memref<8x8x32xf32, #tpu.memory_space<vmem>>, vector<1x8x32xf32>
    %243 = vector.shape_cast %242 : vector<1x8x32xf32> to vector<8x32xf32>
    %244 = vector.shape_cast %241 : vector<8x32xf32> to vector<1x8x32xf32>
    tpu.vector_store %arg14[%c1_67, %c0_68, %c0_69], %244 {strides = array<i32>} : memref<8x8x32xf32, #tpu.memory_space<vmem>>, vector<1x8x32xf32>,
    %245 = vector.extract_strided_slice %196 {offsets = [16, 0], sizes = [8, 128], strides = [1, 1]} : vector<64x128xf32> to vector<8x128xf32>
    %cst_70 = arith.constant dense<0.000000e+00> : vector<8x128xf32>
    %246 = tpu.matmul %241, %198, %cst_70 {dimension_numbers = #tpu.dot_dimension_numbers<[1], [0], [0], [1], [0, 0, 1, 1], [], []>} : vector<8x32xf32>, vector<32x128xf32>, vector<8x128xf32> -> vector<8x128xf32>
    %247 = arith.addf %245, %246 : vector<8x128xf32>
    %248 = vector.extract_strided_slice %247 {offsets = [0, 0], sizes = [8, 96], strides = [1, 1]} : vector<8x128xf32> to vector<8x96xf32>
    %249 = arith.negf %248 : vector<8x96xf32>
    %250 = math.exp %249 : vector<8x96xf32>
    %cst_71 = arith.constant 1.000000e+00 : f32
    %251 = vector.broadcast %cst_71 : f32 to vector<8x96xf32>
    %252 = arith.addf %251, %250 : vector<8x96xf32>
    %253 = arith.divf %251, %252 : vector<8x96xf32>
    %254 = vector.extract_strided_slice %247 {offsets = [0, 96], sizes = [8, 32], strides = [1, 1]} : vector<8x128xf32> to vector<8x32xf32>
    %255 = math.tanh %254 : vector<8x32xf32>
    %256 = vector.extract_strided_slice %253 {offsets = [0, 32], sizes = [8, 32], strides = [1, 1]} : vector<8x96xf32> to vector<8x32xf32>
    %257 = arith.mulf %256, %238 : vector<8x32xf32>
    %258 = vector.extract_strided_slice %253 {offsets = [0, 0], sizes = [8, 32], strides = [1, 1]} : vector<8x96xf32> to vector<8x32xf32>
    %259 = arith.mulf %258, %255 : vector<8x32xf32>
    %260 = arith.addf %257, %259 : vector<8x32xf32>
    %261 = vector.extract_strided_slice %253 {offsets = [0, 64], sizes = [8, 32], strides = [1, 1]} : vector<8x96xf32> to vector<8x32xf32>
    %262 = math.tanh %260 : vector<8x32xf32>
    %263 = arith.mulf %261, %262 : vector<8x32xf32>
    %c2_72 = arith.constant 2 : index
    %c0_73 = arith.constant 0 : index
    %c0_74 = arith.constant 0 : index
    %264 = vector.load %arg14[%c2_72, %c0_73, %c0_74] : memref<8x8x32xf32, #tpu.memory_space<vmem>>, vector<1x8x32xf32>
    %265 = vector.shape_cast %264 : vector<1x8x32xf32> to vector<8x32xf32>
    %266 = vector.shape_cast %263 : vector<8x32xf32> to vector<1x8x32xf32>
    tpu.vector_store %arg14[%c2_72, %c0_73, %c0_74], %266 {strides = array<i32>} : memref<8x8x32xf32, #tpu.memory_space<vmem>>, vector<1x8x32xf32>,
    %267 = vector.extract_strided_slice %196 {offsets = [24, 0], sizes = [8, 128], strides = [1, 1]} : vector<64x128xf32> to vector<8x128xf32>
    %cst_75 = arith.constant dense<0.000000e+00> : vector<8x128xf32>
    %268 = tpu.matmul %263, %198, %cst_75 {dimension_numbers = #tpu.dot_dimension_numbers<[1], [0], [0], [1], [0, 0, 1, 1], [], []>} : vector<8x32xf32>, vector<32x128xf32>, vector<8x128xf32> -> vector<8x128xf32>
    %269 = arith.addf %267, %268 : vector<8x128xf32>
    %270 = vector.extract_strided_slice %269 {offsets = [0, 0], sizes = [8, 96], strides = [1, 1]} : vector<8x128xf32> to vector<8x96xf32>
    %271 = arith.negf %270 : vector<8x96xf32>
    %272 = math.exp %271 : vector<8x96xf32>
    %cst_76 = arith.constant 1.000000e+00 : f32
    %273 = vector.broadcast %cst_76 : f32 to vector<8x96xf32>
    %274 = arith.addf %273, %272 : vector<8x96xf32>
    %275 = arith.divf %273, %274 : vector<8x96xf32>
    %276 = vector.extract_strided_slice %269 {offsets = [0, 96], sizes = [8, 32], strides = [1, 1]} : vector<8x128xf32> to vector<8x32xf32>
    %277 = math.tanh %276 : vector<8x32xf32>
    %278 = vector.extract_strided_slice %275 {offsets = [0, 32], sizes = [8, 32], strides = [1, 1]} : vector<8x96xf32> to vector<8x32xf32>
    %279 = arith.mulf %278, %260 : vector<8x32xf32>
    %280 = vector.extract_strided_slice %275 {offsets = [0, 0], sizes = [8, 32], strides = [1, 1]} : vector<8x96xf32> to vector<8x32xf32>
    %281 = arith.mulf %280, %277 : vector<8x32xf32>
    %282 = arith.addf %279, %281 : vector<8x32xf32>
    %283 = vector.extract_strided_slice %275 {offsets = [0, 64], sizes = [8, 32], strides = [1, 1]} : vector<8x96xf32> to vector<8x32xf32>
    %284 = math.tanh %282 : vector<8x32xf32>
    %285 = arith.mulf %283, %284 : vector<8x32xf32>
    %c3_77 = arith.constant 3 : index
    %c0_78 = arith.constant 0 : index
    %c0_79 = arith.constant 0 : index
    %286 = vector.load %arg14[%c3_77, %c0_78, %c0_79] : memref<8x8x32xf32, #tpu.memory_space<vmem>>, vector<1x8x32xf32>
    %287 = vector.shape_cast %286 : vector<1x8x32xf32> to vector<8x32xf32>
    %288 = vector.shape_cast %285 : vector<8x32xf32> to vector<1x8x32xf32>
    tpu.vector_store %arg14[%c3_77, %c0_78, %c0_79], %288 {strides = array<i32>} : memref<8x8x32xf32, #tpu.memory_space<vmem>>, vector<1x8x32xf32>,
    %289 = vector.extract_strided_slice %196 {offsets = [32, 0], sizes = [8, 128], strides = [1, 1]} : vector<64x128xf32> to vector<8x128xf32>
    %cst_80 = arith.constant dense<0.000000e+00> : vector<8x128xf32>
    %290 = tpu.matmul %285, %198, %cst_80 {dimension_numbers = #tpu.dot_dimension_numbers<[1], [0], [0], [1], [0, 0, 1, 1], [], []>} : vector<8x32xf32>, vector<32x128xf32>, vector<8x128xf32> -> vector<8x128xf32>
    %291 = arith.addf %289, %290 : vector<8x128xf32>
    %292 = vector.extract_strided_slice %291 {offsets = [0, 0], sizes = [8, 96], strides = [1, 1]} : vector<8x128xf32> to vector<8x96xf32>
    %293 = arith.negf %292 : vector<8x96xf32>
    %294 = math.exp %293 : vector<8x96xf32>
    %cst_81 = arith.constant 1.000000e+00 : f32
    %295 = vector.broadcast %cst_81 : f32 to vector<8x96xf32>
    %296 = arith.addf %295, %294 : vector<8x96xf32>
    %297 = arith.divf %295, %296 : vector<8x96xf32>
    %298 = vector.extract_strided_slice %291 {offsets = [0, 96], sizes = [8, 32], strides = [1, 1]} : vector<8x128xf32> to vector<8x32xf32>
    %299 = math.tanh %298 : vector<8x32xf32>
    %300 = vector.extract_strided_slice %297 {offsets = [0, 32], sizes = [8, 32], strides = [1, 1]} : vector<8x96xf32> to vector<8x32xf32>
    %301 = arith.mulf %300, %282 : vector<8x32xf32>
    %302 = vector.extract_strided_slice %297 {offsets = [0, 0], sizes = [8, 32], strides = [1, 1]} : vector<8x96xf32> to vector<8x32xf32>
    %303 = arith.mulf %302, %299 : vector<8x32xf32>
    %304 = arith.addf %301, %303 : vector<8x32xf32>
    %305 = vector.extract_strided_slice %297 {offsets = [0, 64], sizes = [8, 32], strides = [1, 1]} : vector<8x96xf32> to vector<8x32xf32>
    %306 = math.tanh %304 : vector<8x32xf32>
    %307 = arith.mulf %305, %306 : vector<8x32xf32>
    %c4_82 = arith.constant 4 : index
    %c0_83 = arith.constant 0 : index
    %c0_84 = arith.constant 0 : index
    %308 = vector.load %arg14[%c4_82, %c0_83, %c0_84] : memref<8x8x32xf32, #tpu.memory_space<vmem>>, vector<1x8x32xf32>
    %309 = vector.shape_cast %308 : vector<1x8x32xf32> to vector<8x32xf32>
    %310 = vector.shape_cast %307 : vector<8x32xf32> to vector<1x8x32xf32>
    tpu.vector_store %arg14[%c4_82, %c0_83, %c0_84], %310 {strides = array<i32>} : memref<8x8x32xf32, #tpu.memory_space<vmem>>, vector<1x8x32xf32>,
    %311 = vector.extract_strided_slice %196 {offsets = [40, 0], sizes = [8, 128], strides = [1, 1]} : vector<64x128xf32> to vector<8x128xf32>
    %cst_85 = arith.constant dense<0.000000e+00> : vector<8x128xf32>
    %312 = tpu.matmul %307, %198, %cst_85 {dimension_numbers = #tpu.dot_dimension_numbers<[1], [0], [0], [1], [0, 0, 1, 1], [], []>} : vector<8x32xf32>, vector<32x128xf32>, vector<8x128xf32> -> vector<8x128xf32>
    %313 = arith.addf %311, %312 : vector<8x128xf32>
    %314 = vector.extract_strided_slice %313 {offsets = [0, 0], sizes = [8, 96], strides = [1, 1]} : vector<8x128xf32> to vector<8x96xf32>
    %315 = arith.negf %314 : vector<8x96xf32>
    %316 = math.exp %315 : vector<8x96xf32>
    %cst_86 = arith.constant 1.000000e+00 : f32
    %317 = vector.broadcast %cst_86 : f32 to vector<8x96xf32>
    %318 = arith.addf %317, %316 : vector<8x96xf32>
    %319 = arith.divf %317, %318 : vector<8x96xf32>
    %320 = vector.extract_strided_slice %313 {offsets = [0, 96], sizes = [8, 32], strides = [1, 1]} : vector<8x128xf32> to vector<8x32xf32>
    %321 = math.tanh %320 : vector<8x32xf32>
    %322 = vector.extract_strided_slice %319 {offsets = [0, 32], sizes = [8, 32], strides = [1, 1]} : vector<8x96xf32> to vector<8x32xf32>
    %323 = arith.mulf %322, %304 : vector<8x32xf32>
    %324 = vector.extract_strided_slice %319 {offsets = [0, 0], sizes = [8, 32], strides = [1, 1]} : vector<8x96xf32> to vector<8x32xf32>
    %325 = arith.mulf %324, %321 : vector<8x32xf32>
    %326 = arith.addf %323, %325 : vector<8x32xf32>
    %327 = vector.extract_strided_slice %319 {offsets = [0, 64], sizes = [8, 32], strides = [1, 1]} : vector<8x96xf32> to vector<8x32xf32>
    %328 = math.tanh %326 : vector<8x32xf32>
    %329 = arith.mulf %327, %328 : vector<8x32xf32>
    %c5_87 = arith.constant 5 : index
    %c0_88 = arith.constant 0 : index
    %c0_89 = arith.constant 0 : index
    %330 = vector.load %arg14[%c5_87, %c0_88, %c0_89] : memref<8x8x32xf32, #tpu.memory_space<vmem>>, vector<1x8x32xf32>
    %331 = vector.shape_cast %330 : vector<1x8x32xf32> to vector<8x32xf32>
    %332 = vector.shape_cast %329 : vector<8x32xf32> to vector<1x8x32xf32>
    tpu.vector_store %arg14[%c5_87, %c0_88, %c0_89], %332 {strides = array<i32>} : memref<8x8x32xf32, #tpu.memory_space<vmem>>, vector<1x8x32xf32>,
    %333 = vector.extract_strided_slice %196 {offsets = [48, 0], sizes = [8, 128], strides = [1, 1]} : vector<64x128xf32> to vector<8x128xf32>
    %cst_90 = arith.constant dense<0.000000e+00> : vector<8x128xf32>
    %334 = tpu.matmul %329, %198, %cst_90 {dimension_numbers = #tpu.dot_dimension_numbers<[1], [0], [0], [1], [0, 0, 1, 1], [], []>} : vector<8x32xf32>, vector<32x128xf32>, vector<8x128xf32> -> vector<8x128xf32>
    %335 = arith.addf %333, %334 : vector<8x128xf32>
    %336 = vector.extract_strided_slice %335 {offsets = [0, 0], sizes = [8, 96], strides = [1, 1]} : vector<8x128xf32> to vector<8x96xf32>
    %337 = arith.negf %336 : vector<8x96xf32>
    %338 = math.exp %337 : vector<8x96xf32>
    %cst_91 = arith.constant 1.000000e+00 : f32
    %339 = vector.broadcast %cst_91 : f32 to vector<8x96xf32>
    %340 = arith.addf %339, %338 : vector<8x96xf32>
    %341 = arith.divf %339, %340 : vector<8x96xf32>
    %342 = vector.extract_strided_slice %335 {offsets = [0, 96], sizes = [8, 32], strides = [1, 1]} : vector<8x128xf32> to vector<8x32xf32>
    %343 = math.tanh %342 : vector<8x32xf32>
    %344 = vector.extract_strided_slice %341 {offsets = [0, 32], sizes = [8, 32], strides = [1, 1]} : vector<8x96xf32> to vector<8x32xf32>
    %345 = arith.mulf %344, %326 : vector<8x32xf32>
    %346 = vector.extract_strided_slice %341 {offsets = [0, 0], sizes = [8, 32], strides = [1, 1]} : vector<8x96xf32> to vector<8x32xf32>
    %347 = arith.mulf %346, %343 : vector<8x32xf32>
    %348 = arith.addf %345, %347 : vector<8x32xf32>
    %349 = vector.extract_strided_slice %341 {offsets = [0, 64], sizes = [8, 32], strides = [1, 1]} : vector<8x96xf32> to vector<8x32xf32>
    %350 = math.tanh %348 : vector<8x32xf32>
    %351 = arith.mulf %349, %350 : vector<8x32xf32>
    %c6_92 = arith.constant 6 : index
    %c0_93 = arith.constant 0 : index
    %c0_94 = arith.constant 0 : index
    %352 = vector.load %arg14[%c6_92, %c0_93, %c0_94] : memref<8x8x32xf32, #tpu.memory_space<vmem>>, vector<1x8x32xf32>
    %353 = vector.shape_cast %352 : vector<1x8x32xf32> to vector<8x32xf32>
    %354 = vector.shape_cast %351 : vector<8x32xf32> to vector<1x8x32xf32>
    tpu.vector_store %arg14[%c6_92, %c0_93, %c0_94], %354 {strides = array<i32>} : memref<8x8x32xf32, #tpu.memory_space<vmem>>, vector<1x8x32xf32>,
    %355 = vector.extract_strided_slice %196 {offsets = [56, 0], sizes = [8, 128], strides = [1, 1]} : vector<64x128xf32> to vector<8x128xf32>
    %cst_95 = arith.constant dense<0.000000e+00> : vector<8x128xf32>
    %356 = tpu.matmul %351, %198, %cst_95 {dimension_numbers = #tpu.dot_dimension_numbers<[1], [0], [0], [1], [0, 0, 1, 1], [], []>} : vector<8x32xf32>, vector<32x128xf32>, vector<8x128xf32> -> vector<8x128xf32>
    %357 = arith.addf %355, %356 : vector<8x128xf32>
    %358 = vector.extract_strided_slice %357 {offsets = [0, 0], sizes = [8, 96], strides = [1, 1]} : vector<8x128xf32> to vector<8x96xf32>
    %359 = arith.negf %358 : vector<8x96xf32>
    %360 = math.exp %359 : vector<8x96xf32>
    %cst_96 = arith.constant 1.000000e+00 : f32
    %361 = vector.broadcast %cst_96 : f32 to vector<8x96xf32>
    %362 = arith.addf %361, %360 : vector<8x96xf32>
    %363 = arith.divf %361, %362 : vector<8x96xf32>
    %364 = vector.extract_strided_slice %357 {offsets = [0, 96], sizes = [8, 32], strides = [1, 1]} : vector<8x128xf32> to vector<8x32xf32>
    %365 = math.tanh %364 : vector<8x32xf32>
    %366 = vector.extract_strided_slice %363 {offsets = [0, 32], sizes = [8, 32], strides = [1, 1]} : vector<8x96xf32> to vector<8x32xf32>
    %367 = arith.mulf %366, %348 : vector<8x32xf32>
    %368 = vector.extract_strided_slice %363 {offsets = [0, 0], sizes = [8, 32], strides = [1, 1]} : vector<8x96xf32> to vector<8x32xf32>
    %369 = arith.mulf %368, %365 : vector<8x32xf32>
    %370 = arith.addf %367, %369 : vector<8x32xf32>
    %371 = vector.extract_strided_slice %363 {offsets = [0, 64], sizes = [8, 32], strides = [1, 1]} : vector<8x96xf32> to vector<8x32xf32>
    %372 = math.tanh %370 : vector<8x32xf32>
    %373 = arith.mulf %371, %372 : vector<8x32xf32>
    %c7_97 = arith.constant 7 : index
    %c0_98 = arith.constant 0 : index
    %c0_99 = arith.constant 0 : index
    %374 = vector.load %arg14[%c7_97, %c0_98, %c0_99] : memref<8x8x32xf32, #tpu.memory_space<vmem>>, vector<1x8x32xf32>
    %375 = vector.shape_cast %374 : vector<1x8x32xf32> to vector<8x32xf32>
    %376 = vector.shape_cast %373 : vector<8x32xf32> to vector<1x8x32xf32>
    tpu.vector_store %arg14[%c7_97, %c0_98, %c0_99], %376 {strides = array<i32>} : memref<8x8x32xf32, #tpu.memory_space<vmem>>, vector<1x8x32xf32>,
    %c0_100 = arith.constant 0 : index
    %c0_101 = arith.constant 0 : index
    %c0_102 = arith.constant 0 : index
    %377 = vector.load %arg14[%c0_100, %c0_101, %c0_102] : memref<8x8x32xf32, #tpu.memory_space<vmem>>, vector<8x8x32xf32>
    %378 = vector.shape_cast %377 : vector<8x8x32xf32> to vector<64x32xf32>
    %c0_103 = arith.constant 0 : index
    %c0_104 = arith.constant 0 : index
    %379 = vector.load %arg11[%c0_103, %c0_104] : memref<32x32xf32, #tpu.memory_space<vmem>>, vector<32x32xf32>
    %cst_105 = arith.constant dense<0.000000e+00> : vector<64x32xf32>
    %380 = tpu.matmul %378, %379, %cst_105 {dimension_numbers = #tpu.dot_dimension_numbers<[1], [0], [0], [1], [0, 0, 1, 1], [], []>} : vector<64x32xf32>, vector<32x32xf32>, vector<64x32xf32> -> vector<64x32xf32>
    %c0_106 = arith.constant 0 : index
    %c0_107 = arith.constant 0 : index
    %381 = vector.load %arg13[%c0_106, %c0_107] : memref<1x32xf32, #tpu.memory_space<vmem>>, vector<1x32xf32>
    %382 = vector.broadcast %381 : vector<1x32xf32> to vector<64x32xf32>
    %383 = arith.addf %380, %382 : vector<64x32xf32>
    %384 = vector.shape_cast %383 : vector<64x32xf32> to vector<8x8x32xf32>
    %c0_108 = arith.constant 0 : index
    %c0_109 = arith.constant 0 : index
    %c0_110 = arith.constant 0 : index
    %385 = vector.load %arg15[%c0_108, %c0_109, %c0_110] : memref<8x8x32xf32, #tpu.memory_space<vmem>>, vector<8x8x32xf32>
    tpu.vector_store %arg15[%c0_108, %c0_109, %c0_110], %384 {strides = array<i32>} : memref<8x8x32xf32, #tpu.memory_space<vmem>>, vector<8x8x32xf32>,
    %c0_111 = arith.constant 0 : index
    %c0_112 = arith.constant 0 : index
    %386 = vector.load %arg5[%c0_111, %c0_112] : memref<32x16xf32, #tpu.memory_space<vmem>>, vector<32x16xf32>
    %cst_113 = arith.constant dense<0.000000e+00> : vector<64x16xf32>
    %387 = tpu.matmul %0, %386, %cst_113 {dimension_numbers = #tpu.dot_dimension_numbers<[1], [0], [0], [1], [0, 0, 1, 1], [], []>} : vector<64x32xf32>, vector<32x16xf32>, vector<64x16xf32> -> vector<64x16xf32>
    %c0_114 = arith.constant 0 : index
    %c0_115 = arith.constant 0 : index
    %388 = vector.load %arg7[%c0_114, %c0_115] : memref<1x16xf32, #tpu.memory_space<vmem>>, vector<1x16xf32>
    %389 = vector.broadcast %388 : vector<1x16xf32> to vector<64x16xf32>
    %390 = arith.addf %387, %389 : vector<64x16xf32>
    %c0_116 = arith.constant 0 : index
    %c0_117 = arith.constant 0 : index
    %391 = vector.load %arg6[%c0_116, %c0_117] : memref<16x16xf32, #tpu.memory_space<vmem>>, vector<16x16xf32>
    %cst_118 = arith.constant 0.000000e+00 : f32
    %392 = vector.broadcast %cst_118 : f32 to vector<8x16xf32>
    %393 = vector.extract_strided_slice %390 {offsets = [0, 0], sizes = [8, 16], strides = [1, 1]} : vector<64x16xf32> to vector<8x16xf32>
    %cst_119 = arith.constant dense<0.000000e+00> : vector<8x16xf32>
    %394 = tpu.matmul %392, %391, %cst_119 {dimension_numbers = #tpu.dot_dimension_numbers<[1], [0], [0], [1], [0, 0, 1, 1], [], []>} : vector<8x16xf32>, vector<16x16xf32>, vector<8x16xf32> -> vector<8x16xf32>
    %395 = arith.addf %393, %394 : vector<8x16xf32>
    %396 = math.tanh %395 : vector<8x16xf32>
    %c0_120 = arith.constant 0 : index
    %c0_121 = arith.constant 0 : index
    %c0_122 = arith.constant 0 : index
    %397 = vector.load %arg17[%c0_120, %c0_121, %c0_122] : memref<8x8x16xf32, #tpu.memory_space<vmem>>, vector<1x8x16xf32>
    %398 = vector.shape_cast %397 : vector<1x8x16xf32> to vector<8x16xf32>
    %399 = vector.shape_cast %396 : vector<8x16xf32> to vector<1x8x16xf32>
    tpu.vector_store %arg17[%c0_120, %c0_121, %c0_122], %399 {strides = array<i32>} : memref<8x8x16xf32, #tpu.memory_space<vmem>>, vector<1x8x16xf32>,
    %400 = vector.extract_strided_slice %390 {offsets = [8, 0], sizes = [8, 16], strides = [1, 1]} : vector<64x16xf32> to vector<8x16xf32>
    %cst_123 = arith.constant dense<0.000000e+00> : vector<8x16xf32>
    %401 = tpu.matmul %396, %391, %cst_123 {dimension_numbers = #tpu.dot_dimension_numbers<[1], [0], [0], [1], [0, 0, 1, 1], [], []>} : vector<8x16xf32>, vector<16x16xf32>, vector<8x16xf32> -> vector<8x16xf32>
    %402 = arith.addf %400, %401 : vector<8x16xf32>
    %403 = math.tanh %402 : vector<8x16xf32>
    %c1_124 = arith.constant 1 : index
    %c0_125 = arith.constant 0 : index
    %c0_126 = arith.constant 0 : index
    %404 = vector.load %arg17[%c1_124, %c0_125, %c0_126] : memref<8x8x16xf32, #tpu.memory_space<vmem>>, vector<1x8x16xf32>
    %405 = vector.shape_cast %404 : vector<1x8x16xf32> to vector<8x16xf32>
    %406 = vector.shape_cast %403 : vector<8x16xf32> to vector<1x8x16xf32>
    tpu.vector_store %arg17[%c1_124, %c0_125, %c0_126], %406 {strides = array<i32>} : memref<8x8x16xf32, #tpu.memory_space<vmem>>, vector<1x8x16xf32>,
    %407 = vector.extract_strided_slice %390 {offsets = [16, 0], sizes = [8, 16], strides = [1, 1]} : vector<64x16xf32> to vector<8x16xf32>
    %cst_127 = arith.constant dense<0.000000e+00> : vector<8x16xf32>
    %408 = tpu.matmul %403, %391, %cst_127 {dimension_numbers = #tpu.dot_dimension_numbers<[1], [0], [0], [1], [0, 0, 1, 1], [], []>} : vector<8x16xf32>, vector<16x16xf32>, vector<8x16xf32> -> vector<8x16xf32>
    %409 = arith.addf %407, %408 : vector<8x16xf32>
    %410 = math.tanh %409 : vector<8x16xf32>
    %c2_128 = arith.constant 2 : index
    %c0_129 = arith.constant 0 : index
    %c0_130 = arith.constant 0 : index
    %411 = vector.load %arg17[%c2_128, %c0_129, %c0_130] : memref<8x8x16xf32, #tpu.memory_space<vmem>>, vector<1x8x16xf32>
    %412 = vector.shape_cast %411 : vector<1x8x16xf32> to vector<8x16xf32>
    %413 = vector.shape_cast %410 : vector<8x16xf32> to vector<1x8x16xf32>
    tpu.vector_store %arg17[%c2_128, %c0_129, %c0_130], %413 {strides = array<i32>} : memref<8x8x16xf32, #tpu.memory_space<vmem>>, vector<1x8x16xf32>,
    %414 = vector.extract_strided_slice %390 {offsets = [24, 0], sizes = [8, 16], strides = [1, 1]} : vector<64x16xf32> to vector<8x16xf32>
    %cst_131 = arith.constant dense<0.000000e+00> : vector<8x16xf32>
    %415 = tpu.matmul %410, %391, %cst_131 {dimension_numbers = #tpu.dot_dimension_numbers<[1], [0], [0], [1], [0, 0, 1, 1], [], []>} : vector<8x16xf32>, vector<16x16xf32>, vector<8x16xf32> -> vector<8x16xf32>
    %416 = arith.addf %414, %415 : vector<8x16xf32>
    %417 = math.tanh %416 : vector<8x16xf32>
    %c3_132 = arith.constant 3 : index
    %c0_133 = arith.constant 0 : index
    %c0_134 = arith.constant 0 : index
    %418 = vector.load %arg17[%c3_132, %c0_133, %c0_134] : memref<8x8x16xf32, #tpu.memory_space<vmem>>, vector<1x8x16xf32>
    %419 = vector.shape_cast %418 : vector<1x8x16xf32> to vector<8x16xf32>
    %420 = vector.shape_cast %417 : vector<8x16xf32> to vector<1x8x16xf32>
    tpu.vector_store %arg17[%c3_132, %c0_133, %c0_134], %420 {strides = array<i32>} : memref<8x8x16xf32, #tpu.memory_space<vmem>>, vector<1x8x16xf32>,
    %421 = vector.extract_strided_slice %390 {offsets = [32, 0], sizes = [8, 16], strides = [1, 1]} : vector<64x16xf32> to vector<8x16xf32>
    %cst_135 = arith.constant dense<0.000000e+00> : vector<8x16xf32>
    %422 = tpu.matmul %417, %391, %cst_135 {dimension_numbers = #tpu.dot_dimension_numbers<[1], [0], [0], [1], [0, 0, 1, 1], [], []>} : vector<8x16xf32>, vector<16x16xf32>, vector<8x16xf32> -> vector<8x16xf32>
    %423 = arith.addf %421, %422 : vector<8x16xf32>
    %424 = math.tanh %423 : vector<8x16xf32>
    %c4_136 = arith.constant 4 : index
    %c0_137 = arith.constant 0 : index
    %c0_138 = arith.constant 0 : index
    %425 = vector.load %arg17[%c4_136, %c0_137, %c0_138] : memref<8x8x16xf32, #tpu.memory_space<vmem>>, vector<1x8x16xf32>
    %426 = vector.shape_cast %425 : vector<1x8x16xf32> to vector<8x16xf32>
    %427 = vector.shape_cast %424 : vector<8x16xf32> to vector<1x8x16xf32>
    tpu.vector_store %arg17[%c4_136, %c0_137, %c0_138], %427 {strides = array<i32>} : memref<8x8x16xf32, #tpu.memory_space<vmem>>, vector<1x8x16xf32>,
    %428 = vector.extract_strided_slice %390 {offsets = [40, 0], sizes = [8, 16], strides = [1, 1]} : vector<64x16xf32> to vector<8x16xf32>
    %cst_139 = arith.constant dense<0.000000e+00> : vector<8x16xf32>
    %429 = tpu.matmul %424, %391, %cst_139 {dimension_numbers = #tpu.dot_dimension_numbers<[1], [0], [0], [1], [0, 0, 1, 1], [], []>} : vector<8x16xf32>, vector<16x16xf32>, vector<8x16xf32> -> vector<8x16xf32>
    %430 = arith.addf %428, %429 : vector<8x16xf32>
    %431 = math.tanh %430 : vector<8x16xf32>
    %c5_140 = arith.constant 5 : index
    %c0_141 = arith.constant 0 : index
    %c0_142 = arith.constant 0 : index
    %432 = vector.load %arg17[%c5_140, %c0_141, %c0_142] : memref<8x8x16xf32, #tpu.memory_space<vmem>>, vector<1x8x16xf32>
    %433 = vector.shape_cast %432 : vector<1x8x16xf32> to vector<8x16xf32>
    %434 = vector.shape_cast %431 : vector<8x16xf32> to vector<1x8x16xf32>
    tpu.vector_store %arg17[%c5_140, %c0_141, %c0_142], %434 {strides = array<i32>} : memref<8x8x16xf32, #tpu.memory_space<vmem>>, vector<1x8x16xf32>,
    %435 = vector.extract_strided_slice %390 {offsets = [48, 0], sizes = [8, 16], strides = [1, 1]} : vector<64x16xf32> to vector<8x16xf32>
    %cst_143 = arith.constant dense<0.000000e+00> : vector<8x16xf32>
    %436 = tpu.matmul %431, %391, %cst_143 {dimension_numbers = #tpu.dot_dimension_numbers<[1], [0], [0], [1], [0, 0, 1, 1], [], []>} : vector<8x16xf32>, vector<16x16xf32>, vector<8x16xf32> -> vector<8x16xf32>
    %437 = arith.addf %435, %436 : vector<8x16xf32>
    %438 = math.tanh %437 : vector<8x16xf32>
    %c6_144 = arith.constant 6 : index
    %c0_145 = arith.constant 0 : index
    %c0_146 = arith.constant 0 : index
    %439 = vector.load %arg17[%c6_144, %c0_145, %c0_146] : memref<8x8x16xf32, #tpu.memory_space<vmem>>, vector<1x8x16xf32>
    %440 = vector.shape_cast %439 : vector<1x8x16xf32> to vector<8x16xf32>
    %441 = vector.shape_cast %438 : vector<8x16xf32> to vector<1x8x16xf32>
    tpu.vector_store %arg17[%c6_144, %c0_145, %c0_146], %441 {strides = array<i32>} : memref<8x8x16xf32, #tpu.memory_space<vmem>>, vector<1x8x16xf32>,
    %442 = vector.extract_strided_slice %390 {offsets = [56, 0], sizes = [8, 16], strides = [1, 1]} : vector<64x16xf32> to vector<8x16xf32>
    %cst_147 = arith.constant dense<0.000000e+00> : vector<8x16xf32>
    %443 = tpu.matmul %438, %391, %cst_147 {dimension_numbers = #tpu.dot_dimension_numbers<[1], [0], [0], [1], [0, 0, 1, 1], [], []>} : vector<8x16xf32>, vector<16x16xf32>, vector<8x16xf32> -> vector<8x16xf32>
    %444 = arith.addf %442, %443 : vector<8x16xf32>
    %445 = math.tanh %444 : vector<8x16xf32>
    %c7_148 = arith.constant 7 : index
    %c0_149 = arith.constant 0 : index
    %c0_150 = arith.constant 0 : index
    %446 = vector.load %arg17[%c7_148, %c0_149, %c0_150] : memref<8x8x16xf32, #tpu.memory_space<vmem>>, vector<1x8x16xf32>
    %447 = vector.shape_cast %446 : vector<1x8x16xf32> to vector<8x16xf32>
    %448 = vector.shape_cast %445 : vector<8x16xf32> to vector<1x8x16xf32>
    tpu.vector_store %arg17[%c7_148, %c0_149, %c0_150], %448 {strides = array<i32>} : memref<8x8x16xf32, #tpu.memory_space<vmem>>, vector<1x8x16xf32>,
    %c0_151 = arith.constant 0 : index
    %c0_152 = arith.constant 0 : index
    %c0_153 = arith.constant 0 : index
    %449 = vector.load %arg17[%c0_151, %c0_152, %c0_153] : memref<8x8x16xf32, #tpu.memory_space<vmem>>, vector<8x8x16xf32>
    %450 = vector.shape_cast %449 : vector<8x8x16xf32> to vector<64x16xf32>
    %c0_154 = arith.constant 0 : index
    %c0_155 = arith.constant 0 : index
    %451 = vector.load %arg12[%c0_154, %c0_155] : memref<16x32xf32, #tpu.memory_space<vmem>>, vector<16x32xf32>
    %cst_156 = arith.constant dense<0.000000e+00> : vector<64x32xf32>
    %452 = tpu.matmul %450, %451, %cst_156 {dimension_numbers = #tpu.dot_dimension_numbers<[1], [0], [0], [1], [0, 0, 1, 1], [], []>} : vector<64x16xf32>, vector<16x32xf32>, vector<64x32xf32> -> vector<64x32xf32>
    %453 = vector.shape_cast %452 : vector<64x32xf32> to vector<8x8x32xf32>
    %c0_157 = arith.constant 0 : index
    %c0_158 = arith.constant 0 : index
    %c0_159 = arith.constant 0 : index
    %454 = vector.load %arg16[%c0_157, %c0_158, %c0_159] : memref<8x8x32xf32, #tpu.memory_space<vmem>>, vector<8x8x32xf32>
    tpu.vector_store %arg16[%c0_157, %c0_158, %c0_159], %453 {strides = array<i32>} : memref<8x8x32xf32, #tpu.memory_space<vmem>>, vector<8x8x32xf32>,
    %c0_160 = arith.constant 0 : index
    %c0_161 = arith.constant 0 : index
    %455 = vector.load %arg8[%c0_160, %c0_161] : memref<32x16xf32, #tpu.memory_space<vmem>>, vector<32x16xf32>
    %cst_162 = arith.constant dense<0.000000e+00> : vector<64x16xf32>
    %456 = tpu.matmul %0, %455, %cst_162 {dimension_numbers = #tpu.dot_dimension_numbers<[1], [0], [0], [1], [0, 0, 1, 1], [], []>} : vector<64x32xf32>, vector<32x16xf32>, vector<64x16xf32> -> vector<64x16xf32>
    %c0_163 = arith.constant 0 : index
    %c0_164 = arith.constant 0 : index
    %457 = vector.load %arg10[%c0_163, %c0_164] : memref<1x16xf32, #tpu.memory_space<vmem>>, vector<1x16xf32>
    %458 = vector.broadcast %457 : vector<1x16xf32> to vector<64x16xf32>
    %459 = arith.addf %456, %458 : vector<64x16xf32>
    %460 = vector.shape_cast %459 : vector<64x16xf32> to vector<8x8x16xf32>
    %c0_165 = arith.constant 0 : index
    %c0_166 = arith.constant 0 : index
    %461 = vector.load %arg9[%c0_165, %c0_166] : memref<16x16xf32, #tpu.memory_space<vmem>>, vector<16x16xf32>
    %cst_167 = arith.constant 0.000000e+00 : f32
    %462 = vector.broadcast %cst_167 : f32 to vector<8x8x8x16xf32>
    %c0_168 = arith.constant 0 : index
    %c0_169 = arith.constant 0 : index
    %c0_170 = arith.constant 0 : index
    %c0_171 = arith.constant 0 : index
    %463 = vector.load %arg18[%c0_168, %c0_169, %c0_170, %c0_171] : memref<8x8x8x16xf32, #tpu.memory_space<vmem>>, vector<8x8x8x16xf32>
    tpu.vector_store %arg18[%c0_168, %c0_169, %c0_170, %c0_171], %462 {strides = array<i32>} : memref<8x8x8x16xf32, #tpu.memory_space<vmem>>, vector<8x8x8x16xf32>,
    %464 = math.tanh %460 : vector<8x8x16xf32>
    %465 = vector.extract_strided_slice %464 {offsets = [0, 0, 0], sizes = [1, 8, 16], strides = [1, 1, 1]} : vector<8x8x16xf32> to vector<1x8x16xf32>
    %466 = vector.shape_cast %465 : vector<1x8x16xf32> to vector<8x16xf32>
    %c0_172 = arith.constant 0 : index
    %c0_173 = arith.constant 0 : index
    %c0_174 = arith.constant 0 : index
    %c0_175 = arith.constant 0 : index
    %467 = vector.load %arg18[%c0_172, %c0_173, %c0_174, %c0_175] : memref<8x8x8x16xf32, #tpu.memory_space<vmem>>, vector<1x1x8x16xf32>
    %468 = vector.shape_cast %467 : vector<1x1x8x16xf32> to vector<8x16xf32>
    %469 = vector.shape_cast %466 : vector<8x16xf32> to vector<1x1x8x16xf32>
    tpu.vector_store %arg18[%c0_172, %c0_173, %c0_174, %c0_175], %469 {strides = array<i32>} : memref<8x8x8x16xf32, #tpu.memory_space<vmem>>, vector<1x1x8x16xf32>,
    %470 = vector.extract_strided_slice %464 {offsets = [1, 0, 0], sizes = [1, 8, 16], strides = [1, 1, 1]} : vector<8x8x16xf32> to vector<1x8x16xf32>
    %471 = vector.shape_cast %470 : vector<1x8x16xf32> to vector<8x16xf32>
    %c1_176 = arith.constant 1 : index
    %c1_177 = arith.constant 1 : index
    %c0_178 = arith.constant 0 : index
    %c0_179 = arith.constant 0 : index
    %472 = vector.load %arg18[%c1_176, %c1_177, %c0_178, %c0_179] : memref<8x8x8x16xf32, #tpu.memory_space<vmem>>, vector<1x1x8x16xf32>
    %473 = vector.shape_cast %472 : vector<1x1x8x16xf32> to vector<8x16xf32>
    %474 = vector.shape_cast %471 : vector<8x16xf32> to vector<1x1x8x16xf32>
    tpu.vector_store %arg18[%c1_176, %c1_177, %c0_178, %c0_179], %474 {strides = array<i32>} : memref<8x8x8x16xf32, #tpu.memory_space<vmem>>, vector<1x1x8x16xf32>,
    %475 = vector.extract_strided_slice %464 {offsets = [2, 0, 0], sizes = [1, 8, 16], strides = [1, 1, 1]} : vector<8x8x16xf32> to vector<1x8x16xf32>
    %476 = vector.shape_cast %475 : vector<1x8x16xf32> to vector<8x16xf32>
    %c2_180 = arith.constant 2 : index
    %c2_181 = arith.constant 2 : index
    %c0_182 = arith.constant 0 : index
    %c0_183 = arith.constant 0 : index
    %477 = vector.load %arg18[%c2_180, %c2_181, %c0_182, %c0_183] : memref<8x8x8x16xf32, #tpu.memory_space<vmem>>, vector<1x1x8x16xf32>
    %478 = vector.shape_cast %477 : vector<1x1x8x16xf32> to vector<8x16xf32>
    %479 = vector.shape_cast %476 : vector<8x16xf32> to vector<1x1x8x16xf32>
    tpu.vector_store %arg18[%c2_180, %c2_181, %c0_182, %c0_183], %479 {strides = array<i32>} : memref<8x8x8x16xf32, #tpu.memory_space<vmem>>, vector<1x1x8x16xf32>,
    %480 = vector.extract_strided_slice %464 {offsets = [3, 0, 0], sizes = [1, 8, 16], strides = [1, 1, 1]} : vector<8x8x16xf32> to vector<1x8x16xf32>
    %481 = vector.shape_cast %480 : vector<1x8x16xf32> to vector<8x16xf32>
    %c3_184 = arith.constant 3 : index
    %c3_185 = arith.constant 3 : index
    %c0_186 = arith.constant 0 : index
    %c0_187 = arith.constant 0 : index
    %482 = vector.load %arg18[%c3_184, %c3_185, %c0_186, %c0_187] : memref<8x8x8x16xf32, #tpu.memory_space<vmem>>, vector<1x1x8x16xf32>
    %483 = vector.shape_cast %482 : vector<1x1x8x16xf32> to vector<8x16xf32>
    %484 = vector.shape_cast %481 : vector<8x16xf32> to vector<1x1x8x16xf32>
    tpu.vector_store %arg18[%c3_184, %c3_185, %c0_186, %c0_187], %484 {strides = array<i32>} : memref<8x8x8x16xf32, #tpu.memory_space<vmem>>, vector<1x1x8x16xf32>,
    %485 = vector.extract_strided_slice %464 {offsets = [4, 0, 0], sizes = [1, 8, 16], strides = [1, 1, 1]} : vector<8x8x16xf32> to vector<1x8x16xf32>
    %486 = vector.shape_cast %485 : vector<1x8x16xf32> to vector<8x16xf32>
    %c4_188 = arith.constant 4 : index
    %c4_189 = arith.constant 4 : index
    %c0_190 = arith.constant 0 : index
    %c0_191 = arith.constant 0 : index
    %487 = vector.load %arg18[%c4_188, %c4_189, %c0_190, %c0_191] : memref<8x8x8x16xf32, #tpu.memory_space<vmem>>, vector<1x1x8x16xf32>
    %488 = vector.shape_cast %487 : vector<1x1x8x16xf32> to vector<8x16xf32>
    %489 = vector.shape_cast %486 : vector<8x16xf32> to vector<1x1x8x16xf32>
    tpu.vector_store %arg18[%c4_188, %c4_189, %c0_190, %c0_191], %489 {strides = array<i32>} : memref<8x8x8x16xf32, #tpu.memory_space<vmem>>, vector<1x1x8x16xf32>,
    %490 = vector.extract_strided_slice %464 {offsets = [5, 0, 0], sizes = [1, 8, 16], strides = [1, 1, 1]} : vector<8x8x16xf32> to vector<1x8x16xf32>
    %491 = vector.shape_cast %490 : vector<1x8x16xf32> to vector<8x16xf32>
    %c5_192 = arith.constant 5 : index
    %c5_193 = arith.constant 5 : index
    %c0_194 = arith.constant 0 : index
    %c0_195 = arith.constant 0 : index
    %492 = vector.load %arg18[%c5_192, %c5_193, %c0_194, %c0_195] : memref<8x8x8x16xf32, #tpu.memory_space<vmem>>, vector<1x1x8x16xf32>
    %493 = vector.shape_cast %492 : vector<1x1x8x16xf32> to vector<8x16xf32>
    %494 = vector.shape_cast %491 : vector<8x16xf32> to vector<1x1x8x16xf32>
    tpu.vector_store %arg18[%c5_192, %c5_193, %c0_194, %c0_195], %494 {strides = array<i32>} : memref<8x8x8x16xf32, #tpu.memory_space<vmem>>, vector<1x1x8x16xf32>,
    %495 = vector.extract_strided_slice %464 {offsets = [6, 0, 0], sizes = [1, 8, 16], strides = [1, 1, 1]} : vector<8x8x16xf32> to vector<1x8x16xf32>
    %496 = vector.shape_cast %495 : vector<1x8x16xf32> to vector<8x16xf32>
    %c6_196 = arith.constant 6 : index
    %c6_197 = arith.constant 6 : index
    %c0_198 = arith.constant 0 : index
    %c0_199 = arith.constant 0 : index
    %497 = vector.load %arg18[%c6_196, %c6_197, %c0_198, %c0_199] : memref<8x8x8x16xf32, #tpu.memory_space<vmem>>, vector<1x1x8x16xf32>
    %498 = vector.shape_cast %497 : vector<1x1x8x16xf32> to vector<8x16xf32>
    %499 = vector.shape_cast %496 : vector<8x16xf32> to vector<1x1x8x16xf32>
    tpu.vector_store %arg18[%c6_196, %c6_197, %c0_198, %c0_199], %499 {strides = array<i32>} : memref<8x8x8x16xf32, #tpu.memory_space<vmem>>, vector<1x1x8x16xf32>,
    %500 = vector.extract_strided_slice %464 {offsets = [7, 0, 0], sizes = [1, 8, 16], strides = [1, 1, 1]} : vector<8x8x16xf32> to vector<1x8x16xf32>
    %501 = vector.shape_cast %500 : vector<1x8x16xf32> to vector<8x16xf32>
    %c7_200 = arith.constant 7 : index
    %c7_201 = arith.constant 7 : index
    %c0_202 = arith.constant 0 : index
    %c0_203 = arith.constant 0 : index
    %502 = vector.load %arg18[%c7_200, %c7_201, %c0_202, %c0_203] : memref<8x8x8x16xf32, #tpu.memory_space<vmem>>, vector<1x1x8x16xf32>
    %503 = vector.shape_cast %502 : vector<1x1x8x16xf32> to vector<8x16xf32>
    %504 = vector.shape_cast %501 : vector<8x16xf32> to vector<1x1x8x16xf32>
    tpu.vector_store %arg18[%c7_200, %c7_201, %c0_202, %c0_203], %504 {strides = array<i32>} : memref<8x8x8x16xf32, #tpu.memory_space<vmem>>, vector<1x1x8x16xf32>,
    %505 = vector.shape_cast %464 : vector<8x8x16xf32> to vector<64x16xf32>
    %cst_204 = arith.constant dense<0.000000e+00> : vector<64x16xf32>
    %506 = tpu.matmul %505, %461, %cst_204 {dimension_numbers = #tpu.dot_dimension_numbers<[1], [0], [0], [1], [0, 0, 1, 1], [], []>} : vector<64x16xf32>, vector<16x16xf32>, vector<64x16xf32> -> vector<64x16xf32>
    %507 = vector.shape_cast %506 : vector<64x16xf32> to vector<8x8x16xf32>
    %cst_205 = arith.constant 0.000000e+00 : f32
    %508 = vector.broadcast %cst_205 : f32 to vector<1x8x16xf32>
    %509 = vector.extract_strided_slice %460 {offsets = [0, 0, 0], sizes = [7, 8, 16], strides = [1, 1, 1]} : vector<8x8x16xf32> to vector<7x8x16xf32>
    %510 = tpu.concatenate %508, %509 in 0 : vector<1x8x16xf32>, vector<7x8x16xf32> -> vector<8x8x16xf32>
    %511 = arith.addf %510, %507 : vector<8x8x16xf32>
    %512 = math.tanh %511 : vector<8x8x16xf32>
    %513 = vector.extract_strided_slice %512 {offsets = [1, 0, 0], sizes = [1, 8, 16], strides = [1, 1, 1]} : vector<8x8x16xf32> to vector<1x8x16xf32>
    %514 = vector.shape_cast %513 : vector<1x8x16xf32> to vector<8x16xf32>
    %c1_206 = arith.constant 1 : index
    %c0_207 = arith.constant 0 : index
    %c0_208 = arith.constant 0 : index
    %c0_209 = arith.constant 0 : index
    %515 = vector.load %arg18[%c1_206, %c0_207, %c0_208, %c0_209] : memref<8x8x8x16xf32, #tpu.memory_space<vmem>>, vector<1x1x8x16xf32>
    %516 = vector.shape_cast %515 : vector<1x1x8x16xf32> to vector<8x16xf32>
    %517 = vector.shape_cast %514 : vector<8x16xf32> to vector<1x1x8x16xf32>
    tpu.vector_store %arg18[%c1_206, %c0_207, %c0_208, %c0_209], %517 {strides = array<i32>} : memref<8x8x8x16xf32, #tpu.memory_space<vmem>>, vector<1x1x8x16xf32>,
    %518 = vector.extract_strided_slice %512 {offsets = [2, 0, 0], sizes = [1, 8, 16], strides = [1, 1, 1]} : vector<8x8x16xf32> to vector<1x8x16xf32>
    %519 = vector.shape_cast %518 : vector<1x8x16xf32> to vector<8x16xf32>
    %c2_210 = arith.constant 2 : index
    %c1_211 = arith.constant 1 : index
    %c0_212 = arith.constant 0 : index
    %c0_213 = arith.constant 0 : index
    %520 = vector.load %arg18[%c2_210, %c1_211, %c0_212, %c0_213] : memref<8x8x8x16xf32, #tpu.memory_space<vmem>>, vector<1x1x8x16xf32>
    %521 = vector.shape_cast %520 : vector<1x1x8x16xf32> to vector<8x16xf32>
    %522 = vector.shape_cast %519 : vector<8x16xf32> to vector<1x1x8x16xf32>
    tpu.vector_store %arg18[%c2_210, %c1_211, %c0_212, %c0_213], %522 {strides = array<i32>} : memref<8x8x8x16xf32, #tpu.memory_space<vmem>>, vector<1x1x8x16xf32>,
    %523 = vector.extract_strided_slice %512 {offsets = [3, 0, 0], sizes = [1, 8, 16], strides = [1, 1, 1]} : vector<8x8x16xf32> to vector<1x8x16xf32>
    %524 = vector.shape_cast %523 : vector<1x8x16xf32> to vector<8x16xf32>
    %c3_214 = arith.constant 3 : index
    %c2_215 = arith.constant 2 : index
    %c0_216 = arith.constant 0 : index
    %c0_217 = arith.constant 0 : index
    %525 = vector.load %arg18[%c3_214, %c2_215, %c0_216, %c0_217] : memref<8x8x8x16xf32, #tpu.memory_space<vmem>>, vector<1x1x8x16xf32>
    %526 = vector.shape_cast %525 : vector<1x1x8x16xf32> to vector<8x16xf32>
    %527 = vector.shape_cast %524 : vector<8x16xf32> to vector<1x1x8x16xf32>
    tpu.vector_store %arg18[%c3_214, %c2_215, %c0_216, %c0_217], %527 {strides = array<i32>} : memref<8x8x8x16xf32, #tpu.memory_space<vmem>>, vector<1x1x8x16xf32>,
    %528 = vector.extract_strided_slice %512 {offsets = [4, 0, 0], sizes = [1, 8, 16], strides = [1, 1, 1]} : vector<8x8x16xf32> to vector<1x8x16xf32>
    %529 = vector.shape_cast %528 : vector<1x8x16xf32> to vector<8x16xf32>
    %c4_218 = arith.constant 4 : index
    %c3_219 = arith.constant 3 : index
    %c0_220 = arith.constant 0 : index
    %c0_221 = arith.constant 0 : index
    %530 = vector.load %arg18[%c4_218, %c3_219, %c0_220, %c0_221] : memref<8x8x8x16xf32, #tpu.memory_space<vmem>>, vector<1x1x8x16xf32>
    %531 = vector.shape_cast %530 : vector<1x1x8x16xf32> to vector<8x16xf32>
    %532 = vector.shape_cast %529 : vector<8x16xf32> to vector<1x1x8x16xf32>
    tpu.vector_store %arg18[%c4_218, %c3_219, %c0_220, %c0_221], %532 {strides = array<i32>} : memref<8x8x8x16xf32, #tpu.memory_space<vmem>>, vector<1x1x8x16xf32>,
    %533 = vector.extract_strided_slice %512 {offsets = [5, 0, 0], sizes = [1, 8, 16], strides = [1, 1, 1]} : vector<8x8x16xf32> to vector<1x8x16xf32>
    %534 = vector.shape_cast %533 : vector<1x8x16xf32> to vector<8x16xf32>
    %c5_222 = arith.constant 5 : index
    %c4_223 = arith.constant 4 : index
    %c0_224 = arith.constant 0 : index
    %c0_225 = arith.constant 0 : index
    %535 = vector.load %arg18[%c5_222, %c4_223, %c0_224, %c0_225] : memref<8x8x8x16xf32, #tpu.memory_space<vmem>>, vector<1x1x8x16xf32>
    %536 = vector.shape_cast %535 : vector<1x1x8x16xf32> to vector<8x16xf32>
    %537 = vector.shape_cast %534 : vector<8x16xf32> to vector<1x1x8x16xf32>
    tpu.vector_store %arg18[%c5_222, %c4_223, %c0_224, %c0_225], %537 {strides = array<i32>} : memref<8x8x8x16xf32, #tpu.memory_space<vmem>>, vector<1x1x8x16xf32>,
    %538 = vector.extract_strided_slice %512 {offsets = [6, 0, 0], sizes = [1, 8, 16], strides = [1, 1, 1]} : vector<8x8x16xf32> to vector<1x8x16xf32>
    %539 = vector.shape_cast %538 : vector<1x8x16xf32> to vector<8x16xf32>
    %c6_226 = arith.constant 6 : index
    %c5_227 = arith.constant 5 : index
    %c0_228 = arith.constant 0 : index
    %c0_229 = arith.constant 0 : index
    %540 = vector.load %arg18[%c6_226, %c5_227, %c0_228, %c0_229] : memref<8x8x8x16xf32, #tpu.memory_space<vmem>>, vector<1x1x8x16xf32>
    %541 = vector.shape_cast %540 : vector<1x1x8x16xf32> to vector<8x16xf32>
    %542 = vector.shape_cast %539 : vector<8x16xf32> to vector<1x1x8x16xf32>
    tpu.vector_store %arg18[%c6_226, %c5_227, %c0_228, %c0_229], %542 {strides = array<i32>} : memref<8x8x8x16xf32, #tpu.memory_space<vmem>>, vector<1x1x8x16xf32>,
    %543 = vector.extract_strided_slice %512 {offsets = [7, 0, 0], sizes = [1, 8, 16], strides = [1, 1, 1]} : vector<8x8x16xf32> to vector<1x8x16xf32>
    %544 = vector.shape_cast %543 : vector<1x8x16xf32> to vector<8x16xf32>
    %c7_230 = arith.constant 7 : index
    %c6_231 = arith.constant 6 : index
    %c0_232 = arith.constant 0 : index
    %c0_233 = arith.constant 0 : index
    %545 = vector.load %arg18[%c7_230, %c6_231, %c0_232, %c0_233] : memref<8x8x8x16xf32, #tpu.memory_space<vmem>>, vector<1x1x8x16xf32>
    %546 = vector.shape_cast %545 : vector<1x1x8x16xf32> to vector<8x16xf32>
    %547 = vector.shape_cast %544 : vector<8x16xf32> to vector<1x1x8x16xf32>
    tpu.vector_store %arg18[%c7_230, %c6_231, %c0_232, %c0_233], %547 {strides = array<i32>} : memref<8x8x8x16xf32, #tpu.memory_space<vmem>>, vector<1x1x8x16xf32>,
    %548 = vector.shape_cast %512 : vector<8x8x16xf32> to vector<64x16xf32>
    %cst_234 = arith.constant dense<0.000000e+00> : vector<64x16xf32>
    %549 = tpu.matmul %548, %461, %cst_234 {dimension_numbers = #tpu.dot_dimension_numbers<[1], [0], [0], [1], [0, 0, 1, 1], [], []>} : vector<64x16xf32>, vector<16x16xf32>, vector<64x16xf32> -> vector<64x16xf32>
    %550 = vector.shape_cast %549 : vector<64x16xf32> to vector<8x8x16xf32>
    %cst_235 = arith.constant 0.000000e+00 : f32
    %551 = vector.broadcast %cst_235 : f32 to vector<2x8x16xf32>
    %552 = vector.extract_strided_slice %460 {offsets = [0, 0, 0], sizes = [6, 8, 16], strides = [1, 1, 1]} : vector<8x8x16xf32> to vector<6x8x16xf32>
    %553 = tpu.concatenate %551, %552 in 0 : vector<2x8x16xf32>, vector<6x8x16xf32> -> vector<8x8x16xf32>
    %554 = arith.addf %553, %550 : vector<8x8x16xf32>
    %555 = math.tanh %554 : vector<8x8x16xf32>
    %556 = vector.extract_strided_slice %555 {offsets = [2, 0, 0], sizes = [1, 8, 16], strides = [1, 1, 1]} : vector<8x8x16xf32> to vector<1x8x16xf32>
    %557 = vector.shape_cast %556 : vector<1x8x16xf32> to vector<8x16xf32>
    %c2_236 = arith.constant 2 : index
    %c0_237 = arith.constant 0 : index
    %c0_238 = arith.constant 0 : index
    %c0_239 = arith.constant 0 : index
    %558 = vector.load %arg18[%c2_236, %c0_237, %c0_238, %c0_239] : memref<8x8x8x16xf32, #tpu.memory_space<vmem>>, vector<1x1x8x16xf32>
    %559 = vector.shape_cast %558 : vector<1x1x8x16xf32> to vector<8x16xf32>
    %560 = vector.shape_cast %557 : vector<8x16xf32> to vector<1x1x8x16xf32>
    tpu.vector_store %arg18[%c2_236, %c0_237, %c0_238, %c0_239], %560 {strides = array<i32>} : memref<8x8x8x16xf32, #tpu.memory_space<vmem>>, vector<1x1x8x16xf32>,
    %561 = vector.extract_strided_slice %555 {offsets = [3, 0, 0], sizes = [1, 8, 16], strides = [1, 1, 1]} : vector<8x8x16xf32> to vector<1x8x16xf32>
    %562 = vector.shape_cast %561 : vector<1x8x16xf32> to vector<8x16xf32>
    %c3_240 = arith.constant 3 : index
    %c1_241 = arith.constant 1 : index
    %c0_242 = arith.constant 0 : index
    %c0_243 = arith.constant 0 : index
    %563 = vector.load %arg18[%c3_240, %c1_241, %c0_242, %c0_243] : memref<8x8x8x16xf32, #tpu.memory_space<vmem>>, vector<1x1x8x16xf32>
    %564 = vector.shape_cast %563 : vector<1x1x8x16xf32> to vector<8x16xf32>
    %565 = vector.shape_cast %562 : vector<8x16xf32> to vector<1x1x8x16xf32>
    tpu.vector_store %arg18[%c3_240, %c1_241, %c0_242, %c0_243], %565 {strides = array<i32>} : memref<8x8x8x16xf32, #tpu.memory_space<vmem>>, vector<1x1x8x16xf32>,
    %566 = vector.extract_strided_slice %555 {offsets = [4, 0, 0], sizes = [1, 8, 16], strides = [1, 1, 1]} : vector<8x8x16xf32> to vector<1x8x16xf32>
    %567 = vector.shape_cast %566 : vector<1x8x16xf32> to vector<8x16xf32>
    %c4_244 = arith.constant 4 : index
    %c2_245 = arith.constant 2 : index
    %c0_246 = arith.constant 0 : index
    %c0_247 = arith.constant 0 : index
    %568 = vector.load %arg18[%c4_244, %c2_245, %c0_246, %c0_247] : memref<8x8x8x16xf32, #tpu.memory_space<vmem>>, vector<1x1x8x16xf32>
    %569 = vector.shape_cast %568 : vector<1x1x8x16xf32> to vector<8x16xf32>
    %570 = vector.shape_cast %567 : vector<8x16xf32> to vector<1x1x8x16xf32>
    tpu.vector_store %arg18[%c4_244, %c2_245, %c0_246, %c0_247], %570 {strides = array<i32>} : memref<8x8x8x16xf32, #tpu.memory_space<vmem>>, vector<1x1x8x16xf32>,
    %571 = vector.extract_strided_slice %555 {offsets = [5, 0, 0], sizes = [1, 8, 16], strides = [1, 1, 1]} : vector<8x8x16xf32> to vector<1x8x16xf32>
    %572 = vector.shape_cast %571 : vector<1x8x16xf32> to vector<8x16xf32>
    %c5_248 = arith.constant 5 : index
    %c3_249 = arith.constant 3 : index
    %c0_250 = arith.constant 0 : index
    %c0_251 = arith.constant 0 : index
    %573 = vector.load %arg18[%c5_248, %c3_249, %c0_250, %c0_251] : memref<8x8x8x16xf32, #tpu.memory_space<vmem>>, vector<1x1x8x16xf32>
    %574 = vector.shape_cast %573 : vector<1x1x8x16xf32> to vector<8x16xf32>
    %575 = vector.shape_cast %572 : vector<8x16xf32> to vector<1x1x8x16xf32>
    tpu.vector_store %arg18[%c5_248, %c3_249, %c0_250, %c0_251], %575 {strides = array<i32>} : memref<8x8x8x16xf32, #tpu.memory_space<vmem>>, vector<1x1x8x16xf32>,
    %576 = vector.extract_strided_slice %555 {offsets = [6, 0, 0], sizes = [1, 8, 16], strides = [1, 1, 1]} : vector<8x8x16xf32> to vector<1x8x16xf32>
    %577 = vector.shape_cast %576 : vector<1x8x16xf32> to vector<8x16xf32>
    %c6_252 = arith.constant 6 : index
    %c4_253 = arith.constant 4 : index
    %c0_254 = arith.constant 0 : index
    %c0_255 = arith.constant 0 : index
    %578 = vector.load %arg18[%c6_252, %c4_253, %c0_254, %c0_255] : memref<8x8x8x16xf32, #tpu.memory_space<vmem>>, vector<1x1x8x16xf32>
    %579 = vector.shape_cast %578 : vector<1x1x8x16xf32> to vector<8x16xf32>
    %580 = vector.shape_cast %577 : vector<8x16xf32> to vector<1x1x8x16xf32>
    tpu.vector_store %arg18[%c6_252, %c4_253, %c0_254, %c0_255], %580 {strides = array<i32>} : memref<8x8x8x16xf32, #tpu.memory_space<vmem>>, vector<1x1x8x16xf32>,
    %581 = vector.extract_strided_slice %555 {offsets = [7, 0, 0], sizes = [1, 8, 16], strides = [1, 1, 1]} : vector<8x8x16xf32> to vector<1x8x16xf32>
    %582 = vector.shape_cast %581 : vector<1x8x16xf32> to vector<8x16xf32>
    %c7_256 = arith.constant 7 : index
    %c5_257 = arith.constant 5 : index
    %c0_258 = arith.constant 0 : index
    %c0_259 = arith.constant 0 : index
    %583 = vector.load %arg18[%c7_256, %c5_257, %c0_258, %c0_259] : memref<8x8x8x16xf32, #tpu.memory_space<vmem>>, vector<1x1x8x16xf32>
    %584 = vector.shape_cast %583 : vector<1x1x8x16xf32> to vector<8x16xf32>
    %585 = vector.shape_cast %582 : vector<8x16xf32> to vector<1x1x8x16xf32>
    tpu.vector_store %arg18[%c7_256, %c5_257, %c0_258, %c0_259], %585 {strides = array<i32>} : memref<8x8x8x16xf32, #tpu.memory_space<vmem>>, vector<1x1x8x16xf32>,
    %586 = vector.shape_cast %555 : vector<8x8x16xf32> to vector<64x16xf32>
    %cst_260 = arith.constant dense<0.000000e+00> : vector<64x16xf32>
    %587 = tpu.matmul %586, %461, %cst_260 {dimension_numbers = #tpu.dot_dimension_numbers<[1], [0], [0], [1], [0, 0, 1, 1], [], []>} : vector<64x16xf32>, vector<16x16xf32>, vector<64x16xf32> -> vector<64x16xf32>
    %588 = vector.shape_cast %587 : vector<64x16xf32> to vector<8x8x16xf32>
    %cst_261 = arith.constant 0.000000e+00 : f32
    %589 = vector.broadcast %cst_261 : f32 to vector<3x8x16xf32>
    %590 = vector.extract_strided_slice %460 {offsets = [0, 0, 0], sizes = [5, 8, 16], strides = [1, 1, 1]} : vector<8x8x16xf32> to vector<5x8x16xf32>
    %591 = tpu.concatenate %589, %590 in 0 : vector<3x8x16xf32>, vector<5x8x16xf32> -> vector<8x8x16xf32>
    %592 = arith.addf %591, %588 : vector<8x8x16xf32>
    %593 = math.tanh %592 : vector<8x8x16xf32>
    %594 = vector.extract_strided_slice %593 {offsets = [3, 0, 0], sizes = [1, 8, 16], strides = [1, 1, 1]} : vector<8x8x16xf32> to vector<1x8x16xf32>
    %595 = vector.shape_cast %594 : vector<1x8x16xf32> to vector<8x16xf32>
    %c3_262 = arith.constant 3 : index
    %c0_263 = arith.constant 0 : index
    %c0_264 = arith.constant 0 : index
    %c0_265 = arith.constant 0 : index
    %596 = vector.load %arg18[%c3_262, %c0_263, %c0_264, %c0_265] : memref<8x8x8x16xf32, #tpu.memory_space<vmem>>, vector<1x1x8x16xf32>
    %597 = vector.shape_cast %596 : vector<1x1x8x16xf32> to vector<8x16xf32>
    %598 = vector.shape_cast %595 : vector<8x16xf32> to vector<1x1x8x16xf32>
    tpu.vector_store %arg18[%c3_262, %c0_263, %c0_264, %c0_265], %598 {strides = array<i32>} : memref<8x8x8x16xf32, #tpu.memory_space<vmem>>, vector<1x1x8x16xf32>,
    %599 = vector.extract_strided_slice %593 {offsets = [4, 0, 0], sizes = [1, 8, 16], strides = [1, 1, 1]} : vector<8x8x16xf32> to vector<1x8x16xf32>
    %600 = vector.shape_cast %599 : vector<1x8x16xf32> to vector<8x16xf32>
    %c4_266 = arith.constant 4 : index
    %c1_267 = arith.constant 1 : index
    %c0_268 = arith.constant 0 : index
    %c0_269 = arith.constant 0 : index
    %601 = vector.load %arg18[%c4_266, %c1_267, %c0_268, %c0_269] : memref<8x8x8x16xf32, #tpu.memory_space<vmem>>, vector<1x1x8x16xf32>
    %602 = vector.shape_cast %601 : vector<1x1x8x16xf32> to vector<8x16xf32>
    %603 = vector.shape_cast %600 : vector<8x16xf32> to vector<1x1x8x16xf32>
    tpu.vector_store %arg18[%c4_266, %c1_267, %c0_268, %c0_269], %603 {strides = array<i32>} : memref<8x8x8x16xf32, #tpu.memory_space<vmem>>, vector<1x1x8x16xf32>,
    %604 = vector.extract_strided_slice %593 {offsets = [5, 0, 0], sizes = [1, 8, 16], strides = [1, 1, 1]} : vector<8x8x16xf32> to vector<1x8x16xf32>
    %605 = vector.shape_cast %604 : vector<1x8x16xf32> to vector<8x16xf32>
    %c5_270 = arith.constant 5 : index
    %c2_271 = arith.constant 2 : index
    %c0_272 = arith.constant 0 : index
    %c0_273 = arith.constant 0 : index
    %606 = vector.load %arg18[%c5_270, %c2_271, %c0_272, %c0_273] : memref<8x8x8x16xf32, #tpu.memory_space<vmem>>, vector<1x1x8x16xf32>
    %607 = vector.shape_cast %606 : vector<1x1x8x16xf32> to vector<8x16xf32>
    %608 = vector.shape_cast %605 : vector<8x16xf32> to vector<1x1x8x16xf32>
    tpu.vector_store %arg18[%c5_270, %c2_271, %c0_272, %c0_273], %608 {strides = array<i32>} : memref<8x8x8x16xf32, #tpu.memory_space<vmem>>, vector<1x1x8x16xf32>,
    %609 = vector.extract_strided_slice %593 {offsets = [6, 0, 0], sizes = [1, 8, 16], strides = [1, 1, 1]} : vector<8x8x16xf32> to vector<1x8x16xf32>
    %610 = vector.shape_cast %609 : vector<1x8x16xf32> to vector<8x16xf32>
    %c6_274 = arith.constant 6 : index
    %c3_275 = arith.constant 3 : index
    %c0_276 = arith.constant 0 : index
    %c0_277 = arith.constant 0 : index
    %611 = vector.load %arg18[%c6_274, %c3_275, %c0_276, %c0_277] : memref<8x8x8x16xf32, #tpu.memory_space<vmem>>, vector<1x1x8x16xf32>
    %612 = vector.shape_cast %611 : vector<1x1x8x16xf32> to vector<8x16xf32>
    %613 = vector.shape_cast %610 : vector<8x16xf32> to vector<1x1x8x16xf32>
    tpu.vector_store %arg18[%c6_274, %c3_275, %c0_276, %c0_277], %613 {strides = array<i32>} : memref<8x8x8x16xf32, #tpu.memory_space<vmem>>, vector<1x1x8x16xf32>,
    %614 = vector.extract_strided_slice %593 {offsets = [7, 0, 0], sizes = [1, 8, 16], strides = [1, 1, 1]} : vector<8x8x16xf32> to vector<1x8x16xf32>
    %615 = vector.shape_cast %614 : vector<1x8x16xf32> to vector<8x16xf32>
    %c7_278 = arith.constant 7 : index
    %c4_279 = arith.constant 4 : index
    %c0_280 = arith.constant 0 : index
    %c0_281 = arith.constant 0 : index
    %616 = vector.load %arg18[%c7_278, %c4_279, %c0_280, %c0_281] : memref<8x8x8x16xf32, #tpu.memory_space<vmem>>, vector<1x1x8x16xf32>
    %617 = vector.shape_cast %616 : vector<1x1x8x16xf32> to vector<8x16xf32>
    %618 = vector.shape_cast %615 : vector<8x16xf32> to vector<1x1x8x16xf32>
    tpu.vector_store %arg18[%c7_278, %c4_279, %c0_280, %c0_281], %618 {strides = array<i32>} : memref<8x8x8x16xf32, #tpu.memory_space<vmem>>, vector<1x1x8x16xf32>,
    %619 = vector.shape_cast %593 : vector<8x8x16xf32> to vector<64x16xf32>
    %cst_282 = arith.constant dense<0.000000e+00> : vector<64x16xf32>
    %620 = tpu.matmul %619, %461, %cst_282 {dimension_numbers = #tpu.dot_dimension_numbers<[1], [0], [0], [1], [0, 0, 1, 1], [], []>} : vector<64x16xf32>, vector<16x16xf32>, vector<64x16xf32> -> vector<64x16xf32>
    %621 = vector.shape_cast %620 : vector<64x16xf32> to vector<8x8x16xf32>
    %cst_283 = arith.constant 0.000000e+00 : f32
    %622 = vector.broadcast %cst_283 : f32 to vector<4x8x16xf32>
    %623 = vector.extract_strided_slice %460 {offsets = [0, 0, 0], sizes = [4, 8, 16], strides = [1, 1, 1]} : vector<8x8x16xf32> to vector<4x8x16xf32>
    %624 = tpu.concatenate %622, %623 in 0 : vector<4x8x16xf32>, vector<4x8x16xf32> -> vector<8x8x16xf32>
    %625 = arith.addf %624, %621 : vector<8x8x16xf32>
    %626 = math.tanh %625 : vector<8x8x16xf32>
    %627 = vector.extract_strided_slice %626 {offsets = [4, 0, 0], sizes = [1, 8, 16], strides = [1, 1, 1]} : vector<8x8x16xf32> to vector<1x8x16xf32>
    %628 = vector.shape_cast %627 : vector<1x8x16xf32> to vector<8x16xf32>
    %c4_284 = arith.constant 4 : index
    %c0_285 = arith.constant 0 : index
    %c0_286 = arith.constant 0 : index
    %c0_287 = arith.constant 0 : index
    %629 = vector.load %arg18[%c4_284, %c0_285, %c0_286, %c0_287] : memref<8x8x8x16xf32, #tpu.memory_space<vmem>>, vector<1x1x8x16xf32>
    %630 = vector.shape_cast %629 : vector<1x1x8x16xf32> to vector<8x16xf32>
    %631 = vector.shape_cast %628 : vector<8x16xf32> to vector<1x1x8x16xf32>
    tpu.vector_store %arg18[%c4_284, %c0_285, %c0_286, %c0_287], %631 {strides = array<i32>} : memref<8x8x8x16xf32, #tpu.memory_space<vmem>>, vector<1x1x8x16xf32>,
    %632 = vector.extract_strided_slice %626 {offsets = [5, 0, 0], sizes = [1, 8, 16], strides = [1, 1, 1]} : vector<8x8x16xf32> to vector<1x8x16xf32>
    %633 = vector.shape_cast %632 : vector<1x8x16xf32> to vector<8x16xf32>
    %c5_288 = arith.constant 5 : index
    %c1_289 = arith.constant 1 : index
    %c0_290 = arith.constant 0 : index
    %c0_291 = arith.constant 0 : index
    %634 = vector.load %arg18[%c5_288, %c1_289, %c0_290, %c0_291] : memref<8x8x8x16xf32, #tpu.memory_space<vmem>>, vector<1x1x8x16xf32>
    %635 = vector.shape_cast %634 : vector<1x1x8x16xf32> to vector<8x16xf32>
    %636 = vector.shape_cast %633 : vector<8x16xf32> to vector<1x1x8x16xf32>
    tpu.vector_store %arg18[%c5_288, %c1_289, %c0_290, %c0_291], %636 {strides = array<i32>} : memref<8x8x8x16xf32, #tpu.memory_space<vmem>>, vector<1x1x8x16xf32>,
    %637 = vector.extract_strided_slice %626 {offsets = [6, 0, 0], sizes = [1, 8, 16], strides = [1, 1, 1]} : vector<8x8x16xf32> to vector<1x8x16xf32>
    %638 = vector.shape_cast %637 : vector<1x8x16xf32> to vector<8x16xf32>
    %c6_292 = arith.constant 6 : index
    %c2_293 = arith.constant 2 : index
    %c0_294 = arith.constant 0 : index
    %c0_295 = arith.constant 0 : index
    %639 = vector.load %arg18[%c6_292, %c2_293, %c0_294, %c0_295] : memref<8x8x8x16xf32, #tpu.memory_space<vmem>>, vector<1x1x8x16xf32>
    %640 = vector.shape_cast %639 : vector<1x1x8x16xf32> to vector<8x16xf32>
    %641 = vector.shape_cast %638 : vector<8x16xf32> to vector<1x1x8x16xf32>
    tpu.vector_store %arg18[%c6_292, %c2_293, %c0_294, %c0_295], %641 {strides = array<i32>} : memref<8x8x8x16xf32, #tpu.memory_space<vmem>>, vector<1x1x8x16xf32>,
    %642 = vector.extract_strided_slice %626 {offsets = [7, 0, 0], sizes = [1, 8, 16], strides = [1, 1, 1]} : vector<8x8x16xf32> to vector<1x8x16xf32>
    %643 = vector.shape_cast %642 : vector<1x8x16xf32> to vector<8x16xf32>
    %c7_296 = arith.constant 7 : index
    %c3_297 = arith.constant 3 : index
    %c0_298 = arith.constant 0 : index
    %c0_299 = arith.constant 0 : index
    %644 = vector.load %arg18[%c7_296, %c3_297, %c0_298, %c0_299] : memref<8x8x8x16xf32, #tpu.memory_space<vmem>>, vector<1x1x8x16xf32>
    %645 = vector.shape_cast %644 : vector<1x1x8x16xf32> to vector<8x16xf32>
    %646 = vector.shape_cast %643 : vector<8x16xf32> to vector<1x1x8x16xf32>
    tpu.vector_store %arg18[%c7_296, %c3_297, %c0_298, %c0_299], %646 {strides = array<i32>} : memref<8x8x8x16xf32, #tpu.memory_space<vmem>>, vector<1x1x8x16xf32>,
    %647 = vector.shape_cast %626 : vector<8x8x16xf32> to vector<64x16xf32>
    %cst_300 = arith.constant dense<0.000000e+00> : vector<64x16xf32>
    %648 = tpu.matmul %647, %461, %cst_300 {dimension_numbers = #tpu.dot_dimension_numbers<[1], [0], [0], [1], [0, 0, 1, 1], [], []>} : vector<64x16xf32>, vector<16x16xf32>, vector<64x16xf32> -> vector<64x16xf32>
    %649 = vector.shape_cast %648 : vector<64x16xf32> to vector<8x8x16xf32>
    %cst_301 = arith.constant 0.000000e+00 : f32
    %650 = vector.broadcast %cst_301 : f32 to vector<5x8x16xf32>
    %651 = vector.extract_strided_slice %460 {offsets = [0, 0, 0], sizes = [3, 8, 16], strides = [1, 1, 1]} : vector<8x8x16xf32> to vector<3x8x16xf32>
    %652 = tpu.concatenate %650, %651 in 0 : vector<5x8x16xf32>, vector<3x8x16xf32> -> vector<8x8x16xf32>
    %653 = arith.addf %652, %649 : vector<8x8x16xf32>
    %654 = math.tanh %653 : vector<8x8x16xf32>
    %655 = vector.extract_strided_slice %654 {offsets = [5, 0, 0], sizes = [1, 8, 16], strides = [1, 1, 1]} : vector<8x8x16xf32> to vector<1x8x16xf32>
    %656 = vector.shape_cast %655 : vector<1x8x16xf32> to vector<8x16xf32>
    %c5_302 = arith.constant 5 : index
    %c0_303 = arith.constant 0 : index
    %c0_304 = arith.constant 0 : index
    %c0_305 = arith.constant 0 : index
    %657 = vector.load %arg18[%c5_302, %c0_303, %c0_304, %c0_305] : memref<8x8x8x16xf32, #tpu.memory_space<vmem>>, vector<1x1x8x16xf32>
    %658 = vector.shape_cast %657 : vector<1x1x8x16xf32> to vector<8x16xf32>
    %659 = vector.shape_cast %656 : vector<8x16xf32> to vector<1x1x8x16xf32>
    tpu.vector_store %arg18[%c5_302, %c0_303, %c0_304, %c0_305], %659 {strides = array<i32>} : memref<8x8x8x16xf32, #tpu.memory_space<vmem>>, vector<1x1x8x16xf32>,
    %660 = vector.extract_strided_slice %654 {offsets = [6, 0, 0], sizes = [1, 8, 16], strides = [1, 1, 1]} : vector<8x8x16xf32> to vector<1x8x16xf32>
    %661 = vector.shape_cast %660 : vector<1x8x16xf32> to vector<8x16xf32>
    %c6_306 = arith.constant 6 : index
    %c1_307 = arith.constant 1 : index
    %c0_308 = arith.constant 0 : index
    %c0_309 = arith.constant 0 : index
    %662 = vector.load %arg18[%c6_306, %c1_307, %c0_308, %c0_309] : memref<8x8x8x16xf32, #tpu.memory_space<vmem>>, vector<1x1x8x16xf32>
    %663 = vector.shape_cast %662 : vector<1x1x8x16xf32> to vector<8x16xf32>
    %664 = vector.shape_cast %661 : vector<8x16xf32> to vector<1x1x8x16xf32>
    tpu.vector_store %arg18[%c6_306, %c1_307, %c0_308, %c0_309], %664 {strides = array<i32>} : memref<8x8x8x16xf32, #tpu.memory_space<vmem>>, vector<1x1x8x16xf32>,
    %665 = vector.extract_strided_slice %654 {offsets = [7, 0, 0], sizes = [1, 8, 16], strides = [1, 1, 1]} : vector<8x8x16xf32> to vector<1x8x16xf32>
    %666 = vector.shape_cast %665 : vector<1x8x16xf32> to vector<8x16xf32>
    %c7_310 = arith.constant 7 : index
    %c2_311 = arith.constant 2 : index
    %c0_312 = arith.constant 0 : index
    %c0_313 = arith.constant 0 : index
    %667 = vector.load %arg18[%c7_310, %c2_311, %c0_312, %c0_313] : memref<8x8x8x16xf32, #tpu.memory_space<vmem>>, vector<1x1x8x16xf32>
    %668 = vector.shape_cast %667 : vector<1x1x8x16xf32> to vector<8x16xf32>
    %669 = vector.shape_cast %666 : vector<8x16xf32> to vector<1x1x8x16xf32>
    tpu.vector_store %arg18[%c7_310, %c2_311, %c0_312, %c0_313], %669 {strides = array<i32>} : memref<8x8x8x16xf32, #tpu.memory_space<vmem>>, vector<1x1x8x16xf32>,
    %670 = vector.shape_cast %654 : vector<8x8x16xf32> to vector<64x16xf32>
    %cst_314 = arith.constant dense<0.000000e+00> : vector<64x16xf32>
    %671 = tpu.matmul %670, %461, %cst_314 {dimension_numbers = #tpu.dot_dimension_numbers<[1], [0], [0], [1], [0, 0, 1, 1], [], []>} : vector<64x16xf32>, vector<16x16xf32>, vector<64x16xf32> -> vector<64x16xf32>
    %672 = vector.shape_cast %671 : vector<64x16xf32> to vector<8x8x16xf32>
    %cst_315 = arith.constant 0.000000e+00 : f32
    %673 = vector.broadcast %cst_315 : f32 to vector<6x8x16xf32>
    %674 = vector.extract_strided_slice %460 {offsets = [0, 0, 0], sizes = [2, 8, 16], strides = [1, 1, 1]} : vector<8x8x16xf32> to vector<2x8x16xf32>
    %675 = tpu.concatenate %673, %674 in 0 : vector<6x8x16xf32>, vector<2x8x16xf32> -> vector<8x8x16xf32>
    %676 = arith.addf %675, %672 : vector<8x8x16xf32>
    %677 = math.tanh %676 : vector<8x8x16xf32>
    %678 = vector.extract_strided_slice %677 {offsets = [6, 0, 0], sizes = [1, 8, 16], strides = [1, 1, 1]} : vector<8x8x16xf32> to vector<1x8x16xf32>
    %679 = vector.shape_cast %678 : vector<1x8x16xf32> to vector<8x16xf32>
    %c6_316 = arith.constant 6 : index
    %c0_317 = arith.constant 0 : index
    %c0_318 = arith.constant 0 : index
    %c0_319 = arith.constant 0 : index
    %680 = vector.load %arg18[%c6_316, %c0_317, %c0_318, %c0_319] : memref<8x8x8x16xf32, #tpu.memory_space<vmem>>, vector<1x1x8x16xf32>
    %681 = vector.shape_cast %680 : vector<1x1x8x16xf32> to vector<8x16xf32>
    %682 = vector.shape_cast %679 : vector<8x16xf32> to vector<1x1x8x16xf32>
    tpu.vector_store %arg18[%c6_316, %c0_317, %c0_318, %c0_319], %682 {strides = array<i32>} : memref<8x8x8x16xf32, #tpu.memory_space<vmem>>, vector<1x1x8x16xf32>,
    %683 = vector.extract_strided_slice %677 {offsets = [7, 0, 0], sizes = [1, 8, 16], strides = [1, 1, 1]} : vector<8x8x16xf32> to vector<1x8x16xf32>
    %684 = vector.shape_cast %683 : vector<1x8x16xf32> to vector<8x16xf32>
    %c7_320 = arith.constant 7 : index
    %c1_321 = arith.constant 1 : index
    %c0_322 = arith.constant 0 : index
    %c0_323 = arith.constant 0 : index
    %685 = vector.load %arg18[%c7_320, %c1_321, %c0_322, %c0_323] : memref<8x8x8x16xf32, #tpu.memory_space<vmem>>, vector<1x1x8x16xf32>
    %686 = vector.shape_cast %685 : vector<1x1x8x16xf32> to vector<8x16xf32>
    %687 = vector.shape_cast %684 : vector<8x16xf32> to vector<1x1x8x16xf32>
    tpu.vector_store %arg18[%c7_320, %c1_321, %c0_322, %c0_323], %687 {strides = array<i32>} : memref<8x8x8x16xf32, #tpu.memory_space<vmem>>, vector<1x1x8x16xf32>,
    %688 = vector.shape_cast %677 : vector<8x8x16xf32> to vector<64x16xf32>
    %cst_324 = arith.constant dense<0.000000e+00> : vector<64x16xf32>
    %689 = tpu.matmul %688, %461, %cst_324 {dimension_numbers = #tpu.dot_dimension_numbers<[1], [0], [0], [1], [0, 0, 1, 1], [], []>} : vector<64x16xf32>, vector<16x16xf32>, vector<64x16xf32> -> vector<64x16xf32>
    %690 = vector.shape_cast %689 : vector<64x16xf32> to vector<8x8x16xf32>
    %cst_325 = arith.constant 0.000000e+00 : f32
    %691 = vector.broadcast %cst_325 : f32 to vector<7x8x16xf32>
    %692 = vector.extract_strided_slice %460 {offsets = [0, 0, 0], sizes = [1, 8, 16], strides = [1, 1, 1]} : vector<8x8x16xf32> to vector<1x8x16xf32>
    %693 = tpu.concatenate %691, %692 in 0 : vector<7x8x16xf32>, vector<1x8x16xf32> -> vector<8x8x16xf32>
    %694 = arith.addf %693, %690 : vector<8x8x16xf32>
    %695 = math.tanh %694 : vector<8x8x16xf32>
    %696 = vector.extract_strided_slice %695 {offsets = [7, 0, 0], sizes = [1, 8, 16], strides = [1, 1, 1]} : vector<8x8x16xf32> to vector<1x8x16xf32>
    %697 = vector.shape_cast %696 : vector<1x8x16xf32> to vector<8x16xf32>
    %c7_326 = arith.constant 7 : index
    %c0_327 = arith.constant 0 : index
    %c0_328 = arith.constant 0 : index
    %c0_329 = arith.constant 0 : index
    %698 = vector.load %arg18[%c7_326, %c0_327, %c0_328, %c0_329] : memref<8x8x8x16xf32, #tpu.memory_space<vmem>>, vector<1x1x8x16xf32>
    %699 = vector.shape_cast %698 : vector<1x1x8x16xf32> to vector<8x16xf32>
    %700 = vector.shape_cast %697 : vector<8x16xf32> to vector<1x1x8x16xf32>
    tpu.vector_store %arg18[%c7_326, %c0_327, %c0_328, %c0_329], %700 {strides = array<i32>} : memref<8x8x8x16xf32, #tpu.memory_space<vmem>>, vector<1x1x8x16xf32>,
    return
  }
  func.func @transform_0(%arg0: i32) -> (i32, i32) {
    %c0_i32 = arith.constant 0 : i32
    %c0_i32_0 = arith.constant 0 : i32
    %c0_i32_1 = arith.constant 0 : i32
    return %c0_i32, %c0_i32_0 : i32, i32
  }
  func.func @transform_1(%arg0: i32) -> (i32, i32, i32) {
    %c0_i32 = arith.constant 0 : i32
    %c0_i32_0 = arith.constant 0 : i32
    %c0_i32_1 = arith.constant 0 : i32
    %c0_i32_2 = arith.constant 0 : i32
    return %c0_i32, %c0_i32_0, %c0_i32_1 : i32, i32, i32
  }
  func.func @transform_2(%arg0: i32) -> (i32, i32, i32) {
    %c0_i32 = arith.constant 0 : i32
    %c0_i32_0 = arith.constant 0 : i32
    %c0_i32_1 = arith.constant 0 : i32
    %c0_i32_2 = arith.constant 0 : i32
    return %c0_i32, %c0_i32_0, %c0_i32_1 : i32, i32, i32
  }
  func.func @transform_3(%arg0: i32) -> (i32, i32, i32) {
    %c0_i32 = arith.constant 0 : i32
    %c0_i32_0 = arith.constant 0 : i32
    %c0_i32_1 = arith.constant 0 : i32
    %c0_i32_2 = arith.constant 0 : i32
    return %c0_i32, %c0_i32_0, %c0_i32_1 : i32, i32, i32
  }
  func.func @transform_4(%arg0: i32) -> (i32, i32) {
    %c0_i32 = arith.constant 0 : i32
    %c0_i32_0 = arith.constant 0 : i32
    %c0_i32_1 = arith.constant 0 : i32
    return %c0_i32, %c0_i32_0 : i32, i32
  }
  func.func @transform_5(%arg0: i32) -> (i32, i32) {
    %c0_i32 = arith.constant 0 : i32
    %c0_i32_0 = arith.constant 0 : i32
    %c0_i32_1 = arith.constant 0 : i32
    return %c0_i32, %c0_i32_0 : i32, i32
  }
  func.func @transform_6(%arg0: i32) -> (i32, i32) {
    %c0_i32 = arith.constant 0 : i32
    %c0_i32_0 = arith.constant 0 : i32
    %c0_i32_1 = arith.constant 0 : i32
    return %c0_i32, %c0_i32_0 : i32, i32
  }
  func.func @transform_7(%arg0: i32) -> (i32, i32) {
    %c0_i32 = arith.constant 0 : i32
    %c0_i32_0 = arith.constant 0 : i32
    %c0_i32_1 = arith.constant 0 : i32
    return %c0_i32, %c0_i32_0 : i32, i32
  }
  func.func @transform_8(%arg0: i32) -> (i32, i32) {
    %c0_i32 = arith.constant 0 : i32
    %c0_i32_0 = arith.constant 0 : i32
    %c0_i32_1 = arith.constant 0 : i32
    return %c0_i32, %c0_i32_0 : i32, i32
  }
  func.func @transform_9(%arg0: i32) -> (i32, i32) {
    %c0_i32 = arith.constant 0 : i32
    %c0_i32_0 = arith.constant 0 : i32
    %c0_i32_1 = arith.constant 0 : i32
    return %c0_i32, %c0_i32_0 : i32, i32
  }
  func.func @transform_10(%arg0: i32) -> (i32, i32) {
    %c0_i32 = arith.constant 0 : i32
    %c0_i32_0 = arith.constant 0 : i32
    %c0_i32_1 = arith.constant 0 : i32
    return %c0_i32, %c0_i32_0 : i32, i32
  }
  func.func @transform_11(%arg0: i32) -> (i32, i32) {
    %c0_i32 = arith.constant 0 : i32
    %c0_i32_0 = arith.constant 0 : i32
    %c0_i32_1 = arith.constant 0 : i32
    return %c0_i32, %c0_i32_0 : i32, i32
  }
  func.func @transform_12(%arg0: i32) -> (i32, i32) {
    %c0_i32 = arith.constant 0 : i32
    %c0_i32_0 = arith.constant 0 : i32
    %c0_i32_1 = arith.constant 0 : i32
    return %c0_i32, %c0_i32_0 : i32, i32
  }
  func.func @transform_13(%arg0: i32) -> (i32, i32, i32) {
    %c0_i32 = arith.constant 0 : i32
    %c0_i32_0 = arith.constant 0 : i32
    %c0_i32_1 = arith.constant 0 : i32
    %c0_i32_2 = arith.constant 0 : i32
    return %c0_i32, %c0_i32_0, %c0_i32_1 : i32, i32, i32
  }
  func.func @transform_14(%arg0: i32) -> (i32, i32, i32) {
    %c0_i32 = arith.constant 0 : i32
    %c0_i32_0 = arith.constant 0 : i32
    %c0_i32_1 = arith.constant 0 : i32
    %c0_i32_2 = arith.constant 0 : i32
    return %c0_i32, %c0_i32_0, %c0_i32_1 : i32, i32, i32
  }
  func.func @transform_15(%arg0: i32) -> (i32, i32, i32) {
    %c0_i32 = arith.constant 0 : i32
    %c0_i32_0 = arith.constant 0 : i32
    %c0_i32_1 = arith.constant 0 : i32
    %c0_i32_2 = arith.constant 0 : i32
    return %c0_i32, %c0_i32_0, %c0_i32_1 : i32, i32, i32
  }
  func.func @transform_16(%arg0: i32) -> (i32, i32, i32) {
    %c0_i32 = arith.constant 0 : i32
    %c0_i32_0 = arith.constant 0 : i32
    %c0_i32_1 = arith.constant 0 : i32
    %c0_i32_2 = arith.constant 0 : i32
    return %c0_i32, %c0_i32_0, %c0_i32_1 : i32, i32, i32
  }
  func.func @transform_17(%arg0: i32) -> (i32, i32, i32, i32) {
    %c0_i32 = arith.constant 0 : i32
    %c0_i32_0 = arith.constant 0 : i32
    %c0_i32_1 = arith.constant 0 : i32
    %c0_i32_2 = arith.constant 0 : i32
    %c0_i32_3 = arith.constant 0 : i32
    return %c0_i32, %c0_i32_0, %c0_i32_1, %c0_i32_2 : i32, i32, i32, i32
  }
}

</mosaic_0001>

<bundles_post_ra>
// kernel: tpu_custom_call.1
= control target key start
LH: loop header
LB: loop body
LE: loop exit
PB: predicated region body
PF: predicated region fallthrough
CT: control target
= control target key end

     0   :  { %s7099_s0 = inlined_call_operand.vmem [shape: f32[64,32], index: 0, kind: input, shape index: {}]   ;;  %s7100_s1 = inlined_call_operand.vmem [shape: f32[2,32,128], index: 1, kind: input, shape index: {}]   ;;  %s7101_s2 = inlined_call_operand.vmem [shape: f32[2,32,128], index: 2, kind: input, shape index: {}]   ;;  %s7102_s3 = inlined_call_operand.vmem [shape: f32[2,1,128], index: 3, kind: input, shape index: {}]   ;;  %s7103_s4 = inlined_call_operand.vmem [shape: f32[32,16], index: 4, kind: input, shape index: {}]   ;;  %s7104_s5 = inlined_call_operand.hbm [shape: f32[16,16], index: 5, kind: input, shape index: {}]   ;;  %s7105_s6 = inlined_call_operand.hbm [shape: f32[1,16], index: 6, kind: input, shape index: {}]   ;;  %s7106_s7 = inlined_call_operand.vmem [shape: f32[32,16], index: 7, kind: input, shape index: {}]   ;;  %s7107_s8 = inlined_call_operand.hbm [shape: f32[16,16], index: 8, kind: input, shape index: {}]   ;;  %s7108_s9 = inlined_call_operand.hbm [shape: f32[1,16], index: 9, kind: input, shape index: {}]   ;;  %s7109_s10 = inlined_call_operand.vmem [shape: f32[32,32], index: 10, kind: input, shape index: {}]   ;;  %s7110_s11 = inlined_call_operand.vmem [shape: f32[16,32], index: 11, kind: input, shape index: {}]   ;;  %s7111_s12 = inlined_call_operand.vmem [shape: f32[1,32], index: 12, kind: input, shape index: {}]   ;;  %s7112_s13 = inlined_call_operand.hbm [shape: f32[8,8,32], index: 13, kind: output, shape index: {0}]   ;;  %s7113_s14 = inlined_call_operand.hbm [shape: f32[8,8,32], index: 14, kind: output, shape index: {1}]   ;;  %s7114_s15 = inlined_call_operand.hbm [shape: f32[8,8,32], index: 15, kind: output, shape index: {2}]   ;;  %s7115_s16 = inlined_call_operand.hbm [shape: f32[8,8,16], index: 16, kind: output, shape index: {3}]   ;;  %s7116_s17 = inlined_call_operand.hbm [shape: f32[8,8,8,16], index: 17, kind: output, shape index: {4}]  }
   0x1   :  { %7119 = sst [smem:[#allocation24_spill]] %s7099_s0 }
   0x2   :  { %7120 = sst [smem:[#allocation25_spill]] %s7100_s1 }
   0x3   :  { %23 = vsyncpa [#allocation4], 0 }
   0x4   :  { %24 = vsyncpa [#allocation7], 0 }
   0x5   :  { %25 = vsyncpa [#allocation10], 0 }
   0x6   :  { %26 = vsyncpa [#allocation5], 0 }
   0x7   :  { %27 = vsyncpa [#allocation13], 0 }
   0x8   :  { %28 = vsyncpa [#allocation16], 0  ;;  %s5973_s24 = smov [#allocation6]   ;;  %s5974_s26 = smov [#allocation3]  }
   0x9   :  { %s57_s25 = sshll.u32 %s5973_s24, 4  ;;  %s44_s27 = sshll.u32 %s5974_s26, 4  ;;  %s58_s25 = int_to_ptr.vmem [resolvable:$true] %s57_s25  ;;  %s6079_s27 = int_to_ptr.vmem [resolvable:$true] %s44_s27 }
   0xa   :  { %s5763_s0 = scalar_lea.hbm %s7105_s6, 16 }
   0xb   :  { %p5764_p0 = scmp.ne.s32.totalorder %s7105_s6, %s5763_s0  ;;  %p5767_p1 = scmp.lt.u32.totalorder %s5763_s0, %s7105_s6 }
   0xd   :  { %p5769_p2 = pnand %p5767_p1, %p5764_p0 }
   0xf   :  { %5772 = shalt.err (!%p5769_p2)
}
  0x10   :  { %s5773_s20 = scalar_lea.vmem %s58_s25, 16  ;;  %s5777_s21 = scalar_lea.vmem %s58_s25, 32 }
  0x11   :  { %p5774_p3 = scmp.ne.s32.totalorder %s58_s25, %s5773_s20  ;;  %p5778_p4 = scmp.lt.s32.totalorder %s58_s25, %s58_s25 }
  0x12   :  { %p5779_p5 = scmp.lt.s32.totalorder %s5777_s21, %s5773_s20 }
  0x14   :  { %p5780_p6 = por %p5779_p5, %p5778_p4 }
  0x16   :  { %p5781_p7 = pnand %p5780_p6, %p5774_p3 }
  0x18   :  { %5784 = shalt.err (!%p5781_p7)
}
  0x19   :  { %60 = dma.hbm_to_vmem [thread:$0]  %s7105_s6, 16, %s58_s25, [#allocation7]  }
  0x1a   :  { %s5785_s28 = scalar_lea.hbm %s7104_s5, 256 }
  0x1b   :  { %p5786_p8 = scmp.ne.s32.totalorder %s7104_s5, %s5785_s28  ;;  %p5789_p9 = scmp.lt.u32.totalorder %s5785_s28, %s7104_s5 }
  0x1d   :  { %p5791_p10 = pnand %p5789_p9, %p5786_p8 }
  0x1f   :  { %5794 = shalt.err (!%p5791_p10)
}
  0x20   :  { %s5795_s19 = scalar_lea.vmem %s6079_s27, 256  ;;  %p5800_p12 = scmp.lt.s32.totalorder %s6079_s27, %s6079_s27 }
  0x21   :  { %p5796_p11 = scmp.ne.s32.totalorder %s6079_s27, %s5795_s19  ;;  %p5801_p13 = scmp.lt.s32.totalorder %s5795_s19, %s5795_s19 }
  0x23   :  { %p5802_p0 = por %p5801_p13, %p5800_p12 }
  0x25   :  { %p5803_p1 = pnand %p5802_p0, %p5796_p11 }
  0x27   :  { %5806 = shalt.err (!%p5803_p1)
}
  0x28   :  { %s5975_s6 = smov 128   ;;  %s5976_s25 = smov 8  }
  0x29   :  { %50 = dma.hbm_to_vmem [thread:$0]  %s7104_s5, 256, %s6079_s27, [#allocation4], %s5975_s6, %s5975_s6, %s5976_s25  }
  0x2a   :  { %s5977_s21 = smov [#allocation8]   ;;  %s5978_s23 = smov [#allocation9]  }
  0x2b   :  { %s68_s22 = sshll.u32 %s5977_s21, 4  ;;  %s81_s24 = sshll.u32 %s5978_s23, 4  ;;  %s69_s22 = int_to_ptr.vmem [resolvable:$true] %s68_s22  ;;  %s82_s24 = int_to_ptr.vmem [resolvable:$true] %s81_s24 }
  0x2c   :  { %s5807_s29 = scalar_lea.hbm %s7107_s8, 256 }
  0x2d   :  { %p5808_p2 = scmp.ne.s32.totalorder %s7107_s8, %s5807_s29  ;;  %p5811_p3 = scmp.lt.u32.totalorder %s5807_s29, %s7107_s8 }
  0x2f   :  { %p5813_p4 = pnand %p5811_p3, %p5808_p2 }
  0x31   :  { %5816 = shalt.err (!%p5813_p4)
}
  0x32   :  { %s5817_s5 = scalar_lea.vmem %s69_s22, 256  ;;  %p5822_p6 = scmp.lt.s32.totalorder %s69_s22, %s69_s22 }
  0x33   :  { %p5818_p5 = scmp.ne.s32.totalorder %s69_s22, %s5817_s5  ;;  %p5823_p7 = scmp.lt.s32.totalorder %s5817_s5, %s5817_s5 }
  0x35   :  { %p5824_p8 = por %p5823_p7, %p5822_p6 }
  0x37   :  { %p5825_p9 = pnand %p5824_p8, %p5818_p5 }
  0x39   :  { %5828 = shalt.err (!%p5825_p9)
}
  0x3a   :  { %74 = dma.hbm_to_vmem [thread:$0]  %s7107_s8, 256, %s69_s22, [#allocation7], %s5975_s6, %s5975_s6, %s5976_s25  }
  0x3b   :  { %s5829_s23 = scalar_lea.hbm %s7108_s9, 16 }
  0x3c   :  { %p5830_p10 = scmp.ne.s32.totalorder %s7108_s9, %s5829_s23  ;;  %p5833_p11 = scmp.lt.u32.totalorder %s5829_s23, %s7108_s9 }
  0x3e   :  { %p5835_p12 = pnand %p5833_p11, %p5830_p10 }
  0x40   :  { %5838 = shalt.err (!%p5835_p12)
}
  0x41   :  { %s5839_s30 = scalar_lea.vmem %s82_s24, 16  ;;  %s5843_s18 = scalar_lea.vmem %s82_s24, 32 }
  0x42   :  { %p5840_p13 = scmp.ne.s32.totalorder %s82_s24, %s5839_s30  ;;  %p5844_p0 = scmp.lt.s32.totalorder %s82_s24, %s82_s24 }
  0x43   :  { %p5845_p1 = scmp.lt.s32.totalorder %s5843_s18, %s5839_s30 }
  0x45   :  { %p5846_p2 = por %p5845_p1, %p5844_p0 }
  0x47   :  { %p5847_p3 = pnand %p5846_p2, %p5840_p13 }
  0x49   :  { %5850 = shalt.err (!%p5847_p3)
}
  0x4a   :  { %84 = dma.hbm_to_vmem [thread:$0]  %s7108_s9, 16, %s82_s24, [#allocation10]  }
  0x4b   :  { %5961 = dma.done.wait [#allocation4], 256  }
  0x4c   :  { %5962 = vsyncadd [#allocation4], 4294967040 }
  0x4d   :  { %5963 = dma.done.wait [#allocation7], 272  }
  0x4e   :  { %5964 = vsyncadd [#allocation7], 4294967024 }
  0x4f   :  { %5965 = dma.done.wait [#allocation10], 16  }
  0x50   :  { %5966 = vsyncadd [#allocation10], 4294967280  ;;  %v5979_v0 = vmov 0.0|0.0   ;;  %vm5980_vm0 = vmmov 0   ;;  %v5981_v1 = vmov 0.0   ;;  %s7121_s27 = sld [smem:[#allocation25_spill]] }
  0x51   :  { %5295 = vmatprep.subr.bf16.mxu1 %v5979_v0  ;;  %4855 = vmatprep.mubr.msk.f32.mxu1 %vm5980_vm0, %v5981_v1  ;;  %v252_v4 = vld [vmem:[%s7101_s2] sm:$0xff]  ;;  %vm122_vm1 = vcmask 261120   ;;  %v253_v6 = vld [vmem:[%s7101_s2 + $0x8] sm:$0xff]  ;;  %s7122_s8 = sld [smem:[#allocation24_spill]]  ;;  %v254_v12 = vld [vmem:[%s7101_s2 + $0x10] sm:$0xff]  ;;  %s5982_s23 = smov 32  }
  0x52   :  { %v6161_v9 = vpack.c.bf16 %v253_v6, %v252_v4  ;;  %v255_v13 = vld [vmem:[%s7101_s2 + $0x18] sm:$0xff]  ;;  %v6198_v16 = vld [vmem:[%s7102_s3] ss:$0 sm:$0xff]  ;;  %s5983_s26 = smov 64   ;;  %vm2330_vm2 = vcmask 130048   ;;  %s5985_s22 = smov [#allocation15]  }
  0x53   :  { %v6174_v14 = vpack.c.bf16 %v255_v13, %v254_v12  ;;  %3210 = vst.msk [vmem:[#allocation17] sm:$0xff] %vm2330_vm2, %v5981_v1  ;;  %3211 = vst.msk [vmem:[#allocation17 + $0x8] sm:$0xff] %vm2330_vm2, %v5981_v1  ;;  %s4388_s19 = sshll.u32 %s5985_s22, 4  ;;  %s7008_s19 = int_to_ptr.vmem [resolvable:$true] %s4388_s19 }
  0x54   :  { %5297 = vmatpush3.bf16.msra.mxu1 %v6161_v9  ;;  %3212 = vst.msk [vmem:[#allocation17 + $0x10] sm:$0xff] %vm2330_vm2, %v5981_v1  ;;  %3213 = vst.msk [vmem:[#allocation17 + $0x18] sm:$0xff] %vm2330_vm2, %v5981_v1 }
  0x55   :  { %5298 = vmatprep.subr.bf16.mxu1 %v5979_v0  ;;  %3214 = vst.msk [vmem:[#allocation17 + $0x20] sm:$0xff] %vm2330_vm2, %v5981_v1  ;;  %3215 = vst.msk [vmem:[#allocation17 + $0x28] sm:$0xff] %vm2330_vm2, %v5981_v1 }
  0x56   :  { %v111_v2 = vld [vmem:[%s7121_s27] sm:$0xff]  ;;  %v112_v3 = vld [vmem:[%s7121_s27 + $0x8] sm:$0xff]  ;;  %v113_v7 = vld [vmem:[%s7121_s27 + $0x10] sm:$0xff]  ;;  %3216 = vst.msk [vmem:[#allocation17 + $0x30] sm:$0xff] %vm2330_vm2, %v5981_v1 }
  0x57   :  { %v5287_v5 = vpack.c.bf16 %v112_v3, %v111_v2  ;;  %v114_v8 = vld [vmem:[%s7121_s27 + $0x18] sm:$0xff]  ;;  %v103_v11 = vld [vmem:[%s7122_s8] sm:$0xff]  ;;  %v104_v15 = vld [vmem:[%s7122_s8 + $0x8] sm:$0xff]  ;;  %3217 = vst.msk [vmem:[#allocation17 + $0x38] sm:$0xff] %vm2330_vm2, %v5981_v1 }
  0x58   :  { %v5291_v10 = vpack.c.bf16 %v114_v8, %v113_v7  ;;  %4835 = vmatprep.mubr.msk.f32.mxu0 %vm122_vm1, %v103_v11  ;;  %5300 = vmatpush3.bf16.msra.mxu1 %v6174_v14  ;;  %v105_v51 = vld [vmem:[%s7122_s8 + $0x10] sm:$0xff]  ;;  %v106_v52 = vld [vmem:[%s7122_s8 + $0x18] sm:$0xff]  ;;  %v107_v53 = vld [vmem:[%s7122_s8 + $0x20] sm:$0xff]  ;;  %3218 = vst.msk [vmem:[#allocation17 + $0x40] sm:$0xff] %vm2330_vm2, %v5981_v1 }
  0x59   :  { %5288 = vmatprep.subr.bf16.mxu0 %v5287_v5  ;;  %5301 = vmatprep.subr.bf16.mxu1 %v5979_v0  ;;  %v108_v54 = vld [vmem:[%s7122_s8 + $0x28] sm:$0xff]  ;;  %v109_v55 = vld [vmem:[%s7122_s8 + $0x30] sm:$0xff]  ;;  %v110_v56 = vld [vmem:[%s7122_s8 + $0x38] sm:$0xff]  ;;  %3219 = vst.msk [vmem:[#allocation17 + $0x48] sm:$0xff] %vm2330_vm2, %v5981_v1 }
  0x5a   :  { %5290 = vmatpush3.bf16.msra.mxu0 %v5287_v5  ;;  %3220 = vst.msk [vmem:[#allocation17 + $0x50] sm:$0xff] %vm2330_vm2, %v5981_v1  ;;  %3221 = vst.msk [vmem:[#allocation17 + $0x58] sm:$0xff] %vm2330_vm2, %v5981_v1 }
  0x5b   :  { %5292 = vmatprep.subr.bf16.mxu0 %v5291_v10  ;;  %4856 = vmatmul.mubr.f32.vlgmr.msra.gmra.mrb[0].mxu1 %v5981_v1  ;;  %3222 = vst.msk [vmem:[#allocation17 + $0x60] sm:$0xff] %vm2330_vm2, %v5981_v1  ;;  %3223 = vst.msk [vmem:[#allocation17 + $0x68] sm:$0xff] %vm2330_vm2, %v5981_v1 }
  0x5c   :  { %5303 = vmatpush3.bf16.msra.mxu1 %v6161_v9  ;;  %4866 = vmatprep.mubr.msk.f32.mxu1 %vm5980_vm0, %v5981_v1  ;;  %3224 = vst.msk [vmem:[#allocation17 + $0x70] sm:$0xff] %vm2330_vm2, %v5981_v1  ;;  %3225 = vst.msk [vmem:[#allocation17 + $0x78] sm:$0xff] %vm2330_vm2, %v5981_v1 }
  0x5d   :  { %5304 = vmatprep.subr.bf16.mxu1 %v5979_v0  ;;  %3226 = vst.msk [vmem:[#allocation17 + $0x80] sm:$0xff] %vm2330_vm2, %v5981_v1  ;;  %3227 = vst.msk [vmem:[#allocation17 + $0x88] sm:$0xff] %vm2330_vm2, %v5981_v1 }
  0x5e   :  { %5294 = vmatpush3.bf16.msra.mxu0 %v5291_v10  ;;  %3228 = vst.msk [vmem:[#allocation17 + $0x90] sm:$0xff] %vm2330_vm2, %v5981_v1  ;;  %3229 = vst.msk [vmem:[#allocation17 + $0x98] sm:$0xff] %vm2330_vm2, %v5981_v1 }
  0x5f   :  { %5307 = vmatprep.subr.bf16.mxu0 %v5979_v0  ;;  %3230 = vst.msk [vmem:[#allocation17 + $0xa0] sm:$0xff] %vm2330_vm2, %v5981_v1  ;;  %3231 = vst.msk [vmem:[#allocation17 + $0xa8] sm:$0xff] %vm2330_vm2, %v5981_v1 }
  0x60   :  { %5306 = vmatpush3.bf16.msra.mxu1 %v6174_v14  ;;  %3232 = vst.msk [vmem:[#allocation17 + $0xb0] sm:$0xff] %vm2330_vm2, %v5981_v1  ;;  %3233 = vst.msk [vmem:[#allocation17 + $0xb8] sm:$0xff] %vm2330_vm2, %v5981_v1 }
  0x61   :  { %4836 = vmatmul.mubr.msk.f32.vlgmr.msra.gmra.mrb[0].mxu0 %vm122_vm1, %v104_v15  ;;  %5313 = vmatprep.subr.bf16.mxu1 %v5979_v0  ;;  %3234 = vst.msk [vmem:[#allocation17 + $0xc0] sm:$0xff] %vm2330_vm2, %v5981_v1  ;;  %3235 = vst.msk [vmem:[#allocation17 + $0xc8] sm:$0xff] %vm2330_vm2, %v5981_v1 }
  0x62   :  { %5309 = vmatpush3.bf16.msra.mxu0 %v6161_v9  ;;  %4838 = vmatprep.mubr.msk.f32.mxu0 %vm122_vm1, %v105_v51  ;;  %3236 = vst.msk [vmem:[#allocation17 + $0xd0] sm:$0xff] %vm2330_vm2, %v5981_v1  ;;  %3237 = vst.msk [vmem:[#allocation17 + $0xd8] sm:$0xff] %vm2330_vm2, %v5981_v1 }
  0x63   :  { %5310 = vmatprep.subr.bf16.mxu0 %v5979_v0  ;;  %3238 = vst.msk [vmem:[#allocation17 + $0xe0] sm:$0xff] %vm2330_vm2, %v5981_v1  ;;  %3239 = vst.msk [vmem:[#allocation17 + $0xe8] sm:$0xff] %vm2330_vm2, %v5981_v1 }
  0x64   :  { %3240 = vst.msk [vmem:[#allocation17 + $0xf0] sm:$0xff] %vm2330_vm2, %v5981_v1  ;;  %3241 = vst.msk [vmem:[#allocation17 + $0xf8] sm:$0xff] %vm2330_vm2, %v5981_v1 }
  0x65   :  { %4839 = vmatmul.mubr.msk.f32.gmra.mrb[2].mxu0 %vm122_vm1, %v106_v52  ;;  %3242 = vst.msk [vmem:[#allocation17 + $0x100] sm:$0xff] %vm2330_vm2, %v5981_v1  ;;  %3243 = vst.msk [vmem:[#allocation17 + $0x108] sm:$0xff] %vm2330_vm2, %v5981_v1 }
  0x66   :  { %5312 = vmatpush3.bf16.msra.mxu0 %v6174_v14  ;;  %4841 = vmatprep.mubr.msk.f32.mxu0 %vm122_vm1, %v107_v53  ;;  %3244 = vst.msk [vmem:[#allocation17 + $0x110] sm:$0xff] %vm2330_vm2, %v5981_v1  ;;  %3245 = vst.msk [vmem:[#allocation17 + $0x118] sm:$0xff] %vm2330_vm2, %v5981_v1 }
  0x67   :  { %5319 = vmatprep.subr.bf16.mxu0 %v5979_v0  ;;  %3246 = vst.msk [vmem:[#allocation17 + $0x120] sm:$0xff] %vm2330_vm2, %v5981_v1  ;;  %3247 = vst.msk [vmem:[#allocation17 + $0x128] sm:$0xff] %vm2330_vm2, %v5981_v1 }
  0x68   :  { %3248 = vst.msk [vmem:[#allocation17 + $0x130] sm:$0xff] %vm2330_vm2, %v5981_v1  ;;  %3249 = vst.msk [vmem:[#allocation17 + $0x138] sm:$0xff] %vm2330_vm2, %v5981_v1 }
  0x69   :  { %4842 = vmatmul.mubr.msk.f32.gmra.mrb[4].mxu0 %vm122_vm1, %v108_v54  ;;  %3250 = vst.msk [vmem:[#allocation17 + $0x140] sm:$0xff] %vm2330_vm2, %v5981_v1  ;;  %3251 = vst.msk [vmem:[#allocation17 + $0x148] sm:$0xff] %vm2330_vm2, %v5981_v1 }
  0x6a   :  { %4844 = vmatprep.mubr.msk.f32.mxu0 %vm122_vm1, %v109_v55  ;;  %3252 = vst.msk [vmem:[#allocation17 + $0x150] sm:$0xff] %vm2330_vm2, %v5981_v1  ;;  %3253 = vst.msk [vmem:[#allocation17 + $0x158] sm:$0xff] %vm2330_vm2, %v5981_v1 }
  0x6b   :  { %3254 = vst.msk [vmem:[#allocation17 + $0x160] sm:$0xff] %vm2330_vm2, %v5981_v1  ;;  %3255 = vst.msk [vmem:[#allocation17 + $0x168] sm:$0xff] %vm2330_vm2, %v5981_v1 }
  0x6c   :  { %3256 = vst.msk [vmem:[#allocation17 + $0x170] sm:$0xff] %vm2330_vm2, %v5981_v1  ;;  %3257 = vst.msk [vmem:[#allocation17 + $0x178] sm:$0xff] %vm2330_vm2, %v5981_v1 }
  0x6d   :  { %4845 = vmatmul.mubr.msk.f32.gmra.mrb[6].mxu0 %vm122_vm1, %v110_v56  ;;  %3258 = vst.msk [vmem:[#allocation17 + $0x180] sm:$0xff] %vm2330_vm2, %v5981_v1  ;;  %3259 = vst.msk [vmem:[#allocation17 + $0x188] sm:$0xff] %vm2330_vm2, %v5981_v1 }
  0x6e   :  { %4877 = vmatprep.mubr.msk.f32.mxu0 %vm5980_vm0, %v5981_v1  ;;  %3260 = vst.msk [vmem:[#allocation17 + $0x190] sm:$0xff] %vm2330_vm2, %v5981_v1  ;;  %3261 = vst.msk [vmem:[#allocation17 + $0x198] sm:$0xff] %vm2330_vm2, %v5981_v1 }
  0x6f   :  { %3262 = vst.msk [vmem:[#allocation17 + $0x1a0] sm:$0xff] %vm2330_vm2, %v5981_v1  ;;  %3263 = vst.msk [vmem:[#allocation17 + $0x1a8] sm:$0xff] %vm2330_vm2, %v5981_v1 }
  0x70   :  { %3264 = vst.msk [vmem:[#allocation17 + $0x1b0] sm:$0xff] %vm2330_vm2, %v5981_v1  ;;  %3265 = vst.msk [vmem:[#allocation17 + $0x1b8] sm:$0xff] %vm2330_vm2, %v5981_v1 }
  0x71   :  { %3266 = vst.msk [vmem:[#allocation17 + $0x1c0] sm:$0xff] %vm2330_vm2, %v5981_v1  ;;  %3267 = vst.msk [vmem:[#allocation17 + $0x1c8] sm:$0xff] %vm2330_vm2, %v5981_v1 }
  0x72   :  { %3268 = vst.msk [vmem:[#allocation17 + $0x1d0] sm:$0xff] %vm2330_vm2, %v5981_v1  ;;  %3269 = vst.msk [vmem:[#allocation17 + $0x1d8] sm:$0xff] %vm2330_vm2, %v5981_v1 }
  0x73   :  { %3270 = vst.msk [vmem:[#allocation17 + $0x1e0] sm:$0xff] %vm2330_vm2, %v5981_v1  ;;  %3271 = vst.msk [vmem:[#allocation17 + $0x1e8] sm:$0xff] %vm2330_vm2, %v5981_v1 }
  0x74   :  { %3272 = vst.msk [vmem:[#allocation17 + $0x1f0] sm:$0xff] %vm2330_vm2, %v5981_v1  ;;  %3273 = vst.msk [vmem:[#allocation17 + $0x1f8] sm:$0xff] %vm2330_vm2, %v5981_v1 }
 0x12e   :  { %v325_v18 = vpop.f32.mrb[0].mxu1 }
 0x12f   :  { %v4857_v20 = vpop.f32.mrb[1].mxu1 }
 0x134   :  { %v4837_v17 = vpop.f32.mrb[0].mxu0 }
 0x135   :  { %v213_v19 = vpop.f32.mrb[1].mxu0  ;;  %v219_v37 = vadd.f32 %v4837_v17, %v6198_v16 }
 0x136   :  { %v214_v21 = vadd.f32 %v6198_v16, %v213_v19 }
 0x138   :  { %v329_v22 = vadd.f32 %v325_v18, %v214_v21  ;;  %v4840_v60 = vpop.f32.mrb[2].mxu0 }
 0x139   :  { %v223_v61 = vpop.f32.mrb[3].mxu0 }
 0x13a   :  { %5497 = vtanh.f32 %v329_v22  ;;  %v4437_v24 = vmul.f32 -1.442695, %v329_v22  ;;  %v224_v5 = vadd.f32 %v6198_v16, %v223_v61 }
 0x13c   :  { %5499 = vpow2.f32 %v4437_v24  ;;  %v6244_v62 = vpop.f32.mrb[4].mxu0 }
 0x13d   :  { %v6246_v63 = vpop.f32.mrb[5].mxu0 }
 0x140   :  { %v6248_v2 = vpop.f32.mrb[6].mxu0 }
 0x141   :  { %v6250_v3 = vpop.f32.mrb[7].mxu0 }
 0x144   :  { %v5498_v23 = vpop.eup %5497 }
 0x145   :  { %339 = vrot.lane.b32.xlu0 %v5498_v23, %s5982_s23 }
 0x146   :  { %v5500_v25 = vpop.eup %5499 }
 0x147   :  { %v333_v26 = vadd.f32 1.0, %v5500_v25 }
 0x149   :  { %5501 = vrcp.f32 %v333_v26  ;;  %v229_v26 = vadd.f32 %v4840_v60, %v6198_v16 }
 0x153   :  { %v5502_v27 = vpop.eup %5501 }
 0x154   :  { %v337_v30 = vmul.f32 0.0, %v5502_v27 }
 0x1b7   :  { %v340_v28 = vpop.permute.xlu0 %339 }
 0x1b8   :  { %v342_v29 = vmul.f32 %v5502_v27, %v340_v28 }
 0x1ba   :  { %344 = vrot.lane.b32.xlu0 %v342_v29, %s5982_s23 }
 0x22c   :  { %v345_v31 = vpop.permute.xlu0 %344 }
 0x22d   :  { %v347_v32 = vadd.f32 %v345_v31, %v337_v30 }
 0x22f   :  { %5503 = vtanh.f32 %v347_v32 }
 0x239   :  { %v5504_v33 = vpop.eup %5503 }
 0x23a   :  { %350 = vrot.lane.b32.xlu1 %v5504_v33, %s5982_s23 }
 0x2ac   :  { %v351_v34 = vpop.permute.xlu1 %350 }
 0x2ad   :  { %v353_v35 = vmul.f32 %v5502_v27, %v351_v34 }
 0x2af   :  { %355 = vrot.lane.b32.xlu1 %v353_v35, %s5983_s26 }
 0x321   :  { %v356_v36 = vpop.permute.xlu1 %355 }
 0x322   :  { %358 = vst.msk [vmem:[#allocation2] sm:$0xff] %vm122_vm1, %v356_v36  ;;  %4867 = vmatmul.mubr.msk.f32.vlgmr.msra.gmra.mrb[2].mxu1 %vm122_vm1, %v356_v36 }
 0x323   :  { %5315 = vmatpush3.bf16.msra.mxu1 %v6161_v9  ;;  %4888 = vmatprep.mubr.msk.f32.mxu1 %vm5980_vm0, %v5981_v1 }
 0x324   :  { %5316 = vmatprep.subr.bf16.mxu1 %v5979_v0 }
 0x327   :  { %5318 = vmatpush3.bf16.msra.mxu1 %v6174_v14 }
 0x328   :  { %5325 = vmatprep.subr.bf16.mxu1 %v5979_v0 }
 0x3f5   :  { %v427_v38 = vpop.f32.mrb[2].mxu1 }
 0x3f6   :  { %v431_v39 = vadd.f32 %v427_v38, %v219_v37  ;;  %v4868_v40 = vpop.f32.mrb[3].mxu1 }
 0x3f8   :  { %5505 = vtanh.f32 %v431_v39  ;;  %v4439_v42 = vmul.f32 -1.442695, %v431_v39 }
 0x3fa   :  { %5507 = vpow2.f32 %v4439_v42 }
 0x402   :  { %v5506_v41 = vpop.eup %5505 }
 0x403   :  { %441 = vrot.lane.b32.xlu0 %v5506_v41, %s5982_s23 }
 0x404   :  { %v5508_v43 = vpop.eup %5507 }
 0x405   :  { %v435_v44 = vadd.f32 1.0, %v5508_v43 }
 0x407   :  { %5509 = vrcp.f32 %v435_v44  ;;  %v234_v44 = vadd.f32 %v6198_v16, %v6246_v63  ;;  %v239_v63 = vadd.f32 %v6244_v62, %v6198_v16 }
 0x411   :  { %v5510_v45 = vpop.eup %5509 }
 0x412   :  { %v439_v48 = vmul.f32 %v5510_v45, %v347_v32 }
 0x475   :  { %v442_v46 = vpop.permute.xlu0 %441 }
 0x476   :  { %v444_v47 = vmul.f32 %v5510_v45, %v442_v46 }
 0x478   :  { %446 = vrot.lane.b32.xlu1 %v444_v47, %s5982_s23 }
 0x4ea   :  { %v447_v49 = vpop.permute.xlu1 %446 }
 0x4eb   :  { %v449_v50 = vadd.f32 %v447_v49, %v439_v48 }
 0x4ed   :  { %5511 = vtanh.f32 %v449_v50 }
 0x4f7   :  { %v5512_v57 = vpop.eup %5511 }
 0x4f8   :  { %452 = vrot.lane.b32.xlu0 %v5512_v57, %s5982_s23 }
 0x56a   :  { %v453_v58 = vpop.permute.xlu0 %452 }
 0x56b   :  { %v455_v59 = vmul.f32 %v5510_v45, %v453_v58 }
 0x56d   :  { %457 = vrot.lane.b32.xlu1 %v455_v59, %s5983_s26 }
 0x5df   :  { %v458_v4 = vpop.permute.xlu1 %457 }
 0x5e0   :  { %461 = vst.msk [vmem:[#allocation2 + $0x8] sm:$0xff] %vm122_vm1, %v458_v4  ;;  %4878 = vmatmul.mubr.msk.f32.vlgmr.msra.gmra.mrb[8].mxu0 %vm122_vm1, %v458_v4 }
 0x5e1   :  { %5321 = vmatpush3.bf16.msra.mxu0 %v6161_v9  ;;  %4899 = vmatprep.mubr.msk.f32.mxu0 %vm5980_vm0, %v5981_v1 }
 0x5e2   :  { %5322 = vmatprep.subr.bf16.mxu0 %v5979_v0 }
 0x5e5   :  { %5324 = vmatpush3.bf16.msra.mxu0 %v6174_v14 }
 0x5e6   :  { %5331 = vmatprep.subr.bf16.mxu0 %v5979_v0 }
 0x6b3   :  { %v530_v6 = vpop.f32.mrb[8].mxu0 }
 0x6b4   :  { %v534_v7 = vadd.f32 %v530_v6, %v224_v5  ;;  %v4879_v8 = vpop.f32.mrb[9].mxu0 }
 0x6b6   :  { %5513 = vtanh.f32 %v534_v7  ;;  %v4441_v11 = vmul.f32 -1.442695, %v534_v7 }
 0x6b8   :  { %5515 = vpow2.f32 %v4441_v11 }
 0x6c0   :  { %v5514_v10 = vpop.eup %5513 }
 0x6c1   :  { %544 = vrot.lane.b32.xlu0 %v5514_v10, %s5982_s23 }
 0x6c2   :  { %v5516_v12 = vpop.eup %5515 }
 0x6c3   :  { %v538_v13 = vadd.f32 1.0, %v5516_v12 }
 0x6c5   :  { %5517 = vrcp.f32 %v538_v13 }
 0x6cf   :  { %v5518_v15 = vpop.eup %5517 }
 0x6d0   :  { %v542_v19 = vmul.f32 %v5518_v15, %v449_v50 }
 0x733   :  { %v545_v17 = vpop.permute.xlu0 %544 }
 0x734   :  { %v547_v18 = vmul.f32 %v5518_v15, %v545_v17  ;;  %v4452_v17 = vld [vmem:[%s7121_s27 + $0x20] sm:$0xff] }
 0x736   :  { %549 = vrot.lane.b32.xlu1 %v547_v18, %s5982_s23  ;;  %v4453_v18 = vld [vmem:[%s7121_s27 + $0x28] sm:$0xff] }
 0x7a8   :  { %v550_v20 = vpop.permute.xlu1 %549 }
 0x7a9   :  { %v552_v21 = vadd.f32 %v550_v20, %v542_v19  ;;  %v5343_v19 = vpack.c.bf16 %v4453_v18, %v4452_v17 }
 0x7ab   :  { %5519 = vtanh.f32 %v552_v21 }
 0x7b5   :  { %v5520_v22 = vpop.eup %5519 }
 0x7b6   :  { %555 = vrot.lane.b32.xlu0 %v5520_v22, %s5982_s23 }
 0x828   :  { %v556_v23 = vpop.permute.xlu0 %555 }
 0x829   :  { %v558_v24 = vmul.f32 %v5518_v15, %v556_v23  ;;  %v4454_v23 = vld [vmem:[%s7121_s27 + $0x30] sm:$0xff] }
 0x82b   :  { %560 = vrot.lane.b32.xlu1 %v558_v24, %s5983_s26  ;;  %v4455_v24 = vld [vmem:[%s7121_s27 + $0x38] sm:$0xff] }
 0x89d   :  { %v561_v25 = vpop.permute.xlu1 %560 }
 0x89e   :  { %564 = vst.msk [vmem:[#allocation2 + $0x10] sm:$0xff] %vm122_vm1, %v561_v25  ;;  %4889 = vmatmul.mubr.msk.f32.vlgmr.msra.gmra.mrb[4].mxu1 %vm122_vm1, %v561_v25  ;;  %v5347_v25 = vpack.c.bf16 %v4455_v24, %v4454_v23 }
 0x89f   :  { %5327 = vmatpush3.bf16.msra.mxu1 %v6161_v9  ;;  %4910 = vmatprep.mubr.msk.f32.mxu1 %vm5980_vm0, %v5981_v1 }
 0x8a0   :  { %5328 = vmatprep.subr.bf16.mxu1 %v5979_v0 }
 0x8a3   :  { %5330 = vmatpush3.bf16.msra.mxu1 %v6174_v14 }
 0x8a4   :  { %5337 = vmatprep.subr.bf16.mxu1 %v5979_v0 }
 0x971   :  { %v633_v27 = vpop.f32.mrb[4].mxu1 }
 0x972   :  { %v637_v28 = vadd.f32 %v633_v27, %v229_v26  ;;  %v4890_v29 = vpop.f32.mrb[5].mxu1  ;;  %v1080_v27 = vld [vmem:[#allocation2] sm:$0xff] }
 0x973   :  { %v1082_v29 = vld [vmem:[#allocation2 + $0x10] sm:$0xff] }
 0x974   :  { %5521 = vtanh.f32 %v637_v28  ;;  %v4443_v31 = vmul.f32 -1.442695, %v637_v28  ;;  %v1081_v28 = vld [vmem:[#allocation2 + $0x8] sm:$0xff] }
 0x976   :  { %5523 = vpow2.f32 %v4443_v31 }
 0x97e   :  { %v5522_v30 = vpop.eup %5521 }
 0x97f   :  { %647 = vrot.lane.b32.xlu0 %v5522_v30, %s5982_s23 }
 0x980   :  { %v5524_v32 = vpop.eup %5523 }
 0x981   :  { %v641_v33 = vadd.f32 1.0, %v5524_v32 }
 0x983   :  { %5525 = vrcp.f32 %v641_v33  ;;  %v244_v33 = vadd.f32 %v6198_v16, %v6250_v3 }
 0x98d   :  { %v5526_v34 = vpop.eup %5525 }
 0x98e   :  { %v645_v37 = vmul.f32 %v5526_v34, %v552_v21 }
 0x9f1   :  { %v648_v35 = vpop.permute.xlu0 %647 }
 0x9f2   :  { %v650_v36 = vmul.f32 %v5526_v34, %v648_v35 }
 0x9f4   :  { %652 = vrot.lane.b32.xlu1 %v650_v36, %s5982_s23 }
 0xa66   :  { %v653_v38 = vpop.permute.xlu1 %652 }
 0xa67   :  { %v655_v39 = vadd.f32 %v653_v38, %v645_v37 }
 0xa69   :  { %5527 = vtanh.f32 %v655_v39 }
 0xa73   :  { %v5528_v40 = vpop.eup %5527 }
 0xa74   :  { %658 = vrot.lane.b32.xlu0 %v5528_v40, %s5982_s23 }
 0xae6   :  { %v659_v41 = vpop.permute.xlu0 %658 }
 0xae7   :  { %v661_v42 = vmul.f32 %v5526_v34, %v659_v41 }
 0xae9   :  { %663 = vrot.lane.b32.xlu1 %v661_v42, %s5983_s26 }
 0xb5b   :  { %v664_v43 = vpop.permute.xlu1 %663 }
 0xb5c   :  { %667 = vst.msk [vmem:[#allocation2 + $0x18] sm:$0xff] %vm122_vm1, %v664_v43  ;;  %4900 = vmatmul.mubr.msk.f32.vlgmr.msra.gmra.mrb[10].mxu0 %vm122_vm1, %v664_v43 }
 0xb5d   :  { %5333 = vmatpush3.bf16.msra.mxu0 %v6161_v9  ;;  %4921 = vmatprep.mubr.msk.f32.mxu0 %vm5980_vm0, %v5981_v1 }
 0xb5e   :  { %5334 = vmatprep.subr.bf16.mxu0 %v5979_v0 }
 0xb61   :  { %5336 = vmatpush3.bf16.msra.mxu0 %v6174_v14 }
 0xb62   :  { %5344 = vmatprep.subr.bf16.mxu0 %v5343_v19 }
 0xb63   :  { %v1083_v30 = vld [vmem:[#allocation2 + $0x18] sm:$0xff] }
 0xc2f   :  { %v736_v45 = vpop.f32.mrb[10].mxu0 }
 0xc30   :  { %v740_v46 = vadd.f32 %v736_v45, %v234_v44  ;;  %v4901_v47 = vpop.f32.mrb[11].mxu0 }
 0xc32   :  { %5529 = vtanh.f32 %v740_v46  ;;  %v4445_v49 = vmul.f32 -1.442695, %v740_v46 }
 0xc34   :  { %5531 = vpow2.f32 %v4445_v49 }
 0xc3c   :  { %v5530_v48 = vpop.eup %5529 }
 0xc3d   :  { %750 = vrot.lane.b32.xlu0 %v5530_v48, %s5982_s23 }
 0xc3e   :  { %v5532_v50 = vpop.eup %5531 }
 0xc3f   :  { %v744_v51 = vadd.f32 1.0, %v5532_v50 }
 0xc41   :  { %5533 = vrcp.f32 %v744_v51 }
 0xc4b   :  { %v5534_v52 = vpop.eup %5533 }
 0xc4c   :  { %v748_v55 = vmul.f32 %v5534_v52, %v655_v39 }
 0xcaf   :  { %v751_v53 = vpop.permute.xlu0 %750 }
 0xcb0   :  { %v753_v54 = vmul.f32 %v5534_v52, %v751_v53  ;;  %v4466_v53 = vld [vmem:[%s7101_s2 + $0x20] sm:$0xff] }
 0xcb2   :  { %755 = vrot.lane.b32.xlu1 %v753_v54, %s5982_s23  ;;  %v4467_v54 = vld [vmem:[%s7101_s2 + $0x28] sm:$0xff] }
 0xd24   :  { %v756_v56 = vpop.permute.xlu1 %755 }
 0xd25   :  { %v758_v57 = vadd.f32 %v756_v56, %v748_v55  ;;  %v6350_v55 = vpack.c.bf16 %v4467_v54, %v4466_v53  ;;  %v4468_v56 = vld [vmem:[%s7101_s2 + $0x30] sm:$0xff] }
 0xd27   :  { %5535 = vtanh.f32 %v758_v57 }
 0xd31   :  { %v5536_v58 = vpop.eup %5535 }
 0xd32   :  { %761 = vrot.lane.b32.xlu0 %v5536_v58, %s5982_s23 }
 0xda4   :  { %v762_v59 = vpop.permute.xlu0 %761 }
 0xda5   :  { %v764_v60 = vmul.f32 %v5534_v52, %v762_v59 }
 0xda7   :  { %766 = vrot.lane.b32.xlu1 %v764_v60, %s5983_s26 }
 0xe19   :  { %v767_v61 = vpop.permute.xlu1 %766 }
 0xe1a   :  { %770 = vst.msk [vmem:[#allocation2 + $0x20] sm:$0xff] %vm122_vm1, %v767_v61  ;;  %4911 = vmatmul.mubr.msk.f32.vlgmr.msra.gmra.mrb[6].mxu1 %vm122_vm1, %v767_v61 }
 0xe1b   :  { %5339 = vmatpush3.bf16.msra.mxu1 %v6161_v9  ;;  %4932 = vmatprep.mubr.msk.f32.mxu1 %vm5980_vm0, %v5981_v1 }
 0xe1c   :  { %5340 = vmatprep.subr.bf16.mxu1 %v5979_v0 }
 0xe1f   :  { %5342 = vmatpush3.bf16.msra.mxu1 %v6174_v14 }
 0xe20   :  { %5351 = vmatprep.subr.bf16.mxu1 %v5979_v0 }
 0xe21   :  { %v1084_v31 = vld [vmem:[#allocation2 + $0x20] sm:$0xff] }
 0xeed   :  { %v839_v4 = vpop.f32.mrb[6].mxu1 }
 0xeee   :  { %v843_v5 = vadd.f32 %v839_v4, %v239_v63  ;;  %v4912_v6 = vpop.f32.mrb[7].mxu1  ;;  %v249_v4 = vadd.f32 %v6248_v2, %v6198_v16 }
 0xef0   :  { %5537 = vtanh.f32 %v843_v5  ;;  %v4447_v9 = vmul.f32 -1.442695, %v843_v5 }
 0xef2   :  { %5539 = vpow2.f32 %v4447_v9  ;;  %v6386_v9 = vld [vmem:[%s7102_s3 + $0x1] ss:$0 sm:$0xff] }
 0xefa   :  { %v5538_v7 = vpop.eup %5537 }
 0xefb   :  { %853 = vrot.lane.b32.xlu0 %v5538_v7, %s5982_s23 }
 0xefc   :  { %v5540_v8 = vpop.eup %5539 }
 0xefd   :  { %v847_v10 = vadd.f32 1.0, %v5540_v8 }
 0xeff   :  { %5541 = vrcp.f32 %v847_v10 }
 0xf09   :  { %v5542_v11 = vpop.eup %5541 }
 0xf0a   :  { %v851_v13 = vmul.f32 %v5542_v11, %v758_v57  ;;  %v4469_v57 = vld [vmem:[%s7101_s2 + $0x38] sm:$0xff] }
 0xf0b   :  { %v6360_v58 = vpack.c.bf16 %v4469_v57, %v4468_v56 }
 0xf6d   :  { %v854_v12 = vpop.permute.xlu0 %853 }
 0xf6e   :  { %v856_v14 = vmul.f32 %v5542_v11, %v854_v12 }
 0xf70   :  { %858 = vrot.lane.b32.xlu1 %v856_v14, %s5982_s23 }
 0xfe2   :  { %v859_v15 = vpop.permute.xlu1 %858 }
 0xfe3   :  { %v861_v62 = vadd.f32 %v859_v15, %v851_v13 }
 0xfe5   :  { %5543 = vtanh.f32 %v861_v62 }
 0xfef   :  { %v5544_v20 = vpop.eup %5543 }
 0xff0   :  { %864 = vrot.lane.b32.xlu0 %v5544_v20, %s5982_s23 }
0x1062   :  { %v865_v21 = vpop.permute.xlu0 %864 }
0x1063   :  { %v867_v22 = vmul.f32 %v5542_v11, %v865_v21 }
0x1065   :  { %869 = vrot.lane.b32.xlu1 %v867_v22, %s5983_s26 }
0x10d7   :  { %v870_v26 = vpop.permute.xlu1 %869 }
0x10d8   :  { %873 = vst.msk [vmem:[#allocation2 + $0x28] sm:$0xff] %vm122_vm1, %v870_v26  ;;  %4922 = vmatmul.mubr.msk.f32.vlgmr.msra.gmra.mrb[12].mxu0 %vm122_vm1, %v870_v26 }
0x10d9   :  { %5346 = vmatpush3.bf16.msra.mxu0 %v5343_v19  ;;  %4943 = vmatprep.mubr.msk.f32.mxu0 %vm122_vm1, %v1080_v27 }
0x10da   :  { %5348 = vmatprep.subr.bf16.mxu0 %v5347_v25 }
0x10dd   :  { %5350 = vmatpush3.bf16.msra.mxu0 %v5347_v25 }
0x10de   :  { %5363 = vmatprep.subr.bf16.mxu0 %v5979_v0 }
0x10df   :  { %v1085_v32 = vld [vmem:[#allocation2 + $0x28] sm:$0xff] }
0x10e0   :  { %4944 = vmatmul.mubr.msk.f32.vlgmr.msra.gmra.mrb[14].mxu0 %vm122_vm1, %v1081_v28 }
0x10e1   :  { %4946 = vmatprep.mubr.msk.f32.mxu0 %vm122_vm1, %v1082_v29  ;;  %5365 = vmatpush3.bf16.msra.mxu0 %v6350_v55 }
0x10e2   :  { %5366 = vmatprep.subr.bf16.mxu0 %v5979_v0 }
0x10e4   :  { %4947 = vmatmul.mubr.msk.f32.gmra.mrb[16].mxu0 %vm122_vm1, %v1083_v30 }
0x10e5   :  { %4949 = vmatprep.mubr.msk.f32.mxu0 %vm122_vm1, %v1084_v31  ;;  %5368 = vmatpush3.bf16.msra.mxu0 %v6360_v58 }
0x10e6   :  { %5375 = vmatprep.subr.bf16.mxu0 %v5979_v0 }
0x10e8   :  { %4950 = vmatmul.mubr.msk.f32.gmra.mrb[18].mxu0 %vm122_vm1, %v1085_v32 }
0x11ab   :  { %v942_v34 = vpop.f32.mrb[12].mxu0 }
0x11ac   :  { %v946_v35 = vadd.f32 %v942_v34, %v244_v33  ;;  %v4923_v36 = vpop.f32.mrb[13].mxu0 }
0x11ae   :  { %5545 = vtanh.f32 %v946_v35  ;;  %v4449_v44 = vmul.f32 -1.442695, %v946_v35 }
0x11b0   :  { %5547 = vpow2.f32 %v4449_v44 }
0x11b3   :  { %v6328_v37 = vpop.f32.mrb[14].mxu0 }
0x11b4   :  { %v1191_v38 = vpop.f32.mrb[15].mxu0 }
0x11b5   :  { %v1192_v8 = vadd.f32 %v6386_v9, %v1191_v38 }
0x11b7   :  { %v6330_v39 = vpop.f32.mrb[16].mxu0 }
0x11b8   :  { %v5546_v40 = vpop.eup %5545  ;;  %v6332_v41 = vpop.f32.mrb[17].mxu0 }
0x11b9   :  { %956 = vrot.lane.b32.xlu0 %v5546_v40, %s5982_s23  ;;  %v1197_v40 = vadd.f32 %v6328_v37, %v6386_v9 }
0x11ba   :  { %v5548_v3 = vpop.eup %5547 }
0x11bb   :  { %v6335_v42 = vpop.f32.mrb[18].mxu0  ;;  %v950_v45 = vadd.f32 1.0, %v5548_v3 }
0x11bc   :  { %v6337_v43 = vpop.f32.mrb[19].mxu0 }
0x11bd   :  { %5549 = vrcp.f32 %v950_v45 }
0x11c7   :  { %v5550_v46 = vpop.eup %5549 }
0x11c8   :  { %v954_v49 = vmul.f32 %v5550_v46, %v861_v62 }
0x122b   :  { %v957_v47 = vpop.permute.xlu0 %956 }
0x122c   :  { %v959_v48 = vmul.f32 %v5550_v46, %v957_v47 }
0x122e   :  { %961 = vrot.lane.b32.xlu1 %v959_v48, %s5982_s23 }
0x12a0   :  { %v962_v50 = vpop.permute.xlu1 %961 }
0x12a1   :  { %v6340_v51 = vadd.f32 %v962_v50, %v954_v49 }
0x12a3   :  { %5551 = vtanh.f32 %v6340_v51 }
0x12ad   :  { %v5552_v52 = vpop.eup %5551 }
0x12ae   :  { %967 = vrot.lane.b32.xlu0 %v5552_v52, %s5982_s23 }
0x1320   :  { %v968_v59 = vpop.permute.xlu0 %967 }
0x1321   :  { %v970_v60 = vmul.f32 %v5550_v46, %v968_v59 }
0x1323   :  { %972 = vrot.lane.b32.xlu1 %v970_v60, %s5983_s26 }
0x1395   :  { %v973_v61 = vpop.permute.xlu1 %972 }
0x1396   :  { %976 = vst.msk [vmem:[#allocation2 + $0x30] sm:$0xff] %vm122_vm1, %v973_v61  ;;  %4933 = vmatmul.mubr.msk.f32.vlgmr.msra.gmra.mrb[8].mxu1 %vm122_vm1, %v973_v61 }
0x1397   :  { %5353 = vmatpush3.bf16.msra.mxu1 %v6350_v55  ;;  %4963 = vmatprep.mubr.msk.f32.mxu1 %vm5980_vm0, %v5981_v1 }
0x1398   :  { %5354 = vmatprep.subr.bf16.mxu1 %v5979_v0 }
0x139b   :  { %5356 = vmatpush3.bf16.msra.mxu1 %v6360_v58 }
0x139c   :  { %5357 = vmatprep.subr.bf16.mxu1 %v5979_v0 }
0x139d   :  { %v1086_v63 = vld [vmem:[#allocation2 + $0x30] sm:$0xff] }
0x139e   :  { %4964 = vmatmul.mubr.f32.vlgmr.msra.gmra.mrb[10].mxu1 %v5981_v1  ;;  %4952 = vmatprep.mubr.msk.f32.mxu0 %vm122_vm1, %v1086_v63 }
0x139f   :  { %5359 = vmatpush3.bf16.msra.mxu1 %v6350_v55  ;;  %4974 = vmatprep.mubr.msk.f32.mxu1 %vm5980_vm0, %v5981_v1 }
0x13a0   :  { %5360 = vmatprep.subr.bf16.mxu1 %v5979_v0 }
0x13a3   :  { %5362 = vmatpush3.bf16.msra.mxu1 %v6360_v58 }
0x13a4   :  { %5369 = vmatprep.subr.bf16.mxu1 %v5979_v0 }
0x1469   :  { %v1045_v5 = vpop.f32.mrb[8].mxu1 }
0x146a   :  { %v1049_v6 = vadd.f32 %v1045_v5, %v249_v4  ;;  %v4934_v7 = vpop.f32.mrb[9].mxu1 }
0x146c   :  { %v4451_v23 = vmul.f32 -1.442695, %v1049_v6 }
0x1471   :  { %v1301_v10 = vpop.f32.mrb[10].mxu1 }
0x1472   :  { %v1305_v11 = vadd.f32 %v1301_v10, %v1192_v8  ;;  %v4965_v12 = vpop.f32.mrb[11].mxu1 }
0x1474   :  { %5553 = vtanh.f32 %v1305_v11  ;;  %v4470_v13 = vmul.f32 -1.442695, %v1305_v11 }
0x1476   :  { %5555 = vpow2.f32 %v4470_v13 }
0x147e   :  { %v5554_v14 = vpop.eup %5553 }
0x147f   :  { %1315 = vrot.lane.b32.xlu0 %v5554_v14, %s5982_s23 }
0x1480   :  { %v5556_v16 = vpop.eup %5555 }
0x1481   :  { %v1309_v2 = vadd.f32 1.0, %v5556_v16 }
0x1483   :  { %5557 = vrcp.f32 %v1309_v2 }
0x148d   :  { %v5558_v15 = vpop.eup %5557 }
0x148e   :  { %v1313_v18 = vmul.f32 0.0, %v5558_v15 }
0x14f1   :  { %v1316_v62 = vpop.permute.xlu0 %1315 }
0x14f2   :  { %v1318_v17 = vmul.f32 %v5558_v15, %v1316_v62 }
0x14f4   :  { %1320 = vrot.lane.b32.xlu1 %v1318_v17, %s5982_s23 }
0x1566   :  { %v1321_v19 = vpop.permute.xlu1 %1320 }
0x1567   :  { %v1323_v20 = vadd.f32 %v1321_v19, %v1313_v18 }
0x1569   :  { %5559 = vtanh.f32 %v1323_v20 }
0x156a   :  { %5561 = vtanh.f32 %v1049_v6  ;;  %v1202_v6 = vadd.f32 %v6386_v9, %v6332_v41 }
0x156b   :  { %5563 = vpow2.f32 %v4451_v23 }
0x1573   :  { %v5560_v21 = vpop.eup %5559 }
0x1574   :  { %1326 = vrot.lane.b32.xlu0 %v5560_v21, %s5982_s23  ;;  %v5562_v22 = vpop.eup %5561 }
0x1575   :  { %v5564_v24 = vpop.eup %5563 }
0x1576   :  { %v1053_v25 = vadd.f32 1.0, %v5564_v24 }
0x1578   :  { %1059 = vrot.lane.b32.xlu0 %v5562_v22, %s5982_s23  ;;  %5565 = vrcp.f32 %v1053_v25  ;;  %v1207_v22 = vadd.f32 %v6330_v39, %v6386_v9 }
0x1582   :  { %v5566_v28 = vpop.eup %5565 }
0x1583   :  { %v1057_v32 = vmul.f32 %v5566_v28, %v6340_v51 }
0x15e6   :  { %v1327_v26 = vpop.permute.xlu0 %1326 }
0x15e7   :  { %v1329_v27 = vmul.f32 %v5558_v15, %v1327_v26 }
0x15e9   :  { %1331 = vrot.lane.b32.xlu1 %v1329_v27, %s5983_s26 }
0x15ea   :  { %v1060_v29 = vpop.permute.xlu0 %1059 }
0x15eb   :  { %v1062_v30 = vmul.f32 %v5566_v28, %v1060_v29 }
0x15ed   :  { %1064 = vrot.lane.b32.xlu0 %v1062_v30, %s5982_s23 }
0x165b   :  { %v1332_v31 = vpop.permute.xlu1 %1331 }
0x165c   :  { %1334 = vst.msk [vmem:[#allocation11] sm:$0xff] %vm122_vm1, %v1332_v31  ;;  %4975 = vmatmul.mubr.msk.f32.vlgmr.msra.gmra.mrb[12].mxu1 %vm122_vm1, %v1332_v31 }
0x165d   :  { %5371 = vmatpush3.bf16.msra.mxu1 %v6350_v55  ;;  %4996 = vmatprep.mubr.msk.f32.mxu1 %vm5980_vm0, %v5981_v1 }
0x165e   :  { %5372 = vmatprep.subr.bf16.mxu1 %v5979_v0 }
0x165f   :  { %v1065_v33 = vpop.permute.xlu0 %1064 }
0x1660   :  { %v1067_v34 = vadd.f32 %v1065_v33, %v1057_v32 }
0x1661   :  { %5374 = vmatpush3.bf16.msra.mxu1 %v6360_v58 }
0x1662   :  { %5567 = vtanh.f32 %v1067_v34  ;;  %5381 = vmatprep.subr.bf16.mxu1 %v5979_v0 }
0x166c   :  { %v5568_v35 = vpop.eup %5567 }
0x166d   :  { %1070 = vrot.lane.b32.xlu0 %v5568_v35, %s5982_s23 }
0x16df   :  { %v1071_v36 = vpop.permute.xlu0 %1070 }
0x16e0   :  { %v1073_v38 = vmul.f32 %v5566_v28, %v1071_v36 }
0x16e2   :  { %1075 = vrot.lane.b32.xlu0 %v1073_v38, %s5983_s26 }
0x172f   :  { %v1403_v44 = vpop.f32.mrb[12].mxu1 }
0x1730   :  { %v1407_v3 = vadd.f32 %v1403_v44, %v1197_v40  ;;  %v4976_v45 = vpop.f32.mrb[13].mxu1  ;;  %v1212_v44 = vadd.f32 %v6386_v9, %v6337_v43 }
0x1732   :  { %5569 = vtanh.f32 %v1407_v3  ;;  %v4472_v49 = vmul.f32 -1.442695, %v1407_v3 }
0x1734   :  { %5571 = vpow2.f32 %v4472_v49 }
0x173c   :  { %v5570_v46 = vpop.eup %5569 }
0x173d   :  { %1417 = vrot.lane.b32.xlu1 %v5570_v46, %s5982_s23 }
0x173e   :  { %v5572_v50 = vpop.eup %5571 }
0x173f   :  { %v1411_v37 = vadd.f32 1.0, %v5572_v50 }
0x1741   :  { %5573 = vrcp.f32 %v1411_v37 }
0x174b   :  { %v5574_v51 = vpop.eup %5573 }
0x174c   :  { %v1415_v54 = vmul.f32 %v5574_v51, %v1323_v20 }
0x1754   :  { %v1076_v47 = vpop.permute.xlu0 %1075 }
0x1755   :  { %1079 = vst.msk [vmem:[#allocation2 + $0x38] sm:$0xff] %vm122_vm1, %v1076_v47 }
0x175c   :  { %v1087_v48 = vld [vmem:[#allocation2 + $0x38] sm:$0xff] }
0x175d   :  { %4953 = vmatmul.mubr.msk.f32.gmra.mrb[20].mxu0 %vm122_vm1, %v1087_v48 }
0x175e   :  { %4985 = vmatprep.mubr.msk.f32.mxu0 %vm5980_vm0, %v5981_v1 }
0x17af   :  { %v1418_v52 = vpop.permute.xlu1 %1417 }
0x17b0   :  { %v1420_v53 = vmul.f32 %v5574_v51, %v1418_v52 }
0x17b2   :  { %1422 = vrot.lane.b32.xlu1 %v1420_v53, %s5982_s23 }
0x1824   :  { %v1423_v56 = vpop.permute.xlu1 %1422 }
0x1825   :  { %v1425_v57 = vadd.f32 %v1423_v56, %v1415_v54 }
0x1827   :  { %5575 = vtanh.f32 %v1425_v57 }
0x1830   :  { %v6414_v59 = vpop.f32.mrb[20].mxu0 }
0x1831   :  { %v5576_v60 = vpop.eup %5575  ;;  %v6416_v61 = vpop.f32.mrb[21].mxu0 }
0x1832   :  { %1428 = vrot.lane.b32.xlu1 %v5576_v60, %s5982_s23 }
0x18a4   :  { %v1429_v63 = vpop.permute.xlu1 %1428 }
0x18a5   :  { %v1431_v4 = vmul.f32 %v5574_v51, %v1429_v63 }
0x18a7   :  { %1433 = vrot.lane.b32.xlu1 %v1431_v4, %s5983_s26  ;;  %v1217_v4 = vadd.f32 %v6335_v42, %v6386_v9 }
0x1919   :  { %v1434_v5 = vpop.permute.xlu1 %1433 }
0x191a   :  { %1437 = vst.msk [vmem:[#allocation11 + $0x8] sm:$0xff] %vm122_vm1, %v1434_v5  ;;  %4986 = vmatmul.mubr.msk.f32.vlgmr.msra.gmra.mrb[22].mxu0 %vm122_vm1, %v1434_v5 }
0x191b   :  { %5377 = vmatpush3.bf16.msra.mxu0 %v6350_v55  ;;  %5007 = vmatprep.mubr.msk.f32.mxu0 %vm5980_vm0, %v5981_v1 }
0x191c   :  { %5378 = vmatprep.subr.bf16.mxu0 %v5979_v0 }
0x191f   :  { %5380 = vmatpush3.bf16.msra.mxu0 %v6360_v58 }
0x1920   :  { %5387 = vmatprep.subr.bf16.mxu0 %v5979_v0 }
0x19ed   :  { %v1506_v7 = vpop.f32.mrb[22].mxu0 }
0x19ee   :  { %v1510_v8 = vadd.f32 %v1506_v7, %v1202_v6  ;;  %v4987_v10 = vpop.f32.mrb[23].mxu0 }
0x19f0   :  { %5577 = vtanh.f32 %v1510_v8  ;;  %v4474_v12 = vmul.f32 -1.442695, %v1510_v8 }
0x19f2   :  { %5579 = vpow2.f32 %v4474_v12 }
0x19fa   :  { %v5578_v11 = vpop.eup %5577 }
0x19fb   :  { %1520 = vrot.lane.b32.xlu0 %v5578_v11, %s5982_s23 }
0x19fc   :  { %v5580_v14 = vpop.eup %5579 }
0x19fd   :  { %v1514_v13 = vadd.f32 1.0, %v5580_v14 }
0x19ff   :  { %5581 = vrcp.f32 %v1514_v13 }
0x1a09   :  { %v5582_v16 = vpop.eup %5581 }
0x1a0a   :  { %v1518_v62 = vmul.f32 %v5582_v16, %v1425_v57 }
0x1a6d   :  { %v1521_v2 = vpop.permute.xlu0 %1520 }
0x1a6e   :  { %v1523_v15 = vmul.f32 %v5582_v16, %v1521_v2  ;;  %v2064_v2 = vld [vmem:[%s7109_s10] sm:$0xff] }
0x1a70   :  { %1525 = vrot.lane.b32.xlu1 %v1523_v15, %s5982_s23  ;;  %v2065_v15 = vld [vmem:[%s7109_s10 + $0x8] sm:$0xff] }
0x1ae2   :  { %v1526_v17 = vpop.permute.xlu1 %1525 }
0x1ae3   :  { %v1528_v41 = vadd.f32 %v1526_v17, %v1518_v62  ;;  %v5399_v62 = vpack.c.bf16 %v2065_v15, %v2064_v2 }
0x1ae5   :  { %5583 = vtanh.f32 %v1528_v41 }
0x1aef   :  { %v5584_v18 = vpop.eup %5583 }
0x1af0   :  { %1531 = vrot.lane.b32.xlu0 %v5584_v18, %s5982_s23 }
0x1b62   :  { %v1532_v19 = vpop.permute.xlu0 %1531 }
0x1b63   :  { %v1534_v20 = vmul.f32 %v5582_v16, %v1532_v19  ;;  %v2066_v19 = vld [vmem:[%s7109_s10 + $0x10] sm:$0xff] }
0x1b65   :  { %1536 = vrot.lane.b32.xlu1 %v1534_v20, %s5983_s26  ;;  %v2067_v20 = vld [vmem:[%s7109_s10 + $0x18] sm:$0xff] }
0x1bd7   :  { %v1537_v21 = vpop.permute.xlu1 %1536 }
0x1bd8   :  { %1540 = vst.msk [vmem:[#allocation11 + $0x10] sm:$0xff] %vm122_vm1, %v1537_v21  ;;  %4997 = vmatmul.mubr.msk.f32.vlgmr.msra.gmra.mrb[14].mxu1 %vm122_vm1, %v1537_v21  ;;  %v5403_v21 = vpack.c.bf16 %v2067_v20, %v2066_v19  ;;  %v2213_v19 = vld [vmem:[%s7103_s4 + $0x8] sm:$0xff] }
0x1bd9   :  { %5383 = vmatpush3.bf16.msra.mxu1 %v6350_v55  ;;  %5018 = vmatprep.mubr.msk.f32.mxu1 %vm5980_vm0, %v5981_v1 }
0x1bda   :  { %5384 = vmatprep.subr.bf16.mxu1 %v5979_v0 }
0x1bdd   :  { %5386 = vmatpush3.bf16.msra.mxu1 %v6360_v58 }
0x1bde   :  { %5393 = vmatprep.subr.bf16.mxu1 %v5979_v0 }
0x1cab   :  { %v1609_v23 = vpop.f32.mrb[14].mxu1 }
0x1cac   :  { %v1613_v24 = vadd.f32 %v1609_v23, %v1207_v22  ;;  %v4998_v25 = vpop.f32.mrb[15].mxu1  ;;  %v2056_v23 = vld [vmem:[#allocation11] sm:$0xff] }
0x1cad   :  { %v2058_v25 = vld [vmem:[#allocation11 + $0x10] sm:$0xff] }
0x1cae   :  { %5585 = vtanh.f32 %v1613_v24  ;;  %v4476_v27 = vmul.f32 -1.442695, %v1613_v24  ;;  %v2057_v24 = vld [vmem:[#allocation11 + $0x8] sm:$0xff] }
0x1cb0   :  { %5587 = vpow2.f32 %v4476_v27 }
0x1cb8   :  { %v5586_v26 = vpop.eup %5585 }
0x1cb9   :  { %1623 = vrot.lane.b32.xlu0 %v5586_v26, %s5982_s23 }
0x1cba   :  { %v5588_v28 = vpop.eup %5587 }
0x1cbb   :  { %v1617_v29 = vadd.f32 1.0, %v5588_v28 }
0x1cbd   :  { %5589 = vrcp.f32 %v1617_v29  ;;  %v1222_v29 = vadd.f32 %v6386_v9, %v6416_v61 }
0x1cc7   :  { %v5590_v30 = vpop.eup %5589 }
0x1cc8   :  { %v1621_v33 = vmul.f32 %v5590_v30, %v1528_v41 }
0x1d2b   :  { %v1624_v31 = vpop.permute.xlu0 %1623 }
0x1d2c   :  { %v1626_v32 = vmul.f32 %v5590_v30, %v1624_v31 }
0x1d2e   :  { %1628 = vrot.lane.b32.xlu1 %v1626_v32, %s5982_s23 }
0x1da0   :  { %v1629_v34 = vpop.permute.xlu1 %1628 }
0x1da1   :  { %v1631_v39 = vadd.f32 %v1629_v34, %v1621_v33  ;;  %v6503_v33 = vld [vmem:[%s7111_s12] ss:$0 sm:$0xff] }
0x1da3   :  { %5591 = vtanh.f32 %v1631_v39 }
0x1dad   :  { %v5592_v35 = vpop.eup %5591 }
0x1dae   :  { %1634 = vrot.lane.b32.xlu0 %v5592_v35, %s5982_s23 }
0x1e20   :  { %v1635_v36 = vpop.permute.xlu0 %1634 }
0x1e21   :  { %v1637_v38 = vmul.f32 %v5590_v30, %v1635_v36 }
0x1e23   :  { %1639 = vrot.lane.b32.xlu1 %v1637_v38, %s5983_s26 }
0x1e95   :  { %v1640_v40 = vpop.permute.xlu1 %1639 }
0x1e96   :  { %1643 = vst.msk [vmem:[#allocation11 + $0x18] sm:$0xff] %vm122_vm1, %v1640_v40  ;;  %5008 = vmatmul.mubr.msk.f32.vlgmr.msra.gmra.mrb[24].mxu0 %vm122_vm1, %v1640_v40 }
0x1e97   :  { %5389 = vmatpush3.bf16.msra.mxu0 %v6350_v55  ;;  %5029 = vmatprep.mubr.msk.f32.mxu0 %vm5980_vm0, %v5981_v1 }
0x1e98   :  { %5390 = vmatprep.subr.bf16.mxu0 %v5979_v0 }
0x1e9b   :  { %5392 = vmatpush3.bf16.msra.mxu0 %v6360_v58 }
0x1e9c   :  { %5400 = vmatprep.subr.bf16.mxu0 %v5399_v62 }
0x1e9d   :  { %v2059_v26 = vld [vmem:[#allocation11 + $0x18] sm:$0xff] }
0x1f69   :  { %v1712_v3 = vpop.f32.mrb[24].mxu0 }
0x1f6a   :  { %v1716_v45 = vadd.f32 %v1712_v3, %v1212_v44  ;;  %v5009_v46 = vpop.f32.mrb[25].mxu0 }
0x1f6c   :  { %5593 = vtanh.f32 %v1716_v45  ;;  %v4478_v48 = vmul.f32 -1.442695, %v1716_v45 }
0x1f6e   :  { %5595 = vpow2.f32 %v4478_v48 }
0x1f76   :  { %v5594_v47 = vpop.eup %5593 }
0x1f77   :  { %1726 = vrot.lane.b32.xlu0 %v5594_v47, %s5982_s23 }
0x1f78   :  { %v5596_v49 = vpop.eup %5595 }
0x1f79   :  { %v1720_v50 = vadd.f32 1.0, %v5596_v49 }
0x1f7b   :  { %5597 = vrcp.f32 %v1720_v50 }
0x1f85   :  { %v5598_v37 = vpop.eup %5597 }
0x1f86   :  { %v1724_v53 = vmul.f32 %v5598_v37, %v1631_v39 }
0x1fe9   :  { %v1727_v51 = vpop.permute.xlu0 %1726 }
0x1fea   :  { %v1729_v52 = vmul.f32 %v5598_v37, %v1727_v51 }
0x1fec   :  { %1731 = vrot.lane.b32.xlu1 %v1729_v52, %s5982_s23 }
0x205e   :  { %v1732_v54 = vpop.permute.xlu1 %1731 }
0x205f   :  { %v1734_v43 = vadd.f32 %v1732_v54, %v1724_v53 }
0x2061   :  { %5599 = vtanh.f32 %v1734_v43 }
0x206b   :  { %v5600_v56 = vpop.eup %5599 }
0x206c   :  { %1737 = vrot.lane.b32.xlu0 %v5600_v56, %s5982_s23 }
0x20de   :  { %v1738_v57 = vpop.permute.xlu0 %1737 }
0x20df   :  { %v1740_v60 = vmul.f32 %v5598_v37, %v1738_v57 }
0x20e1   :  { %1742 = vrot.lane.b32.xlu1 %v1740_v60, %s5983_s26 }
0x2153   :  { %v1743_v63 = vpop.permute.xlu1 %1742 }
0x2154   :  { %1746 = vst.msk [vmem:[#allocation11 + $0x20] sm:$0xff] %vm122_vm1, %v1743_v63  ;;  %5019 = vmatmul.mubr.msk.f32.vlgmr.msra.gmra.mrb[16].mxu1 %vm122_vm1, %v1743_v63 }
0x2155   :  { %5395 = vmatpush3.bf16.msra.mxu1 %v6350_v55  ;;  %5040 = vmatprep.mubr.msk.f32.mxu1 %vm5980_vm0, %v5981_v1 }
0x2156   :  { %5396 = vmatprep.subr.bf16.mxu1 %v5979_v0 }
0x2159   :  { %5398 = vmatpush3.bf16.msra.mxu1 %v6360_v58 }
0x215b   :  { %v2060_v27 = vld [vmem:[#allocation11 + $0x20] sm:$0xff] }
0x2227   :  { %v1815_v5 = vpop.f32.mrb[16].mxu1 }
0x2228   :  { %v1819_v6 = vadd.f32 %v1815_v5, %v1217_v4  ;;  %v5020_v7 = vpop.f32.mrb[17].mxu1  ;;  %v6527_v5 = vld [vmem:[%s7122_s8] sm:$0xff] }
0x2229   :  { %v1227_v7 = vadd.f32 %v6414_v59, %v6386_v9  ;;  %v2328_v59 = vld [vmem:[#allocation3] sm:$0xff] }
0x222a   :  { %5601 = vtanh.f32 %v1819_v6  ;;  %v4480_v10 = vmul.f32 -1.442695, %v1819_v6 }
0x222c   :  { %5603 = vpow2.f32 %v4480_v10 }
0x2234   :  { %v5602_v8 = vpop.eup %5601 }
0x2235   :  { %1829 = vrot.lane.b32.xlu0 %v5602_v8, %s5982_s23 }
0x2236   :  { %v5604_v55 = vpop.eup %5603 }
0x2237   :  { %v1823_v11 = vadd.f32 1.0, %v5604_v55 }
0x2239   :  { %5605 = vrcp.f32 %v1823_v11 }
0x2243   :  { %v5606_v12 = vpop.eup %5605 }
0x2244   :  { %v1827_v58 = vmul.f32 %v5606_v12, %v1734_v43 }
0x22a7   :  { %v1830_v14 = vpop.permute.xlu0 %1829 }
0x22a8   :  { %v1832_v13 = vmul.f32 %v5606_v12, %v1830_v14 }
0x22aa   :  { %1834 = vrot.lane.b32.xlu1 %v1832_v13, %s5982_s23 }
0x231c   :  { %v1835_v16 = vpop.permute.xlu1 %1834 }
0x231d   :  { %v6472_v42 = vadd.f32 %v1835_v16, %v1827_v58 }
0x231f   :  { %5607 = vtanh.f32 %v6472_v42 }
0x2329   :  { %v5608_v17 = vpop.eup %5607 }
0x232a   :  { %1840 = vrot.lane.b32.xlu0 %v5608_v17, %s5982_s23 }
0x239c   :  { %v1841_v41 = vpop.permute.xlu0 %1840 }
0x239d   :  { %v1843_v18 = vmul.f32 %v5606_v12, %v1841_v41 }
0x239f   :  { %1845 = vrot.lane.b32.xlu1 %v1843_v18, %s5983_s26  ;;  %v2212_v18 = vld [vmem:[%s7103_s4] sm:$0xff] }
0x23a0   :  { %v5407_v20 = vpack.c.bf16 %v2213_v19, %v2212_v18 }
0x23a2   :  { %5408 = vmatprep.subr.bf16.mxu1 %v5407_v20 }
0x2411   :  { %v1846_v22 = vpop.permute.xlu1 %1845 }
0x2412   :  { %1849 = vst.msk [vmem:[#allocation11 + $0x28] sm:$0xff] %vm122_vm1, %v1846_v22  ;;  %5030 = vmatmul.mubr.msk.f32.vlgmr.msra.gmra.mrb[26].mxu0 %vm122_vm1, %v1846_v22  ;;  %v2215_v22 = vld [vmem:[%s7103_s4 + $0x18] sm:$0xff] }
0x2413   :  { %5402 = vmatpush3.bf16.msra.mxu0 %v5399_v62  ;;  %5051 = vmatprep.mubr.msk.f32.mxu0 %vm122_vm1, %v2056_v23  ;;  %v2329_v62 = vld [vmem:[#allocation3 + $0x8] sm:$0xff] }
0x2414   :  { %5404 = vmatprep.subr.bf16.mxu0 %v5403_v21  ;;  %v6536_v17 = vpack.c.bf16 %v2329_v62, %v2328_v59  ;;  %v2954_v62 = vld [vmem:[%s7110_s11 + $0x8] sm:$0xff] }
0x2417   :  { %5406 = vmatpush3.bf16.msra.mxu0 %v5403_v21  ;;  %v2214_v21 = vld [vmem:[%s7103_s4 + $0x10] sm:$0xff] }
0x2418   :  { %5415 = vmatprep.subr.bf16.mxu0 %v5979_v0  ;;  %v5411_v23 = vpack.c.bf16 %v2215_v22, %v2214_v21 }
0x2419   :  { %v2061_v28 = vld [vmem:[#allocation11 + $0x28] sm:$0xff] }
0x241a   :  { %5052 = vmatmul.mubr.msk.f32.vlgmr.msra.gmra.mrb[28].mxu0 %vm122_vm1, %v2057_v24  ;;  %v6557_v24 = vld [vmem:[%s7122_s8 + $0x8] sm:$0xff] }
0x241b   :  { %5054 = vmatprep.mubr.msk.f32.mxu0 %vm122_vm1, %v2058_v25  ;;  %5417 = vmatpush3.bf16.msra.mxu0 %v6536_v17 }
0x241c   :  { %5421 = vmatprep.subr.bf16.mxu0 %v5979_v0 }
0x241e   :  { %5055 = vmatmul.mubr.msk.f32.gmra.mrb[30].mxu0 %vm122_vm1, %v2059_v26  ;;  %v6565_v26 = vld [vmem:[%s7122_s8 + $0x10] sm:$0xff] }
0x241f   :  { %5057 = vmatprep.mubr.msk.f32.mxu0 %vm122_vm1, %v2060_v27 }
0x2422   :  { %5058 = vmatmul.mubr.msk.f32.gmra.mrb[32].mxu0 %vm122_vm1, %v2061_v28  ;;  %v6574_v28 = vld [vmem:[%s7122_s8 + $0x18] sm:$0xff] }
0x24e5   :  { %v1918_v30 = vpop.f32.mrb[26].mxu0 }
0x24e6   :  { %v1922_v31 = vadd.f32 %v1918_v30, %v1222_v29  ;;  %v5031_v32 = vpop.f32.mrb[27].mxu0  ;;  %v6581_v29 = vld [vmem:[%s7122_s8 + $0x20] sm:$0xff]  ;;  %v6588_v30 = vld [vmem:[%s7122_s8 + $0x28] sm:$0xff] }
0x24e7   :  { %v6602_v32 = vld [vmem:[%s7122_s8 + $0x38] sm:$0xff] }
0x24e8   :  { %5609 = vtanh.f32 %v1922_v31  ;;  %v4482_v49 = vmul.f32 -1.442695, %v1922_v31  ;;  %v6595_v31 = vld [vmem:[%s7122_s8 + $0x30] sm:$0xff] }
0x24ea   :  { %5611 = vpow2.f32 %v4482_v49 }
0x24ed   :  { %v5053_v34 = vpop.f32.mrb[28].mxu0 }
0x24ee   :  { %v2171_v39 = vadd.f32 %v5053_v34, %v6503_v33  ;;  %v2165_v35 = vpop.f32.mrb[29].mxu0 }
0x24ef   :  { %v2166_v36 = vadd.f32 %v6503_v33, %v2165_v35 }
0x24f0   :  { %2205 = vst.msk [vmem:[#allocation12 + $0x8] sm:$0xff] %vm122_vm1, %v2171_v39 }
0x24f1   :  { %2204 = vst.msk [vmem:[#allocation12] sm:$0xff] %vm122_vm1, %v2166_v36  ;;  %v5056_v61 = vpop.f32.mrb[30].mxu0  ;;  %v6617_v36 = vld [vmem:[#allocation6] ss:$0 sm:$0xff] }
0x24f2   :  { %v5610_v38 = vpop.eup %5609  ;;  %v2181_v40 = vadd.f32 %v5056_v61, %v6503_v33  ;;  %v2175_v44 = vpop.f32.mrb[31].mxu0 }
0x24f3   :  { %v2176_v3 = vadd.f32 %v6503_v33, %v2175_v44  ;;  %1932 = vrot.lane.b32.xlu0 %v5610_v38, %s5982_s23 }
0x24f4   :  { %2207 = vst.msk [vmem:[#allocation12 + $0x18] sm:$0xff] %vm122_vm1, %v2181_v40  ;;  %v5612_v50 = vpop.eup %5611 }
0x24f5   :  { %2206 = vst.msk [vmem:[#allocation12 + $0x10] sm:$0xff] %vm122_vm1, %v2176_v3  ;;  %v5059_v45 = vpop.f32.mrb[32].mxu0  ;;  %v1926_v37 = vadd.f32 1.0, %v5612_v50 }
0x24f6   :  { %v2191_v46 = vadd.f32 %v5059_v45, %v6503_v33  ;;  %v2185_v47 = vpop.f32.mrb[33].mxu0 }
0x24f7   :  { %v2186_v48 = vadd.f32 %v6503_v33, %v2185_v47  ;;  %5613 = vrcp.f32 %v1926_v37 }
0x24f8   :  { %2209 = vst.msk [vmem:[#allocation12 + $0x28] sm:$0xff] %vm122_vm1, %v2191_v46 }
0x24f9   :  { %2208 = vst.msk [vmem:[#allocation12 + $0x20] sm:$0xff] %vm122_vm1, %v2186_v48 }
0x2501   :  { %v5614_v51 = vpop.eup %5613 }
0x2502   :  { %v1930_v54 = vmul.f32 %v5614_v51, %v6472_v42 }
0x2565   :  { %v1933_v52 = vpop.permute.xlu0 %1932 }
0x2566   :  { %v1935_v53 = vmul.f32 %v5614_v51, %v1933_v52 }
0x2568   :  { %1937 = vrot.lane.b32.xlu1 %v1935_v53, %s5982_s23 }
0x25da   :  { %v1938_v43 = vpop.permute.xlu1 %1937 }
0x25db   :  { %v1940_v56 = vadd.f32 %v1938_v43, %v1930_v54 }
0x25dd   :  { %5615 = vtanh.f32 %v1940_v56 }
0x25e7   :  { %v5616_v57 = vpop.eup %5615 }
0x25e8   :  { %1943 = vrot.lane.b32.xlu0 %v5616_v57, %s5982_s23 }
0x265a   :  { %v1944_v60 = vpop.permute.xlu0 %1943 }
0x265b   :  { %v1946_v63 = vmul.f32 %v5614_v51, %v1944_v60 }
0x265d   :  { %1948 = vrot.lane.b32.xlu1 %v1946_v63, %s5983_s26 }
0x26cf   :  { %v1949_v4 = vpop.permute.xlu1 %1948 }
0x26d0   :  { %1952 = vst.msk [vmem:[#allocation11 + $0x30] sm:$0xff] %vm122_vm1, %v1949_v4  ;;  %5041 = vmatmul.mubr.msk.f32.vlgmr.msra.gmra.mrb[18].mxu1 %vm122_vm1, %v1949_v4 }
0x26d1   :  { %5071 = vmatprep.mubr.msk.f32.mxu1 %vm122_vm1, %v6527_v5  ;;  %5410 = vmatpush3.bf16.msra.mxu1 %v5407_v20 }
0x26d2   :  { %5412 = vmatprep.subr.bf16.mxu1 %v5411_v23 }
0x26d5   :  { %5414 = vmatpush3.bf16.msra.mxu1 %v5411_v23 }
0x26d6   :  { %5418 = vmatprep.subr.bf16.mxu1 %v5979_v0 }
0x26d7   :  { %v2062_v6 = vld [vmem:[#allocation11 + $0x30] sm:$0xff] }
0x26d8   :  { %5060 = vmatprep.mubr.msk.f32.mxu0 %vm122_vm1, %v2062_v6  ;;  %5072 = vmatmul.mubr.msk.f32.vlgmr.msra.gmra.mrb[20].mxu1 %vm122_vm1, %v6557_v24 }
0x26d9   :  { %5420 = vmatpush3.bf16.msra.mxu1 %v6536_v17  ;;  %5074 = vmatprep.mubr.msk.f32.mxu1 %vm122_vm1, %v6565_v26 }
0x26da   :  { %5424 = vmatprep.subr.bf16.mxu1 %v5979_v0 }
0x26dc   :  { %5075 = vmatmul.mubr.msk.f32.gmra.mrb[22].mxu1 %vm122_vm1, %v6574_v28 }
0x26dd   :  { %5077 = vmatprep.mubr.msk.f32.mxu1 %vm122_vm1, %v6581_v29 }
0x26e0   :  { %5078 = vmatmul.mubr.msk.f32.gmra.mrb[24].mxu1 %vm122_vm1, %v6588_v30 }
0x26e1   :  { %5080 = vmatprep.mubr.msk.f32.mxu1 %vm122_vm1, %v6595_v31 }
0x26e4   :  { %5081 = vmatmul.mubr.msk.f32.gmra.mrb[26].mxu1 %vm122_vm1, %v6602_v32 }
0x26e5   :  { %5094 = vmatprep.mubr.msk.f32.mxu1 %vm5980_vm0, %v5981_v1 }
0x27a3   :  { %v2021_v8 = vpop.f32.mrb[18].mxu1 }
0x27a4   :  { %v2025_v10 = vadd.f32 %v2021_v8, %v1227_v7  ;;  %v5042_v55 = vpop.f32.mrb[19].mxu1 }
0x27a6   :  { %5617 = vtanh.f32 %v2025_v10  ;;  %v4484_v12 = vmul.f32 -1.442695, %v2025_v10 }
0x27a8   :  { %5619 = vpow2.f32 %v4484_v12 }
0x27ab   :  { %v5073_v35 = vpop.f32.mrb[20].mxu1 }
0x27ac   :  { %v6619_v61 = vpop.f32.mrb[21].mxu1  ;;  %v6622_v38 = vadd.f32 %v5073_v35, %v6617_v36 }
0x27af   :  { %v5076_v40 = vpop.f32.mrb[22].mxu1 }
0x27b0   :  { %v5618_v11 = vpop.eup %5617  ;;  %v2305_v44 = vadd.f32 %v5076_v40, %v6617_v36  ;;  %v2299_v3 = vpop.f32.mrb[23].mxu1 }
0x27b1   :  { %2035 = vrot.lane.b32.xlu0 %v5618_v11, %s5982_s23  ;;  %v2300_v45 = vadd.f32 %v6617_v36, %v2299_v3 }
0x27b2   :  { %v5620_v14 = vpop.eup %5619 }
0x27b3   :  { %v2029_v13 = vadd.f32 1.0, %v5620_v14  ;;  %v5079_v46 = vpop.f32.mrb[24].mxu1 }
0x27b4   :  { %v6755_v47 = vadd.f32 %v5079_v46, %v6617_v36  ;;  %v2309_v48 = vpop.f32.mrb[25].mxu1  ;;  %v3093_v46 = vld [vmem:[%s7106_s7 + $0x8] sm:$0xff] }
0x27b5   :  { %5621 = vrcp.f32 %v2029_v13  ;;  %v2310_v49 = vadd.f32 %v6617_v36, %v2309_v48 }
0x27b7   :  { %v5082_v50 = vpop.f32.mrb[26].mxu1 }
0x27b8   :  { %v6759_v37 = vadd.f32 %v5082_v50, %v6617_v36  ;;  %v2319_v51 = vpop.f32.mrb[27].mxu1 }
0x27b9   :  { %v6762_v52 = vadd.f32 %v6617_v36, %v2319_v51 }
0x27bf   :  { %v5622_v58 = vpop.eup %5621 }
0x27c0   :  { %v2033_v2 = vmul.f32 %v5622_v58, %v1940_v56  ;;  %v2290_v56 = vadd.f32 %v6617_v36, %v6619_v61 }
0x2823   :  { %v2036_v16 = vpop.permute.xlu0 %2035 }
0x2824   :  { %v2038_v42 = vmul.f32 %v5622_v58, %v2036_v16 }
0x2826   :  { %2040 = vrot.lane.b32.xlu1 %v2038_v42, %s5982_s23 }
0x2898   :  { %v2041_v15 = vpop.permute.xlu1 %2040 }
0x2899   :  { %v2043_v9 = vadd.f32 %v2041_v15, %v2033_v2 }
0x289b   :  { %5623 = vtanh.f32 %v2043_v9 }
0x28a5   :  { %v5624_v41 = vpop.eup %5623 }
0x28a6   :  { %2046 = vrot.lane.b32.xlu0 %v5624_v41, %s5982_s23 }
0x2918   :  { %v2047_v25 = vpop.permute.xlu0 %2046 }
0x2919   :  { %v2049_v27 = vmul.f32 %v5622_v58, %v2047_v25 }
0x291b   :  { %2051 = vrot.lane.b32.xlu1 %v2049_v27, %s5983_s26 }
0x298d   :  { %v2052_v34 = vpop.permute.xlu1 %2051 }
0x298e   :  { %2055 = vst.msk [vmem:[#allocation11 + $0x38] sm:$0xff] %vm122_vm1, %v2052_v34 }
0x2995   :  { %v2063_v39 = vld [vmem:[#allocation11 + $0x38] sm:$0xff] }
0x2996   :  { %5061 = vmatmul.mubr.msk.f32.gmra.mrb[34].mxu0 %vm122_vm1, %v2063_v39 }
0x2997   :  { %5087 = vmatprep.mubr.msk.f32.mxu0 %vm5980_vm0, %v5981_v1 }
0x299a   :  { %5088 = vmatmul.mubr.f32.vlgmr.msra.gmra.mrb[36].mxu0 %v5981_v1 }
0x299b   :  { %5423 = vmatpush3.bf16.msra.mxu0 %v6536_v17  ;;  %5101 = vmatprep.mubr.msk.f32.mxu0 %vm5980_vm0, %v5981_v1 }
0x299c   :  { %5427 = vmatprep.subr.bf16.mxu0 %v5979_v0 }
0x2a69   :  { %v5062_v53 = vpop.f32.mrb[34].mxu0 }
0x2a6a   :  { %v2201_v54 = vadd.f32 %v5062_v53, %v6503_v33  ;;  %v2195_v43 = vpop.f32.mrb[35].mxu0 }
0x2a6b   :  { %v2196_v57 = vadd.f32 %v6503_v33, %v2195_v43 }
0x2a6c   :  { %2211 = vst.msk [vmem:[#allocation12 + $0x38] sm:$0xff] %vm122_vm1, %v2201_v54 }
0x2a6d   :  { %2210 = vst.msk [vmem:[#allocation12 + $0x30] sm:$0xff] %vm122_vm1, %v2196_v57  ;;  %v2399_v60 = vpop.f32.mrb[36].mxu0 }
0x2a6e   :  { %v2403_v63 = vadd.f32 %v2399_v60, %v2290_v56  ;;  %v5089_v4 = vpop.f32.mrb[37].mxu0 }
0x2a70   :  { %5625 = vtanh.f32 %v2403_v63 }
0x2a7a   :  { %v5626_v6 = vpop.eup %5625 }
0x2a7b   :  { %2405 = vst.msk [vmem:[#allocation15] sm:$0xff] %vm2330_vm2, %v5626_v6  ;;  %5095 = vmatmul.mubr.msk.f32.vlgmr.msra.gmra.mrb[28].mxu1 %vm2330_vm2, %v5626_v6 }
0x2a7c   :  { %5426 = vmatpush3.bf16.msra.mxu1 %v6536_v17  ;;  %5108 = vmatprep.mubr.msk.f32.mxu1 %vm5980_vm0, %v5981_v1 }
0x2a7d   :  { %5430 = vmatprep.subr.bf16.mxu1 %v5979_v0 }
0x2b4e   :  { %v2475_v33 = vpop.f32.mrb[28].mxu1 }
0x2b4f   :  { %v2479_v7 = vadd.f32 %v2475_v33, %v6622_v38  ;;  %v5096_v8 = vpop.f32.mrb[29].mxu1 }
0x2b51   :  { %5627 = vtanh.f32 %v2479_v7 }
0x2b5b   :  { %v5628_v10 = vpop.eup %5627 }
0x2b5c   :  { %2482 = vst.msk [vmem:[#allocation15 + $0x8] sm:$0xff] %vm2330_vm2, %v5628_v10  ;;  %5102 = vmatmul.mubr.msk.f32.vlgmr.msra.gmra.mrb[38].mxu0 %vm2330_vm2, %v5628_v10 }
0x2b5d   :  { %5429 = vmatpush3.bf16.msra.mxu0 %v6536_v17  ;;  %5115 = vmatprep.mubr.msk.f32.mxu0 %vm5980_vm0, %v5981_v1 }
0x2b5e   :  { %5433 = vmatprep.subr.bf16.mxu0 %v5979_v0 }
0x2b63   :  { %v2946_v21 = vld [vmem:[#allocation15 + $0x8] sm:$0xff] }
0x2c2f   :  { %v2552_v55 = vpop.f32.mrb[38].mxu0 }
0x2c30   :  { %v2556_v11 = vadd.f32 %v2552_v55, %v2300_v45  ;;  %v5103_v12 = vpop.f32.mrb[39].mxu0  ;;  %v3092_v45 = vld [vmem:[%s7106_s7] sm:$0xff] }
0x2c31   :  { %v5443_v48 = vpack.c.bf16 %v3093_v46, %v3092_v45 }
0x2c32   :  { %5629 = vtanh.f32 %v2556_v11 }
0x2c3c   :  { %v5630_v14 = vpop.eup %5629 }
0x2c3d   :  { %2559 = vst.msk [vmem:[#allocation15 + $0x10] sm:$0xff] %vm2330_vm2, %v5630_v14  ;;  %5109 = vmatmul.mubr.msk.f32.vlgmr.msra.gmra.mrb[30].mxu1 %vm2330_vm2, %v5630_v14 }
0x2c3e   :  { %5432 = vmatpush3.bf16.msra.mxu1 %v6536_v17  ;;  %5122 = vmatprep.mubr.msk.f32.mxu1 %vm5980_vm0, %v5981_v1 }
0x2c3f   :  { %5436 = vmatprep.subr.bf16.mxu1 %v5979_v0  ;;  %v2953_v0 = vld [vmem:[%s7110_s11] sm:$0xff] }
0x2c40   :  { %v5439_v41 = vpack.c.bf16 %v2954_v62, %v2953_v0 }
0x2c44   :  { %v2947_v22 = vld [vmem:[#allocation15 + $0x10] sm:$0xff] }
0x2d10   :  { %v2629_v13 = vpop.f32.mrb[30].mxu1 }
0x2d11   :  { %v2633_v58 = vadd.f32 %v2629_v13, %v2305_v44  ;;  %v5110_v16 = vpop.f32.mrb[31].mxu1 }
0x2d13   :  { %5631 = vtanh.f32 %v2633_v58 }
0x2d1d   :  { %v5632_v42 = vpop.eup %5631 }
0x2d1e   :  { %2636 = vst.msk [vmem:[#allocation15 + $0x18] sm:$0xff] %vm2330_vm2, %v5632_v42  ;;  %5116 = vmatmul.mubr.msk.f32.vlgmr.msra.gmra.mrb[40].mxu0 %vm2330_vm2, %v5632_v42 }
0x2d1f   :  { %5435 = vmatpush3.bf16.msra.mxu0 %v6536_v17  ;;  %5129 = vmatprep.mubr.msk.f32.mxu0 %vm5980_vm0, %v5981_v1 }
0x2d20   :  { %5440 = vmatprep.subr.bf16.mxu0 %v5439_v41 }
0x2d25   :  { %v2948_v23 = vld [vmem:[#allocation15 + $0x18] sm:$0xff] }
0x2df1   :  { %v2706_v2 = vpop.f32.mrb[40].mxu0 }
0x2df2   :  { %v2710_v15 = vadd.f32 %v2706_v2, %v2310_v49  ;;  %v5117_v9 = vpop.f32.mrb[41].mxu0  ;;  %v3095_v49 = vld [vmem:[%s7106_s7 + $0x18] sm:$0xff] }
0x2df4   :  { %5633 = vtanh.f32 %v2710_v15 }
0x2dfe   :  { %v5634_v59 = vpop.eup %5633 }
0x2dff   :  { %2713 = vst.msk [vmem:[#allocation15 + $0x20] sm:$0xff] %vm2330_vm2, %v5634_v59  ;;  %5123 = vmatmul.mubr.msk.f32.vlgmr.msra.gmra.mrb[32].mxu1 %vm2330_vm2, %v5634_v59 }
0x2e00   :  { %5438 = vmatpush3.bf16.msra.mxu1 %v6536_v17  ;;  %5136 = vmatprep.mubr.msk.f32.mxu1 %vm5980_vm0, %v5981_v1  ;;  %v2945_v1 = vld [vmem:[#allocation15] sm:$0xff] }
0x2e01   :  { %5479 = vmatprep.subr.bf16.mxu1 %v5439_v41 }
0x2e06   :  { %v2949_v40 = vld [vmem:[#allocation15 + $0x20] sm:$0xff] }
0x2ed2   :  { %v2783_v18 = vpop.f32.mrb[32].mxu1 }
0x2ed3   :  { %v2787_v19 = vadd.f32 %v2783_v18, %v6755_v47  ;;  %v5124_v20 = vpop.f32.mrb[33].mxu1  ;;  %v3094_v47 = vld [vmem:[%s7106_s7 + $0x10] sm:$0xff]  ;;  %s5984_s7 = smov [#allocation12]  }
0x2ed4   :  { %v5447_v50 = vpack.c.bf16 %v3095_v49, %v3094_v47  ;;  %s4364_s4 = sshll.u32 %s5984_s7, 4  ;;  %s4365_s4 = int_to_ptr.vmem [resolvable:$true] %s4364_s4 }
0x2ed5   :  { %5635 = vtanh.f32 %v2787_v19  ;;  %s5851_s27 = scalar_lea.vmem %s4365_s4, 1024  ;;  %p5856_p5 = scmp.lt.s32.totalorder %s4365_s4, %s4365_s4 }
0x2ed6   :  { %p5852_p4 = scmp.ne.s32.totalorder %s4365_s4, %s5851_s27  ;;  %p5857_p6 = scmp.lt.s32.totalorder %s5851_s27, %s5851_s27 }
0x2ed8   :  { %p5858_p7 = por %p5857_p6, %p5856_p5 }
0x2eda   :  { %p5859_p8 = pnand %p5858_p7, %p5852_p4 }
0x2edf   :  { %v5636_v17 = vpop.eup %5635 }
0x2ee0   :  { %2790 = vst.msk [vmem:[#allocation15 + $0x28] sm:$0xff] %vm2330_vm2, %v5636_v17  ;;  %5130 = vmatmul.mubr.msk.f32.vlgmr.msra.gmra.mrb[42].mxu0 %vm2330_vm2, %v5636_v17 }
0x2ee1   :  { %5442 = vmatpush3.bf16.msra.mxu0 %v5439_v41  ;;  %5143 = vmatprep.mubr.msk.f32.mxu0 %vm2330_vm2, %v2945_v1 }
0x2ee4   :  { %5144 = vmatmul.mubr.msk.f32.vlgmr.msra.gmra.mrb[44].mxu0 %vm2330_vm2, %v2946_v21 }
0x2ee5   :  { %5146 = vmatprep.mubr.msk.f32.mxu0 %vm2330_vm2, %v2947_v22 }
0x2ee7   :  { %v2950_v44 = vld [vmem:[#allocation15 + $0x28] sm:$0xff] }
0x2ee8   :  { %5147 = vmatmul.mubr.msk.f32.gmra.mrb[46].mxu0 %vm2330_vm2, %v2948_v23 }
0x2fb3   :  { %v2860_v25 = vpop.f32.mrb[42].mxu0 }
0x2fb4   :  { %v2864_v27 = vadd.f32 %v2860_v25, %v6762_v52  ;;  %v5131_v34 = vpop.f32.mrb[43].mxu0 }
0x2fb6   :  { %5637 = vtanh.f32 %v2864_v27 }
0x2fb7   :  { %v5145_v39 = vpop.f32.mrb[44].mxu0 }
0x2fb8   :  { %3085 = vst.msk [vmem:[#allocation14 + $0x8] sm:$0xff] %vm122_vm1, %v5145_v39  ;;  %v3045_v35 = vpop.f32.mrb[45].mxu0 }
0x2fb9   :  { %3084 = vst.msk [vmem:[#allocation14] sm:$0xff] %vm122_vm1, %v3045_v35 }
0x2fbb   :  { %v5148_v36 = vpop.f32.mrb[46].mxu0 }
0x2fbc   :  { %3087 = vst.msk [vmem:[#allocation14 + $0x18] sm:$0xff] %vm122_vm1, %v5148_v36  ;;  %v3055_v61 = vpop.f32.mrb[47].mxu0 }
0x2fbd   :  { %3086 = vst.msk [vmem:[#allocation14 + $0x10] sm:$0xff] %vm122_vm1, %v3055_v61 }
0x2fc0   :  { %v5638_v38 = vpop.eup %5637 }
0x2fc1   :  { %2867 = vst.msk [vmem:[#allocation15 + $0x30] sm:$0xff] %vm2330_vm2, %v5638_v38  ;;  %5137 = vmatmul.mubr.msk.f32.vlgmr.msra.gmra.mrb[34].mxu1 %vm2330_vm2, %v5638_v38 }
0x2fc2   :  { %5480 = vmatpush3.bf16.msra.mxu1 %v5439_v41  ;;  %5149 = vmatprep.mubr.msk.f32.mxu1 %vm2330_vm2, %v2949_v40 }
0x2fc3   :  { %5444 = vmatprep.subr.bf16.mxu1 %v5443_v48 }
0x2fc5   :  { %5150 = vmatmul.mubr.msk.f32.vlgmr.msra.gmra.mrb[36].mxu1 %vm2330_vm2, %v2950_v44 }
0x2fc6   :  { %5446 = vmatpush3.bf16.msra.mxu1 %v5443_v48 }
0x2fc7   :  { %5448 = vmatprep.subr.bf16.mxu1 %v5447_v50 }
0x2fc8   :  { %v2951_v3 = vld [vmem:[#allocation15 + $0x30] sm:$0xff] }
0x2fc9   :  { %5152 = vmatprep.mubr.msk.f32.mxu1 %vm2330_vm2, %v2951_v3 }
0x2fca   :  { %5450 = vmatpush3.bf16.msra.mxu1 %v5447_v50 }
0x3094   :  { %v2937_v51 = vpop.f32.mrb[34].mxu1 }
0x3095   :  { %v2941_v52 = vadd.f32 %v2937_v51, %v6759_v37  ;;  %v5138_v53 = vpop.f32.mrb[35].mxu1 }
0x3097   :  { %5639 = vtanh.f32 %v2941_v52 }
0x3098   :  { %v5151_v54 = vpop.f32.mrb[36].mxu1 }
0x3099   :  { %3089 = vst.msk [vmem:[#allocation14 + $0x28] sm:$0xff] %vm122_vm1, %v5151_v54  ;;  %v3065_v43 = vpop.f32.mrb[37].mxu1 }
0x309a   :  { %3088 = vst.msk [vmem:[#allocation14 + $0x20] sm:$0xff] %vm122_vm1, %v3065_v43 }
0x30a1   :  { %v5640_v56 = vpop.eup %5639 }
0x30a2   :  { %2944 = vst.msk [vmem:[#allocation15 + $0x38] sm:$0xff] %vm2330_vm2, %v5640_v56 }
0x30a9   :  { %v2952_v57 = vld [vmem:[#allocation15 + $0x38] sm:$0xff] }
0x30aa   :  { %5153 = vmatmul.mubr.msk.f32.gmra.mrb[38].mxu1 %vm2330_vm2, %v2952_v57 }
0x30ab   :  { %5163 = vmatprep.mubr.msk.f32.mxu1 %vm122_vm1, %v6527_v5  ;;  %v3208_v5 = vld [vmem:[#allocation8] sm:$0xff] }
0x30ae   :  { %5164 = vmatmul.mubr.msk.f32.vlgmr.msra.gmra.mrb[40].mxu1 %vm122_vm1, %v6557_v24  ;;  %v3209_v24 = vld [vmem:[#allocation8 + $0x8] sm:$0xff] }
0x30af   :  { %5166 = vmatprep.mubr.msk.f32.mxu1 %vm122_vm1, %v6565_v26  ;;  %v6855_v37 = vpack.c.bf16 %v3209_v24, %v3208_v5 }
0x30b1   :  { %5452 = vmatprep.subr.bf16.mxu0 %v6855_v37  ;;  %5456 = vmatprep.subr.bf16.mxu1 %v6855_v37 }
0x30b2   :  { %5167 = vmatmul.mubr.msk.f32.gmra.mrb[42].mxu1 %vm122_vm1, %v6574_v28  ;;  %5454 = vmatpush3.bf16.msra.mxu0 %v6855_v37 }
0x30b3   :  { %5169 = vmatprep.mubr.msk.f32.mxu1 %vm122_vm1, %v6581_v29  ;;  %5458 = vmatpush3.bf16.msra.mxu1 %v6855_v37  ;;  %v4518_v29 = vld [vmem:[#allocation9] ss:$0 sm:$0xff] }
0x30b4   :  { %5460 = vmatprep.subr.bf16.mxu0 %v6855_v37  ;;  %5464 = vmatprep.subr.bf16.mxu1 %v6855_v37 }
0x30b6   :  { %5170 = vmatmul.mubr.msk.f32.gmra.mrb[44].mxu1 %vm122_vm1, %v6588_v30 }
0x30b7   :  { %5172 = vmatprep.mubr.msk.f32.mxu1 %vm122_vm1, %v6595_v31 }
0x30ba   :  { %5173 = vmatmul.mubr.msk.f32.gmra.mrb[46].mxu1 %vm122_vm1, %v6602_v32 }
0x317d   :  { %v5154_v26 = vpop.f32.mrb[38].mxu1 }
0x317e   :  { %3091 = vst.msk [vmem:[#allocation14 + $0x38] sm:$0xff] %vm122_vm1, %v5154_v26  ;;  %v3075_v28 = vpop.f32.mrb[39].mxu1 }
0x317f   :  { %3090 = vst.msk [vmem:[#allocation14 + $0x30] sm:$0xff] %vm122_vm1, %v3075_v28 }
0x3181   :  { %v5165_v30 = vpop.f32.mrb[40].mxu1 }
0x3182   :  { %v6865_v31 = vadd.f32 %v5165_v30, %v4518_v29  ;;  %v3169_v32 = vpop.f32.mrb[41].mxu1 }
0x3183   :  { %v6867_v60 = vadd.f32 %v4518_v29, %v3169_v32 }
0x3184   :  { %5641 = vtanh.f32 %v6865_v31 }
0x3185   :  { %5643 = vtanh.f32 %v6867_v60  ;;  %v5168_v63 = vpop.f32.mrb[42].mxu1 }
0x3186   :  { %v6871_v4 = vadd.f32 %v5168_v63, %v4518_v29  ;;  %v3179_v6 = vpop.f32.mrb[43].mxu1 }
0x3187   :  { %v6873_v33 = vadd.f32 %v4518_v29, %v3179_v6 }
0x3188   :  { %5645 = vtanh.f32 %v6871_v4 }
0x3189   :  { %5647 = vtanh.f32 %v6873_v33  ;;  %v5171_v7 = vpop.f32.mrb[44].mxu1 }
0x318a   :  { %v6877_v8 = vadd.f32 %v5171_v7, %v4518_v29  ;;  %v3189_v10 = vpop.f32.mrb[45].mxu1 }
0x318b   :  { %v6879_v55 = vadd.f32 %v4518_v29, %v3189_v10 }
0x318c   :  { %5649 = vtanh.f32 %v6877_v8 }
0x318d   :  { %5651 = vtanh.f32 %v6879_v55  ;;  %v5174_v11 = vpop.f32.mrb[46].mxu1 }
0x318e   :  { %v5642_v12 = vpop.eup %5641  ;;  %v3205_v14 = vadd.f32 %v5174_v11, %v4518_v29  ;;  %v3199_v13 = vpop.f32.mrb[47].mxu1 }
0x318f   :  { %v5644_v58 = vpop.eup %5643  ;;  %3284 = vst.msk [vmem:[#allocation17 + $0x48] sm:$0xff] %vm2330_vm2, %v5642_v12  ;;  %v3200_v16 = vadd.f32 %v4518_v29, %v3199_v13 }
0x3190   :  { %3282 = vst.msk [vmem:[#allocation17] sm:$0xff] %vm2330_vm2, %v5644_v58  ;;  %5653 = vtanh.f32 %v3205_v14  ;;  %5179 = vmatprep.mubr.msk.f32.mxu0 %vm2330_vm2, %v5644_v58 }
0x3191   :  { %5655 = vtanh.f32 %v3200_v16  ;;  %5180 = vmatmul.mubr.msk.f32.vlgmr.msra.gmra.mrb[48].mxu0 %vm2330_vm2, %v5642_v12 }
0x3192   :  { %v5646_v42 = vpop.eup %5645  ;;  %5462 = vmatpush3.bf16.msra.mxu0 %v6855_v37 }
0x3193   :  { %v5648_v2 = vpop.eup %5647  ;;  %3288 = vst.msk [vmem:[#allocation17 + $0xd8] sm:$0xff] %vm2330_vm2, %v5646_v42  ;;  %5468 = vmatprep.subr.bf16.mxu0 %v6855_v37 }
0x3194   :  { %3286 = vst.msk [vmem:[#allocation17 + $0x90] sm:$0xff] %vm2330_vm2, %v5648_v2  ;;  %5182 = vmatprep.mubr.msk.f32.mxu0 %vm2330_vm2, %v5648_v2 }
0x3195   :  { %5183 = vmatmul.mubr.msk.f32.gmra.mrb[50].mxu0 %vm2330_vm2, %v5646_v42 }
0x3196   :  { %v5650_v15 = vpop.eup %5649 }
0x3197   :  { %v5652_v9 = vpop.eup %5651  ;;  %3292 = vst.msk [vmem:[#allocation17 + $0x168] sm:$0xff] %vm2330_vm2, %v5650_v15 }
0x3198   :  { %3290 = vst.msk [vmem:[#allocation17 + $0x120] sm:$0xff] %vm2330_vm2, %v5652_v9  ;;  %5185 = vmatprep.mubr.msk.f32.mxu0 %vm2330_vm2, %v5652_v9 }
0x3199   :  { %5186 = vmatmul.mubr.msk.f32.gmra.mrb[52].mxu0 %vm2330_vm2, %v5650_v15 }
0x319a   :  { %v5654_v59 = vpop.eup %5653 }
0x319b   :  { %v5656_v0 = vpop.eup %5655  ;;  %3296 = vst.msk [vmem:[#allocation17 + $0x1f8] sm:$0xff] %vm2330_vm2, %v5654_v59 }
0x319c   :  { %3294 = vst.msk [vmem:[#allocation17 + $0x1b0] sm:$0xff] %vm2330_vm2, %v5656_v0  ;;  %5188 = vmatprep.mubr.msk.f32.mxu0 %vm2330_vm2, %v5656_v0 }
0x319d   :  { %5189 = vmatmul.mubr.msk.f32.gmra.mrb[54].mxu0 %vm2330_vm2, %v5654_v59 }
0x3264   :  { %v5181_v62 = vpop.f32.mrb[48].mxu0 }
0x3265   :  { %v3427_v41 = vadd.f32 %v5181_v62, %v6867_v60  ;;  %v3387_v18 = vpop.f32.mrb[49].mxu0 }
0x3266   :  { %5657 = vtanh.f32 %v3387_v18 }
0x3267   :  { %5659 = vtanh.f32 %v3427_v41 }
0x3268   :  { %v5184_v19 = vpop.f32.mrb[50].mxu0 }
0x3269   :  { %v3429_v20 = vadd.f32 %v5184_v19, %v6873_v33  ;;  %v3397_v17 = vpop.f32.mrb[51].mxu0 }
0x326a   :  { %v3428_v1 = vadd.f32 %v3397_v17, %v6865_v31 }
0x326b   :  { %5661 = vtanh.f32 %v3429_v20 }
0x326c   :  { %5663 = vtanh.f32 %v3428_v1  ;;  %v5187_v21 = vpop.f32.mrb[52].mxu0 }
0x326d   :  { %v3431_v22 = vadd.f32 %v5187_v21, %v6879_v55  ;;  %v3407_v23 = vpop.f32.mrb[53].mxu0 }
0x326e   :  { %v3430_v25 = vadd.f32 %v3407_v23, %v6871_v4 }
0x326f   :  { %5665 = vtanh.f32 %v3431_v22 }
0x3270   :  { %v5658_v27 = vpop.eup %5657  ;;  %5667 = vtanh.f32 %v3430_v25  ;;  %v5190_v34 = vpop.f32.mrb[54].mxu0 }
0x3271   :  { %v5660_v39 = vpop.eup %5659  ;;  %v3433_v35 = vadd.f32 %v5190_v34, %v3200_v16  ;;  %v3417_v36 = vpop.f32.mrb[55].mxu0  ;;  %5195 = vmatprep.mubr.msk.f32.mxu1 %vm2330_vm2, %v5658_v27 }
0x3272   :  { %3443 = vst.msk [vmem:[#allocation17 + $0x40] sm:$0xff] %vm2330_vm2, %v5660_v39  ;;  %v3432_v61 = vadd.f32 %v3417_v36, %v6877_v8  ;;  %5196 = vmatmul.mubr.msk.f32.vlgmr.msra.gmra.mrb[48].mxu1 %vm2330_vm2, %v5660_v39 }
0x3273   :  { %5669 = vtanh.f32 %v3433_v35  ;;  %5466 = vmatpush3.bf16.msra.mxu1 %v6855_v37 }
0x3274   :  { %5671 = vtanh.f32 %v3432_v61  ;;  %5472 = vmatprep.subr.bf16.mxu1 %v6855_v37 }
0x3275   :  { %v5662_v38 = vpop.eup %5661 }
0x3276   :  { %v5664_v40 = vpop.eup %5663  ;;  %3447 = vst.msk [vmem:[#allocation17 + $0xd0] sm:$0xff] %vm2330_vm2, %v5662_v38 }
0x3277   :  { %3445 = vst.msk [vmem:[#allocation17 + $0x88] sm:$0xff] %vm2330_vm2, %v5664_v40  ;;  %5198 = vmatprep.mubr.msk.f32.mxu1 %vm2330_vm2, %v5664_v40 }
0x3278   :  { %5199 = vmatmul.mubr.msk.f32.gmra.mrb[50].mxu1 %vm2330_vm2, %v5662_v38 }
0x3279   :  { %v5666_v44 = vpop.eup %5665 }
0x327a   :  { %v5668_v3 = vpop.eup %5667  ;;  %3451 = vst.msk [vmem:[#allocation17 + $0x160] sm:$0xff] %vm2330_vm2, %v5666_v44 }
0x327b   :  { %3449 = vst.msk [vmem:[#allocation17 + $0x118] sm:$0xff] %vm2330_vm2, %v5668_v3  ;;  %5201 = vmatprep.mubr.msk.f32.mxu1 %vm2330_vm2, %v5668_v3 }
0x327c   :  { %5202 = vmatmul.mubr.msk.f32.gmra.mrb[52].mxu1 %vm2330_vm2, %v5666_v44 }
0x327d   :  { %v5670_v45 = vpop.eup %5669 }
0x327e   :  { %v5672_v46 = vpop.eup %5671  ;;  %3455 = vst.msk [vmem:[#allocation17 + $0x1f0] sm:$0xff] %vm2330_vm2, %v5670_v45 }
0x327f   :  { %3453 = vst.msk [vmem:[#allocation17 + $0x1a8] sm:$0xff] %vm2330_vm2, %v5672_v46  ;;  %5204 = vmatprep.mubr.msk.f32.mxu1 %vm2330_vm2, %v5672_v46 }
0x3280   :  { %5205 = vmatmul.mubr.msk.f32.gmra.mrb[54].mxu1 %vm2330_vm2, %v5670_v45 }
0x3345   :  { %v5197_v47 = vpop.f32.mrb[48].mxu1 }
0x3346   :  { %v3546_v48 = vpop.f32.mrb[49].mxu1 }
0x3347   :  { %5673 = vtanh.f32 %v3546_v48 }
0x3348   :  { %5675 = vtanh.f32 %v5197_v47 }
0x334b   :  { %v5200_v49 = vpop.f32.mrb[50].mxu1 }
0x334c   :  { %v3588_v50 = vadd.f32 %v5200_v49, %v6865_v31  ;;  %v3556_v51 = vpop.f32.mrb[51].mxu1 }
0x334d   :  { %v3587_v52 = vadd.f32 %v3556_v51, %v6867_v60 }
0x334e   :  { %5677 = vtanh.f32 %v3588_v50 }
0x334f   :  { %5679 = vtanh.f32 %v3587_v52  ;;  %v5203_v53 = vpop.f32.mrb[52].mxu1 }
0x3350   :  { %v3590_v54 = vadd.f32 %v5203_v53, %v6871_v4  ;;  %v3566_v43 = vpop.f32.mrb[53].mxu1 }
0x3351   :  { %v5674_v56 = vpop.eup %5673  ;;  %v3589_v57 = vadd.f32 %v3566_v43, %v6873_v33 }
0x3352   :  { %v5676_v5 = vpop.eup %5675  ;;  %5681 = vtanh.f32 %v3590_v54  ;;  %5211 = vmatprep.mubr.msk.f32.mxu0 %vm2330_vm2, %v5674_v56 }
0x3353   :  { %5683 = vtanh.f32 %v3589_v57  ;;  %v5206_v24 = vpop.f32.mrb[54].mxu1  ;;  %5212 = vmatmul.mubr.msk.f32.vlgmr.msra.gmra.mrb[56].mxu0 %vm2330_vm2, %v5676_v5 }
0x3354   :  { %v3592_v26 = vadd.f32 %v5206_v24, %v6877_v8  ;;  %v3576_v28 = vpop.f32.mrb[55].mxu1  ;;  %5470 = vmatpush3.bf16.msra.mxu0 %v6855_v37 }
0x3355   :  { %v3591_v29 = vadd.f32 %v3576_v28, %v6879_v55  ;;  %5476 = vmatprep.subr.bf16.mxu0 %v6855_v37 }
0x3356   :  { %5685 = vtanh.f32 %v3592_v26 }
0x3357   :  { %5687 = vtanh.f32 %v3591_v29 }
0x3358   :  { %v5678_v30 = vpop.eup %5677 }
0x3359   :  { %v5680_v32 = vpop.eup %5679  ;;  %3604 = vst.msk [vmem:[#allocation17 + $0xc8] sm:$0xff] %vm2330_vm2, %v5678_v30 }
0x335a   :  { %3602 = vst.msk [vmem:[#allocation17 + $0x80] sm:$0xff] %vm2330_vm2, %v5680_v32  ;;  %5214 = vmatprep.mubr.msk.f32.mxu0 %vm2330_vm2, %v5680_v32 }
0x335b   :  { %5215 = vmatmul.mubr.msk.f32.gmra.mrb[58].mxu0 %vm2330_vm2, %v5678_v30 }
0x335c   :  { %v5682_v63 = vpop.eup %5681 }
0x335d   :  { %v5684_v6 = vpop.eup %5683  ;;  %3608 = vst.msk [vmem:[#allocation17 + $0x158] sm:$0xff] %vm2330_vm2, %v5682_v63 }
0x335e   :  { %3606 = vst.msk [vmem:[#allocation17 + $0x110] sm:$0xff] %vm2330_vm2, %v5684_v6  ;;  %5217 = vmatprep.mubr.msk.f32.mxu0 %vm2330_vm2, %v5684_v6 }
0x335f   :  { %5218 = vmatmul.mubr.msk.f32.gmra.mrb[60].mxu0 %vm2330_vm2, %v5682_v63 }
0x3360   :  { %v5686_v7 = vpop.eup %5685 }
0x3361   :  { %v5688_v8 = vpop.eup %5687  ;;  %3612 = vst.msk [vmem:[#allocation17 + $0x1e8] sm:$0xff] %vm2330_vm2, %v5686_v7 }
0x3362   :  { %3610 = vst.msk [vmem:[#allocation17 + $0x1a0] sm:$0xff] %vm2330_vm2, %v5688_v8  ;;  %5220 = vmatprep.mubr.msk.f32.mxu0 %vm2330_vm2, %v5688_v8 }
0x3363   :  { %5221 = vmatmul.mubr.msk.f32.gmra.mrb[62].mxu0 %vm2330_vm2, %v5686_v7 }
0x3426   :  { %v5213_v10 = vpop.f32.mrb[56].mxu0 }
0x3427   :  { %v3703_v11 = vpop.f32.mrb[57].mxu0 }
0x3428   :  { %5689 = vtanh.f32 %v3703_v11 }
0x3429   :  { %5691 = vtanh.f32 %v5213_v10 }
0x342e   :  { %v5216_v12 = vpop.f32.mrb[58].mxu0 }
0x342f   :  { %v3745_v14 = vadd.f32 %v5216_v12, %v6867_v60  ;;  %v3713_v13 = vpop.f32.mrb[59].mxu0 }
0x3430   :  { %5693 = vtanh.f32 %v3713_v13 }
0x3431   :  { %5695 = vtanh.f32 %v3745_v14 }
0x3432   :  { %v5690_v58 = vpop.eup %5689  ;;  %v5219_v16 = vpop.f32.mrb[60].mxu0 }
0x3433   :  { %v5692_v42 = vpop.eup %5691  ;;  %v3747_v2 = vadd.f32 %v5219_v16, %v6873_v33  ;;  %v3723_v15 = vpop.f32.mrb[61].mxu0  ;;  %5227 = vmatprep.mubr.msk.f32.mxu1 %vm2330_vm2, %v5690_v58 }
0x3434   :  { %v3746_v9 = vadd.f32 %v3723_v15, %v6865_v31  ;;  %5228 = vmatmul.mubr.msk.f32.vlgmr.msra.gmra.mrb[56].mxu1 %vm2330_vm2, %v5692_v42 }
0x3435   :  { %5697 = vtanh.f32 %v3747_v2  ;;  %5474 = vmatpush3.bf16.msra.mxu1 %v6855_v37 }
0x3436   :  { %5699 = vtanh.f32 %v3746_v9  ;;  %v5222_v59 = vpop.f32.mrb[62].mxu0 }
0x3437   :  { %v3749_v0 = vadd.f32 %v5222_v59, %v6879_v55  ;;  %v3733_v62 = vpop.f32.mrb[63].mxu0 }
0x3438   :  { %v3748_v41 = vadd.f32 %v3733_v62, %v6871_v4 }
0x3439   :  { %5701 = vtanh.f32 %v3749_v0 }
0x343a   :  { %v5694_v18 = vpop.eup %5693  ;;  %5703 = vtanh.f32 %v3748_v41 }
0x343b   :  { %v5696_v19 = vpop.eup %5695  ;;  %5230 = vmatprep.mubr.msk.f32.mxu1 %vm2330_vm2, %v5694_v18 }
0x343c   :  { %3759 = vst.msk [vmem:[#allocation17 + $0xc0] sm:$0xff] %vm2330_vm2, %v5696_v19  ;;  %5231 = vmatmul.mubr.msk.f32.gmra.mrb[58].mxu1 %vm2330_vm2, %v5696_v19 }
0x343f   :  { %v5698_v20 = vpop.eup %5697 }
0x3440   :  { %v5700_v17 = vpop.eup %5699  ;;  %3763 = vst.msk [vmem:[#allocation17 + $0x150] sm:$0xff] %vm2330_vm2, %v5698_v20 }
0x3441   :  { %3761 = vst.msk [vmem:[#allocation17 + $0x108] sm:$0xff] %vm2330_vm2, %v5700_v17  ;;  %5233 = vmatprep.mubr.msk.f32.mxu1 %vm2330_vm2, %v5700_v17 }
0x3442   :  { %5234 = vmatmul.mubr.msk.f32.gmra.mrb[60].mxu1 %vm2330_vm2, %v5698_v20 }
0x3443   :  { %v5702_v55 = vpop.eup %5701 }
0x3444   :  { %v5704_v1 = vpop.eup %5703  ;;  %3767 = vst.msk [vmem:[#allocation17 + $0x1e0] sm:$0xff] %vm2330_vm2, %v5702_v55 }
0x3445   :  { %3765 = vst.msk [vmem:[#allocation17 + $0x198] sm:$0xff] %vm2330_vm2, %v5704_v1  ;;  %5236 = vmatprep.mubr.msk.f32.mxu1 %vm2330_vm2, %v5704_v1 }
0x3446   :  { %5237 = vmatmul.mubr.msk.f32.gmra.mrb[62].mxu1 %vm2330_vm2, %v5702_v55 }
0x3507   :  { %v5229_v21 = vpop.f32.mrb[56].mxu1 }
0x3508   :  { %v3858_v22 = vpop.f32.mrb[57].mxu1 }
0x3509   :  { %5705 = vtanh.f32 %v3858_v22 }
0x350a   :  { %5707 = vtanh.f32 %v5229_v21 }
0x350f   :  { %v5232_v23 = vpop.f32.mrb[58].mxu1 }
0x3510   :  { %v3868_v25 = vpop.f32.mrb[59].mxu1 }
0x3511   :  { %5709 = vtanh.f32 %v3868_v25 }
0x3512   :  { %5711 = vtanh.f32 %v5232_v23 }
0x3513   :  { %v5706_v27 = vpop.eup %5705 }
0x3514   :  { %v5708_v34 = vpop.eup %5707  ;;  %5243 = vmatprep.mubr.msk.f32.mxu0 %vm2330_vm2, %v5706_v27 }
0x3515   :  { %v5235_v39 = vpop.f32.mrb[60].mxu1  ;;  %5244 = vmatmul.mubr.msk.f32.vlgmr.msra.gmra.mrb[64].mxu0 %vm2330_vm2, %v5708_v34 }
0x3516   :  { %v3902_v35 = vadd.f32 %v5235_v39, %v6865_v31  ;;  %v3878_v36 = vpop.f32.mrb[61].mxu1  ;;  %5478 = vmatpush3.bf16.msra.mxu0 %v6855_v37 }
0x3517   :  { %v3901_v61 = vadd.f32 %v3878_v36, %v6867_v60 }
0x3518   :  { %5713 = vtanh.f32 %v3902_v35 }
0x3519   :  { %5715 = vtanh.f32 %v3901_v61  ;;  %v5238_v38 = vpop.f32.mrb[62].mxu1 }
0x351a   :  { %v3904_v40 = vadd.f32 %v5238_v38, %v6871_v4  ;;  %v3888_v44 = vpop.f32.mrb[63].mxu1 }
0x351b   :  { %v5710_v3 = vpop.eup %5709  ;;  %v3903_v45 = vadd.f32 %v3888_v44, %v6873_v33 }
0x351c   :  { %v5712_v46 = vpop.eup %5711  ;;  %5717 = vtanh.f32 %v3904_v40  ;;  %5246 = vmatprep.mubr.msk.f32.mxu0 %vm2330_vm2, %v5710_v3 }
0x351d   :  { %5719 = vtanh.f32 %v3903_v45  ;;  %5247 = vmatmul.mubr.msk.f32.gmra.mrb[66].mxu0 %vm2330_vm2, %v5712_v46 }
0x3522   :  { %v5714_v47 = vpop.eup %5713 }
0x3523   :  { %v5716_v37 = vpop.eup %5715  ;;  %3916 = vst.msk [vmem:[#allocation17 + $0x148] sm:$0xff] %vm2330_vm2, %v5714_v47 }
0x3524   :  { %3914 = vst.msk [vmem:[#allocation17 + $0x100] sm:$0xff] %vm2330_vm2, %v5716_v37  ;;  %5249 = vmatprep.mubr.msk.f32.mxu0 %vm2330_vm2, %v5716_v37 }
0x3525   :  { %5250 = vmatmul.mubr.msk.f32.gmra.mrb[68].mxu0 %vm2330_vm2, %v5714_v47 }
0x3526   :  { %v5718_v4 = vpop.eup %5717 }
0x3527   :  { %v5720_v48 = vpop.eup %5719  ;;  %3920 = vst.msk [vmem:[#allocation17 + $0x1d8] sm:$0xff] %vm2330_vm2, %v5718_v4 }
0x3528   :  { %3918 = vst.msk [vmem:[#allocation17 + $0x190] sm:$0xff] %vm2330_vm2, %v5720_v48  ;;  %5252 = vmatprep.mubr.msk.f32.mxu0 %vm2330_vm2, %v5720_v48 }
0x3529   :  { %5253 = vmatmul.mubr.msk.f32.gmra.mrb[70].mxu0 %vm2330_vm2, %v5718_v4 }
0x35e8   :  { %v5245_v49 = vpop.f32.mrb[64].mxu0 }
0x35e9   :  { %v4011_v50 = vpop.f32.mrb[65].mxu0 }
0x35ea   :  { %5721 = vtanh.f32 %v4011_v50 }
0x35eb   :  { %5723 = vtanh.f32 %v5245_v49 }
0x35f0   :  { %v5248_v51 = vpop.f32.mrb[66].mxu0 }
0x35f1   :  { %v4021_v52 = vpop.f32.mrb[67].mxu0 }
0x35f2   :  { %5725 = vtanh.f32 %v4021_v52 }
0x35f3   :  { %5727 = vtanh.f32 %v5248_v51 }
0x35f4   :  { %v5722_v53 = vpop.eup %5721 }
0x35f5   :  { %v5724_v54 = vpop.eup %5723  ;;  %5259 = vmatprep.mubr.msk.f32.mxu1 %vm2330_vm2, %v5722_v53 }
0x35f6   :  { %5260 = vmatmul.mubr.msk.f32.vlgmr.msra.gmra.mrb[64].mxu1 %vm2330_vm2, %v5724_v54 }
0x35f8   :  { %v5251_v43 = vpop.f32.mrb[68].mxu0 }
0x35f9   :  { %v4055_v56 = vadd.f32 %v5251_v43, %v6867_v60  ;;  %v4031_v57 = vpop.f32.mrb[69].mxu0 }
0x35fa   :  { %5729 = vtanh.f32 %v4031_v57 }
0x35fb   :  { %5731 = vtanh.f32 %v4055_v56 }
0x35fc   :  { %v5726_v5 = vpop.eup %5725  ;;  %v5254_v24 = vpop.f32.mrb[70].mxu0 }
0x35fd   :  { %v5728_v26 = vpop.eup %5727  ;;  %v4057_v28 = vadd.f32 %v5254_v24, %v6873_v33  ;;  %v4041_v29 = vpop.f32.mrb[71].mxu0  ;;  %5262 = vmatprep.mubr.msk.f32.mxu1 %vm2330_vm2, %v5726_v5 }
0x35fe   :  { %v4056_v30 = vadd.f32 %v4041_v29, %v6865_v31  ;;  %5263 = vmatmul.mubr.msk.f32.gmra.mrb[66].mxu1 %vm2330_vm2, %v5728_v26 }
0x35ff   :  { %5733 = vtanh.f32 %v4057_v28 }
0x3600   :  { %5735 = vtanh.f32 %v4056_v30 }
0x3604   :  { %v5730_v32 = vpop.eup %5729 }
0x3605   :  { %v5732_v63 = vpop.eup %5731  ;;  %5265 = vmatprep.mubr.msk.f32.mxu1 %vm2330_vm2, %v5730_v32 }
0x3606   :  { %4067 = vst.msk [vmem:[#allocation17 + $0x140] sm:$0xff] %vm2330_vm2, %v5732_v63  ;;  %5266 = vmatmul.mubr.msk.f32.gmra.mrb[68].mxu1 %vm2330_vm2, %v5732_v63 }
0x3609   :  { %v5734_v6 = vpop.eup %5733 }
0x360a   :  { %v5736_v7 = vpop.eup %5735  ;;  %4071 = vst.msk [vmem:[#allocation17 + $0x1d0] sm:$0xff] %vm2330_vm2, %v5734_v6 }
0x360b   :  { %4069 = vst.msk [vmem:[#allocation17 + $0x188] sm:$0xff] %vm2330_vm2, %v5736_v7  ;;  %5268 = vmatprep.mubr.msk.f32.mxu1 %vm2330_vm2, %v5736_v7 }
0x360c   :  { %5269 = vmatmul.mubr.msk.f32.gmra.mrb[70].mxu1 %vm2330_vm2, %v5734_v6 }
0x36c9   :  { %v5261_v33 = vpop.f32.mrb[64].mxu1 }
0x36ca   :  { %v4162_v8 = vpop.f32.mrb[65].mxu1 }
0x36cb   :  { %5737 = vtanh.f32 %v4162_v8 }
0x36cc   :  { %5739 = vtanh.f32 %v5261_v33 }
0x36d1   :  { %v5264_v10 = vpop.f32.mrb[66].mxu1 }
0x36d2   :  { %v4172_v11 = vpop.f32.mrb[67].mxu1 }
0x36d3   :  { %5741 = vtanh.f32 %v4172_v11 }
0x36d4   :  { %5743 = vtanh.f32 %v5264_v10 }
0x36d5   :  { %v5738_v12 = vpop.eup %5737 }
0x36d6   :  { %v5740_v14 = vpop.eup %5739  ;;  %5275 = vmatprep.mubr.msk.f32.mxu0 %vm2330_vm2, %v5738_v12 }
0x36d7   :  { %5276 = vmatmul.mubr.msk.f32.vlgmr.msra.gmra.mrb[72].mxu0 %vm2330_vm2, %v5740_v14 }
0x36d9   :  { %v5267_v13 = vpop.f32.mrb[68].mxu1 }
0x36da   :  { %v4182_v58 = vpop.f32.mrb[69].mxu1 }
0x36db   :  { %5745 = vtanh.f32 %v4182_v58 }
0x36dc   :  { %5747 = vtanh.f32 %v5267_v13 }
0x36dd   :  { %v5742_v16 = vpop.eup %5741 }
0x36de   :  { %v5744_v42 = vpop.eup %5743  ;;  %5278 = vmatprep.mubr.msk.f32.mxu0 %vm2330_vm2, %v5742_v16 }
0x36df   :  { %v5270_v2 = vpop.f32.mrb[70].mxu1  ;;  %5279 = vmatmul.mubr.msk.f32.gmra.mrb[74].mxu0 %vm2330_vm2, %v5744_v42 }
0x36e0   :  { %v4208_v15 = vadd.f32 %v5270_v2, %v6865_v31  ;;  %v4192_v9 = vpop.f32.mrb[71].mxu1 }
0x36e1   :  { %v4207_v59 = vadd.f32 %v4192_v9, %v6867_v60 }
0x36e2   :  { %5749 = vtanh.f32 %v4208_v15 }
0x36e3   :  { %5751 = vtanh.f32 %v4207_v59 }
0x36e5   :  { %v5746_v0 = vpop.eup %5745 }
0x36e6   :  { %v5748_v62 = vpop.eup %5747  ;;  %5281 = vmatprep.mubr.msk.f32.mxu0 %vm2330_vm2, %v5746_v0 }
0x36e7   :  { %5282 = vmatmul.mubr.msk.f32.gmra.mrb[76].mxu0 %vm2330_vm2, %v5748_v62 }
0x36ec   :  { %v5750_v41 = vpop.eup %5749 }
0x36ed   :  { %v5752_v18 = vpop.eup %5751  ;;  %4220 = vst.msk [vmem:[#allocation17 + $0x1c8] sm:$0xff] %vm2330_vm2, %v5750_v41 }
0x36ee   :  { %4218 = vst.msk [vmem:[#allocation17 + $0x180] sm:$0xff] %vm2330_vm2, %v5752_v18  ;;  %5284 = vmatprep.mubr.msk.f32.mxu0 %vm2330_vm2, %v5752_v18 }
0x36ef   :  { %5285 = vmatmul.mubr.msk.f32.gmra.mrb[78].mxu0 %vm2330_vm2, %v5750_v41 }
0x36f0   :  { %5862 = shalt.err (!%p5859_p8)
}
0x36f1   :  { %s5863_s1 = scalar_lea.hbm %s7113_s14, 1024 }
0x36f2   :  { %p5864_p9 = scmp.ne.s32.totalorder %s7113_s14, %s5863_s1  ;;  %p5867_p10 = scmp.lt.u32.totalorder %s5863_s1, %s7113_s14 }
0x36f4   :  { %p5869_p11 = pnand %p5867_p10, %p5864_p9 }
0x36f6   :  { %5872 = shalt.err (!%p5869_p11)
}
0x36f7   :  { %4370 = dma.vmem_to_hbm [thread:$0]  %s4365_s4, 1024, %s7113_s14, [#allocation13], %s5975_s6, %s5975_s6, %s5976_s25  }
0x36f8   :  { %s5873_s21 = scalar_lea.vmem %s7008_s19, 1024  ;;  %p5878_p13 = scmp.lt.s32.totalorder %s7008_s19, %s7008_s19 }
0x36f9   :  { %p5874_p12 = scmp.ne.s32.totalorder %s7008_s19, %s5873_s21  ;;  %p5879_p0 = scmp.lt.s32.totalorder %s5873_s21, %s5873_s21 }
0x36fb   :  { %p5880_p1 = por %p5879_p0, %p5878_p13 }
0x36fd   :  { %p5881_p2 = pnand %p5880_p1, %p5874_p12 }
0x36ff   :  { %5884 = shalt.err (!%p5881_p2)
}
0x3700   :  { %s5885_s2 = scalar_lea.hbm %s7115_s16, 1024 }
0x3701   :  { %p5886_p3 = scmp.ne.s32.totalorder %s7115_s16, %s5885_s2  ;;  %p5889_p4 = scmp.lt.u32.totalorder %s5885_s2, %s7115_s16 }
0x3703   :  { %p5891_p5 = pnand %p5889_p4, %p5886_p3 }
0x3705   :  { %5894 = shalt.err (!%p5891_p5)
}
0x3706   :  { %4394 = dma.vmem_to_hbm [thread:$0]  %s7008_s19, 1024, %s7115_s16, [#allocation16], %s5975_s6, %s5975_s6, %s5976_s25  }
0x3707   :  { %s5986_s18 = smov [#allocation11]   ;;  %s5987_s4 = smov [#allocation14]  }
0x3708   :  { %s4352_s7 = sshll.u32 %s5986_s18, 4  ;;  %s4376_s22 = sshll.u32 %s5987_s4, 4  ;;  %s4353_s7 = int_to_ptr.vmem [resolvable:$true] %s4352_s7  ;;  %s7045_s22 = int_to_ptr.vmem [resolvable:$true] %s4376_s22 }
0x3709   :  { %s5895_s27 = scalar_lea.vmem %s4353_s7, 1024  ;;  %p5900_p7 = scmp.lt.s32.totalorder %s4353_s7, %s4353_s7 }
0x370a   :  { %p5896_p6 = scmp.ne.s32.totalorder %s4353_s7, %s5895_s27  ;;  %p5901_p8 = scmp.lt.s32.totalorder %s5895_s27, %s5895_s27 }
0x370c   :  { %p5902_p9 = por %p5901_p8, %p5900_p7 }
0x370e   :  { %p5903_p10 = pnand %p5902_p9, %p5896_p6 }
0x3710   :  { %5906 = shalt.err (!%p5903_p10)
}
0x3711   :  { %s5907_s1 = scalar_lea.hbm %s7112_s13, 1024 }
0x3712   :  { %p5908_p11 = scmp.ne.s32.totalorder %s7112_s13, %s5907_s1  ;;  %p5911_p12 = scmp.lt.u32.totalorder %s5907_s1, %s7112_s13 }
0x3714   :  { %p5913_p13 = pnand %p5911_p12, %p5908_p11 }
0x3716   :  { %5916 = shalt.err (!%p5913_p13)
}
0x3717   :  { %4358 = dma.vmem_to_hbm [thread:$0]  %s4353_s7, 1024, %s7112_s13, [#allocation5], %s5975_s6, %s5975_s6, %s5976_s25  }
0x3718   :  { %s5917_s8 = scalar_lea.vmem %s7045_s22, 1024  ;;  %p5922_p1 = scmp.lt.s32.totalorder %s7045_s22, %s7045_s22 }
0x3719   :  { %p5918_p0 = scmp.ne.s32.totalorder %s7045_s22, %s5917_s8  ;;  %p5923_p2 = scmp.lt.s32.totalorder %s5917_s8, %s5917_s8 }
0x371b   :  { %p5924_p3 = por %p5923_p2, %p5922_p1 }
0x371d   :  { %p5925_p4 = pnand %p5924_p3, %p5918_p0 }
0x371f   :  { %5928 = shalt.err (!%p5925_p4)
}
0x3720   :  { %s5929_s28 = scalar_lea.hbm %s7114_s15, 1024 }
0x3721   :  { %p5930_p5 = scmp.ne.s32.totalorder %s7114_s15, %s5929_s28  ;;  %p5933_p6 = scmp.lt.u32.totalorder %s5929_s28, %s7114_s15 }
0x3723   :  { %p5935_p7 = pnand %p5933_p6, %p5930_p5 }
0x3725   :  { %5938 = shalt.err (!%p5935_p7)
}
0x3726   :  { %4382 = dma.vmem_to_hbm [thread:$0]  %s7045_s22, 1024, %s7114_s15, [#allocation13], %s5975_s6, %s5975_s6, %s5976_s25  }
0x3727   :  { %s5988_s23 = smov [#allocation17]  }
0x3728   :  { %s4400_s14 = sshll.u32 %s5988_s23, 4  ;;  %s4401_s14 = int_to_ptr.vmem [resolvable:$true] %s4400_s14 }
0x3729   :  { %s5939_s30 = scalar_lea.vmem %s4401_s14, 8192  ;;  %p5944_p9 = scmp.lt.s32.totalorder %s4401_s14, %s4401_s14 }
0x372a   :  { %p5940_p8 = scmp.ne.s32.totalorder %s4401_s14, %s5939_s30  ;;  %p5945_p10 = scmp.lt.s32.totalorder %s5939_s30, %s5939_s30 }
0x372c   :  { %p5946_p11 = por %p5945_p10, %p5944_p9 }
0x372e   :  { %p5947_p12 = pnand %p5946_p11, %p5940_p8 }
0x37aa   :  { %v5277_v31 = vpop.f32.mrb[72].mxu0 }
0x37ab   :  { %v4311_v19 = vpop.f32.mrb[73].mxu0 }
0x37b2   :  { %v5280_v20 = vpop.f32.mrb[74].mxu0 }
0x37b3   :  { %v4319_v17 = vpop.f32.mrb[75].mxu0 }
0x37ba   :  { %v5283_v55 = vpop.f32.mrb[76].mxu0 }
0x37bb   :  { %v4327_v1 = vpop.f32.mrb[77].mxu0 }
0x37c2   :  { %v5286_v21 = vpop.f32.mrb[78].mxu0 }
0x37c3   :  { %v4343_v22 = vadd.f32 %v5286_v21, %v6867_v60  ;;  %v4335_v23 = vpop.f32.mrb[79].mxu0 }
0x37c5   :  { %5753 = vtanh.f32 %v4343_v22 }
0x37cf   :  { %v5754_v25 = vpop.eup %5753 }
0x37d0   :  { %4346 = vst.msk [vmem:[#allocation17 + $0x1c0] sm:$0xff] %vm2330_vm2, %v5754_v25 }
0x37d1   :  { %5950 = shalt.err (!%p5947_p12)
}
0x37d2   :  { %s5951_s7 = scalar_lea.hbm %s7116_s17, 8192 }
0x37d3   :  { %p5952_p13 = scmp.ne.s32.totalorder %s7116_s17, %s5951_s7  ;;  %p5955_p0 = scmp.lt.u32.totalorder %s5951_s7, %s7116_s17 }
0x37d5   :  { %p5957_p1 = pnand %p5955_p0, %p5952_p13 }
0x37d7   :  { %5960 = shalt.err (!%p5957_p1)
}
0x37d8   :  { %4406 = dma.vmem_to_hbm [thread:$0]  %s4401_s14, 8192, %s7116_s17, [#allocation16], %s5975_s6, %s5975_s6, %s5976_s25  }
0x37d9   :  { %5967 = dma.done.wait [#allocation5], 1024  }
0x37da   :  { %5968 = vsyncadd [#allocation5], 4294966272 }
0x37db   :  { %5969 = dma.done.wait [#allocation13], 2048  }
0x37dc   :  { %5970 = vsyncadd [#allocation13], 4294965248 }
0x37dd   :  { %5971 = dma.done.wait [#allocation16], 9216  }
0x37de   :  { %5972 = vsyncadd [#allocation16], 4294958080 }
0x37df   :  { %4422 = vsyncpa [#allocation4], 1 }
0x37e0   :  { %4423 = vsyncpa [#allocation7], 1 }
0x37e1   :  { %4424 = vsyncpa [#allocation10], 1 }
0x37e2   :  { %4425 = vsyncpa [#allocation5], 1 }
0x37e3   :  { %4426 = vsyncpa [#allocation13], 1 }
0x37e4   :  { %4427 = vsyncpa [#allocation16], 1 }

</bundles_post_ra>
